<compile_context>
chip_gen: v5e
topology: v5e:2x2
jax: 0.10.0
libtpu: 0.0.40
codegen_flags: <defaults>
</compile_context>

<pallas_src>
import jax
import jax.numpy as jnp
from jax.experimental import pallas as pl
from jax.experimental.pallas import tpu as pltpu

_SQRT_2_OVER_PI = 0.7978845608028654


def _gelu_tanh(x):
    # GELU(approximate='tanh'): 0.5*x*(1 + tanh(sqrt(2/pi)*(x + 0.044715*x^3)))
    return 0.5 * x * (1.0 + jnp.tanh(_SQRT_2_OVER_PI * (x + 0.044715 * x * x * x)))


def mlp_kernel(x_ref, w1_ref, b1_ref, w2_ref, b2_ref, o_ref, acc_ref):
    j = pl.program_id(1)

    @pl.when(j == 0)
    def _():
        acc_ref[...] = jnp.zeros_like(acc_ref)

    # fc1 partial over this hidden slice: (tm, D_in) @ (D_in, th) -> f32
    h = jnp.dot(x_ref[...], w1_ref[...], preferred_element_type=jnp.float32)
    h = h + b1_ref[...]                       # (tm, th) + (1, th), f32

    # GELU(tanh) in f32 (VPU/EUP, hidden under MXU work), single downcast to
    # bf16 to feed the second MXU matmul.
    g = _gelu_tanh(h).astype(w2_ref.dtype)

    # fc2 partial: accumulate (tm, th) @ (th, D_out) into the f32 scratch.
    acc_ref[...] += jnp.dot(g, w2_ref[...], preferred_element_type=jnp.float32)

    @pl.when(j == pl.num_programs(1) - 1)
    def _():
        o_ref[...] = (acc_ref[...] + b2_ref[...]).astype(o_ref.dtype)


def _round_up(x, m):
    return ((x + m - 1) // m) * m


def _physical_vmem_bytes():
    """Physical VMEM per core; conservative 64 MiB (v7x) fallback."""
    try:
        info = pltpu.get_tpu_info()
        cap = getattr(info, "vmem_capacity_bytes", None)
        if cap:
            return int(cap)
    except Exception:
        pass
    return 64 << 20


def _working_set_bytes(tm, th, d_in, d_out):
    """Double-buffered inputs/outputs + f32 accumulator, bf16 tiles."""
    x_t = tm * d_in * 2
    w1_t = d_in * th * 2
    w2_t = th * d_out * 2
    o_t = tm * d_out * 2
    b_t = (th + d_out) * 4
    acc = tm * d_out * 4
    return 2 * (x_t + w1_t + w2_t + o_t + b_t) + acc


def vision_projection(x, w1, b1, w2, b2, *, tm=None, th=None,
                      min_row_tiles=1, out_dtype=jnp.bfloat16):
    """y = gelu_tanh(x @ w1 + b1) @ w2 + b2, fused on TPU.

    x : (N, D_in); w1 : (D_in, H); b1 : (H,) or (1, H);
    w2 : (H, D_out); b2 : (D_out,) or (1, D_out).

    Pass weights already in bf16 (see init_params) to avoid a per-call cast.
    On v7x, pass min_row_tiles=2 so both TensorCores receive a row tile.
    """
    N, D_in = x.shape
    D_in_w, H = w1.shape
    H_w, D_out = w2.shape
    assert D_in == D_in_w and H == H_w
    assert D_in % 128 == 0 and D_out % 128 == 0, \
        "D_in and D_out must be multiples of 128 (lane constraint)"

    # bf16 on the MXU; no-op when params are already bf16 (preferred).
    x_bf = x if x.dtype == jnp.bfloat16 else x.astype(jnp.bfloat16)
    w1_bf = w1 if w1.dtype == jnp.bfloat16 else w1.astype(jnp.bfloat16)
    w2_bf = w2 if w2.dtype == jnp.bfloat16 else w2.astype(jnp.bfloat16)
    b1_f = b1.astype(jnp.float32).reshape(1, H)
    b2_f = b2.astype(jnp.float32).reshape(1, D_out)

    # ---- tile selection -----------------------------------------------------
    if th is None:
        th = min(H, 1024)
        if H % th != 0:
            th = H
    assert H % th == 0, "hidden dim must be divisible by hidden tile"

    phys_vmem = _physical_vmem_bytes()
    vmem_budget = int(phys_vmem * 0.85)     # leave headroom below physical

    if tm is None:
        # Biggest row tile that covers N (fewer re-streams of the weights),
        # optionally split into >=min_row_tiles for megacore, capped at 768
        # and by the VMEM budget.
        per_tile_rows = -(-N // max(1, min_row_tiles))
        tm = max(128, min(_round_up(per_tile_rows, 128), 768))
    while tm > 128 and _working_set_bytes(tm, th, D_in, D_out) > vmem_budget:
        tm -= 128

    # vmem limit: actual working set + headroom, never above 85% of physical.
    vmem_limit = int(min(vmem_budget,
                         max(_working_set_bytes(tm, th, D_in, D_out) + (8 << 20),
                             32 << 20)))

    # Pad the token axis so any N (e.g. 729 tokens/crop) works with a big tm.
    n_row_tiles = pl.cdiv(N, tm)
    n_pad = n_row_tiles * tm
    if n_pad != N:
        x_bf = jnp.pad(x_bf, ((0, n_pad - N), (0, 0)))

    grid = (n_row_tiles, H // th)

    # Weights/biases are re-fetched once per row tile (index_map depends on j
    # only); x is fetched once per row tile; output written once per row tile.
    cost = pl.CostEstimate(
        flops=2 * n_pad * (D_in * H + H * D_out),
        transcendentals=n_pad * H,
        bytes_accessed=(x_bf.size * 2
                        + n_row_tiles * (w1_bf.size * 2 + w2_bf.size * 2
                                         + b1_f.size * 4 + b2_f.size * 4)
                        + n_pad * D_out * jnp.dtype(out_dtype).itemsize),
    )

    out = pl.pallas_call(
        mlp_kernel,
        out_shape=jax.ShapeDtypeStruct((n_pad, D_out), out_dtype),
        grid_spec=pltpu.PrefetchScalarGridSpec(
            num_scalar_prefetch=0,
            grid=grid,
            in_specs=[
                pl.BlockSpec((tm, D_in), lambda i, j: (i, 0)),    # x row tile
                pl.BlockSpec((D_in, th), lambda i, j: (0, j)),    # fc1 W slice
                pl.BlockSpec((1, th), lambda i, j: (0, j)),       # fc1 bias slice
                pl.BlockSpec((th, D_out), lambda i, j: (j, 0)),   # fc2 W slice
                pl.BlockSpec((1, D_out), lambda i, j: (0, 0)),    # fc2 bias
            ],
            out_specs=pl.BlockSpec((tm, D_out), lambda i, j: (i, 0)),
            scratch_shapes=[pltpu.VMEM((tm, D_out), jnp.float32)],
        ),
        compiler_params=pltpu.CompilerParams(
            dimension_semantics=("parallel", "arbitrary"),
            vmem_limit_bytes=vmem_limit,
        ),
        cost_estimate=cost,
    )(x_bf, w1_bf, b1_f, w2_bf, b2_f)

    return out[:N] if n_pad != N else out


def init_params(key, d_in, hidden, d_out, weight_dtype=jnp.bfloat16):
    """kaiming_normal(fan_in, relu)-style init matching nn.Linear(d_in, hidden)
    / nn.Linear(hidden, d_out), weights stored transposed (in, out) and
    pre-cast to bf16 ONCE here (not per forward call)."""
    k1, k2, k3, k4 = jax.random.split(key, 4)
    w1 = (jax.random.normal(k1, (d_in, hidden), jnp.float32)
          * jnp.sqrt(2.0 / d_in)).astype(weight_dtype)
    w2 = (jax.random.normal(k2, (hidden, d_out), jnp.float32)
          * jnp.sqrt(2.0 / hidden)).astype(weight_dtype)
    # nn.Linear default bias init: U(-1/sqrt(fan_in), 1/sqrt(fan_in)); keep f32.
    b1 = jax.random.uniform(k3, (1, hidden), jnp.float32,
                            -1.0 / jnp.sqrt(d_in), 1.0 / jnp.sqrt(d_in))
    b2 = jax.random.uniform(k4, (1, d_out), jnp.float32,
                            -1.0 / jnp.sqrt(hidden), 1.0 / jnp.sqrt(hidden))
    return w1, b1, w2, b2


if __name__ == "__main__":
    # Small shapes mirroring VisionProjection structure:
    #   image_embedding_dim = 128 -> in_features = 2 * 128 = 256
    #   model_dim           = 128 -> hidden = 4 * 128 = 512, out = 128
    # (real model: 2304 / 8192 / 2048)
    image_embedding_dim = 128
    model_dim = 128
    d_in = image_embedding_dim * 2
    hidden = model_dim * 4
    d_out = model_dim
    n_tokens = 200   # deliberately NOT a multiple of the row tile

    key = jax.random.PRNGKey(0)
    kx, kp = jax.random.split(key)
    x = jax.random.normal(kx, (n_tokens, d_in), jnp.float32)
    w1, b1, w2, b2 = init_params(kp, d_in, hidden, d_out)   # weights already bf16

    # 1) auto tile selection (what production would use)
    out_auto = vision_projection(x, w1, b1, w2, b2)
    # 2) explicit small tiles: exercises both row padding and the H-reduction axis
    out_tiled = vision_projection(x, w1, b1, w2, b2, tm=128, th=256)
    out_auto, out_tiled = jax.block_until_ready((out_auto, out_tiled))

    assert out_auto.shape == (n_tokens, d_out) and out_auto.dtype == jnp.bfloat16
    assert out_tiled.shape == (n_tokens, d_out) and out_tiled.dtype == jnp.bfloat16

    # Reference in plain JAX mirroring the kernel's quantization points
    # (bf16 inputs/weights, f32 accumulate, single bf16 downcast of GELU, bf16 out).
    xb = x.astype(jnp.bfloat16).astype(jnp.float32)
    w1f = w1.astype(jnp.float32)
    w2f = w2.astype(jnp.float32)
    g = _gelu_tanh(xb @ w1f + b1).astype(jnp.bfloat16).astype(jnp.float32)
    ref = (g @ w2f + b2).astype(jnp.bfloat16).astype(jnp.float32)

    assert jnp.allclose(out_auto.astype(jnp.float32), ref, atol=2e-2, rtol=2e-2)
    assert jnp.allclose(out_tiled.astype(jnp.float32), ref, atol=2e-2, rtol=2e-2)

    print("KERNEL_OK")
</pallas_src>

<mosaic_0001>
module attributes {stable_mosaic.version = 11 : i64} {
  func.func @mlp_kernel(%arg0: i32, %arg1: i32, %arg2: memref<256x256xbf16, #tpu.memory_space<vmem>>, %arg3: memref<256x512xbf16, #tpu.memory_space<vmem>>, %arg4: memref<1x512xf32, #tpu.memory_space<vmem>>, %arg5: memref<512x128xbf16, #tpu.memory_space<vmem>>, %arg6: memref<1x128xf32, #tpu.memory_space<vmem>>, %arg7: memref<256x128xbf16, #tpu.memory_space<vmem>>, %arg8: memref<256x128xf32, #tpu.memory_space<vmem>>) attributes {dimension_semantics = [#tpu.dimension_semantics<parallel>, #tpu.dimension_semantics<arbitrary>], iteration_bounds = array<i64: 1, 1>, scalar_prefetch = 0 : i64, scratch_operands = 1 : i64, tpu.core_type = #tpu.core_type<tc>, window_params = [{transform_indices = @transform_0, window_bounds = array<i64: 256, 256>}, {transform_indices = @transform_1, window_bounds = array<i64: 256, 512>}, {transform_indices = @transform_2, window_bounds = array<i64: 1, 512>}, {transform_indices = @transform_3, window_bounds = array<i64: 512, 128>}, {pipeline_mode = #tpu.pipeline_mode<synchronous>, transform_indices = @transform_4, window_bounds = array<i64: 1, 128>}, {transform_indices = @transform_5, window_bounds = array<i64: 256, 128>}]} {
    %c0_i32 = arith.constant 0 : i32
    %0 = arith.cmpi eq, %arg1, %c0_i32 : i32
    %1 = arith.extui %0 : i1 to i32
    %c0_i32_0 = arith.constant 0 : i32
    %2 = arith.cmpi ne, %1, %c0_i32_0 : i32
    scf.if %2 {
      %cst_19 = arith.constant 0.000000e+00 : f32
      %31 = vector.broadcast %cst_19 : f32 to vector<256x128xf32>
      %c0_20 = arith.constant 0 : index
      %c0_21 = arith.constant 0 : index
      %32 = vector.load %arg8[%c0_20, %c0_21] : memref<256x128xf32, #tpu.memory_space<vmem>>, vector<256x128xf32>
      tpu.vector_store %arg8[%c0_20, %c0_21], %31 {strides = array<i32>} : memref<256x128xf32, #tpu.memory_space<vmem>>, vector<256x128xf32>,
    } else {
    }
    %c0 = arith.constant 0 : index
    %c0_1 = arith.constant 0 : index
    %3 = vector.load %arg2[%c0, %c0_1] : memref<256x256xbf16, #tpu.memory_space<vmem>>, vector<256x256xbf16>
    %c0_2 = arith.constant 0 : index
    %c0_3 = arith.constant 0 : index
    %4 = vector.load %arg3[%c0_2, %c0_3] : memref<256x512xbf16, #tpu.memory_space<vmem>>, vector<256x512xbf16>
    %cst = arith.constant dense<0.000000e+00> : vector<256x512xf32>
    %5 = tpu.matmul %3, %4, %cst {dimension_numbers = #tpu.dot_dimension_numbers<[1], [0], [0], [1], [0, 0, 1, 1], [], []>} : vector<256x256xbf16>, vector<256x512xbf16>, vector<256x512xf32> -> vector<256x512xf32>
    %c0_4 = arith.constant 0 : index
    %c0_5 = arith.constant 0 : index
    %6 = vector.load %arg4[%c0_4, %c0_5] : memref<1x512xf32, #tpu.memory_space<vmem>>, vector<1x512xf32>
    %7 = vector.broadcast %6 : vector<1x512xf32> to vector<256x512xf32>
    %8 = arith.addf %5, %7 : vector<256x512xf32>
    %cst_6 = arith.constant 5.000000e-01 : f32
    %9 = vector.broadcast %cst_6 : f32 to vector<256x512xf32>
    %10 = arith.mulf %9, %8 : vector<256x512xf32>
    %cst_7 = arith.constant 4.471500e-02 : f32
    %11 = vector.broadcast %cst_7 : f32 to vector<256x512xf32>
    %12 = arith.mulf %11, %8 : vector<256x512xf32>
    %13 = arith.mulf %12, %8 : vector<256x512xf32>
    %14 = arith.mulf %13, %8 : vector<256x512xf32>
    %15 = arith.addf %8, %14 : vector<256x512xf32>
    %cst_8 = arith.constant 0.797884583 : f32
    %16 = vector.broadcast %cst_8 : f32 to vector<256x512xf32>
    %17 = arith.mulf %16, %15 : vector<256x512xf32>
    %18 = math.tanh %17 : vector<256x512xf32>
    %cst_9 = arith.constant 1.000000e+00 : f32
    %19 = vector.broadcast %cst_9 : f32 to vector<256x512xf32>
    %20 = arith.addf %19, %18 : vector<256x512xf32>
    %21 = arith.mulf %10, %20 : vector<256x512xf32>
    %22 = arith.truncf %21 : vector<256x512xf32> to vector<256x512xbf16>
    %c0_10 = arith.constant 0 : index
    %c0_11 = arith.constant 0 : index
    %23 = vector.load %arg8[%c0_10, %c0_11] : memref<256x128xf32, #tpu.memory_space<vmem>>, vector<256x128xf32>
    %c0_12 = arith.constant 0 : index
    %c0_13 = arith.constant 0 : index
    %24 = vector.load %arg5[%c0_12, %c0_13] : memref<512x128xbf16, #tpu.memory_space<vmem>>, vector<512x128xbf16>
    %cst_14 = arith.constant dense<0.000000e+00> : vector<256x128xf32>
    %25 = tpu.matmul %22, %24, %cst_14 {dimension_numbers = #tpu.dot_dimension_numbers<[1], [0], [0], [1], [0, 0, 1, 1], [], []>} : vector<256x512xbf16>, vector<512x128xbf16>, vector<256x128xf32> -> vector<256x128xf32>
    %26 = arith.addf %23, %25 : vector<256x128xf32>
    %c0_15 = arith.constant 0 : index
    %c0_16 = arith.constant 0 : index
    %27 = vector.load %arg8[%c0_15, %c0_16] : memref<256x128xf32, #tpu.memory_space<vmem>>, vector<256x128xf32>
    tpu.vector_store %arg8[%c0_15, %c0_16], %26 {strides = array<i32>} : memref<256x128xf32, #tpu.memory_space<vmem>>, vector<256x128xf32>,
    %c0_i32_17 = arith.constant 0 : i32
    %28 = arith.cmpi eq, %arg1, %c0_i32_17 : i32
    %29 = arith.extui %28 : i1 to i32
    %c0_i32_18 = arith.constant 0 : i32
    %30 = arith.cmpi ne, %29, %c0_i32_18 : i32
    scf.if %30 {
      %c0_19 = arith.constant 0 : index
      %c0_20 = arith.constant 0 : index
      %31 = vector.load %arg8[%c0_19, %c0_20] : memref<256x128xf32, #tpu.memory_space<vmem>>, vector<256x128xf32>
      %c0_21 = arith.constant 0 : index
      %c0_22 = arith.constant 0 : index
      %32 = vector.load %arg6[%c0_21, %c0_22] : memref<1x128xf32, #tpu.memory_space<vmem>>, vector<1x128xf32>
      %33 = vector.broadcast %32 : vector<1x128xf32> to vector<256x128xf32>
      %34 = arith.addf %31, %33 : vector<256x128xf32>
      %35 = arith.truncf %34 : vector<256x128xf32> to vector<256x128xbf16>
      %c0_23 = arith.constant 0 : index
      %c0_24 = arith.constant 0 : index
      %36 = vector.load %arg7[%c0_23, %c0_24] : memref<256x128xbf16, #tpu.memory_space<vmem>>, vector<256x128xbf16>
      tpu.vector_store %arg7[%c0_23, %c0_24], %35 {strides = array<i32>} : memref<256x128xbf16, #tpu.memory_space<vmem>>, vector<256x128xbf16>,
    } else {
    }
    return
  }
  func.func @transform_0(%arg0: i32, %arg1: i32) -> (i32, i32) {
    %c0_i32 = arith.constant 0 : i32
    %c0_i32_0 = arith.constant 0 : i32
    return %arg0, %c0_i32 : i32, i32
  }
  func.func @transform_1(%arg0: i32, %arg1: i32) -> (i32, i32) {
    %c0_i32 = arith.constant 0 : i32
    %c0_i32_0 = arith.constant 0 : i32
    return %c0_i32, %arg1 : i32, i32
  }
  func.func @transform_2(%arg0: i32, %arg1: i32) -> (i32, i32) {
    %c0_i32 = arith.constant 0 : i32
    %c0_i32_0 = arith.constant 0 : i32
    return %c0_i32, %arg1 : i32, i32
  }
  func.func @transform_3(%arg0: i32, %arg1: i32) -> (i32, i32) {
    %c0_i32 = arith.constant 0 : i32
    %c0_i32_0 = arith.constant 0 : i32
    return %arg1, %c0_i32 : i32, i32
  }
  func.func @transform_4(%arg0: i32, %arg1: i32) -> (i32, i32) {
    %c0_i32 = arith.constant 0 : i32
    %c0_i32_0 = arith.constant 0 : i32
    %c0_i32_1 = arith.constant 0 : i32
    return %c0_i32, %c0_i32_0 : i32, i32
  }
  func.func @transform_5(%arg0: i32, %arg1: i32) -> (i32, i32) {
    %c0_i32 = arith.constant 0 : i32
    %c0_i32_0 = arith.constant 0 : i32
    return %arg0, %c0_i32 : i32, i32
  }
}

</mosaic_0001>

<bundles_post_ra>
// kernel: tpu_custom_call.1
= control target key start
LH: loop header
LB: loop body
LE: loop exit
PB: predicated region body
PF: predicated region fallthrough
CT: control target
= control target key end

     0   :  { %10 = vsyncpa [#allocation4], 0  ;;  %s6513_s0 = inlined_call_operand.hbm [shape: bf16[256,256], index: 0, kind: input, shape index: {}]   ;;  %s6514_s1 = inlined_call_operand.hbm [shape: bf16[256,512], index: 1, kind: input, shape index: {}]   ;;  %s6515_s2 = inlined_call_operand.hbm [shape: f32[1,512], index: 2, kind: input, shape index: {}]   ;;  %s6516_s3 = inlined_call_operand.hbm [shape: bf16[512,128], index: 3, kind: input, shape index: {}]   ;;  %s6517_s4 = inlined_call_operand.vmem [shape: f32[1,128], index: 4, kind: input, shape index: {}]   ;;  %s6518_s5 = inlined_call_operand.hbm [shape: bf16[256,128], index: 5, kind: output, shape index: {}]  }
   0x1   :  { %11 = vsyncpa [#allocation7], 0 }
   0x2   :  { %12 = vsyncpa [#allocation10], 0  ;;  %s31_s20 = sshll.u32 %s6514_s1, 4  ;;  %s32_s20 = int_to_ptr.hbm [resolvable:$true] %s31_s20 }
   0x3   :  { %13 = vsyncpa [#allocation5], 0  ;;  %s4628_s21 = smov [#allocation6]   ;;  %s18_s25 = sshll.u32 %s6513_s0, 4  ;;  %s19_s25 = int_to_ptr.hbm [resolvable:$true] %s18_s25 }
   0x4   :  { %s33_s22 = sshll.u32 %s4628_s21, 4  ;;  %s4629_s26 = smov 256   ;;  %s34_s22 = int_to_ptr.vmem [resolvable:$true] %s33_s22 }
   0x5   :  { %s4630_s27 = smov 16   ;;  %s4631_s28 = smov [#allocation3]  }
   0x6   :  { %39 = dma.hbm_to_vmem [thread:$0]  %s32_s20, 8192, %s34_s22, [#allocation7], %s4629_s26, %s4629_s26, %s4630_s27  }
   0x7   :  { %s20_s29 = sshll.u32 %s4631_s28, 4  ;;  %s4632_s30 = smov 128   ;;  %s21_s29 = int_to_ptr.vmem [resolvable:$true] %s20_s29 }
   0x8   :  { %s4633_s6 = smov 8   ;;  %s45_s8 = sshll.u32 %s6515_s2, 4  ;;  %s46_s8 = int_to_ptr.hbm [resolvable:$true] %s45_s8 }
   0x9   :  { %26 = dma.hbm_to_vmem [thread:$0]  %s19_s25, 4096, %s21_s29, [#allocation4], %s4632_s30, %s4632_s30, %s4633_s6  }
   0xa   :  { %s4634_s9 = smov [#allocation8]   ;;  %s55_s12 = sshll.u32 %s6516_s3, 4  ;;  %s56_s12 = int_to_ptr.hbm [resolvable:$true] %s55_s12 }
   0xb   :  { %s47_s10 = sshll.u32 %s4634_s9, 4  ;;  %s4635_s13 = smov [#allocation9]   ;;  %s48_s10 = int_to_ptr.vmem [resolvable:$true] %s47_s10 }
   0xc   :  { %50 = dma.hbm_to_vmem [thread:$0]  %s46_s8, 64, %s48_s10, [#allocation7]  }
   0xd   :  { %s57_s14 = sshll.u32 %s4635_s13, 4  ;;  %s4636_s15 = smov 64   ;;  %s58_s14 = int_to_ptr.vmem [resolvable:$true] %s57_s14 }
   0xe   :  { %s4637_s16 = smov 4  }
   0xf   :  { %63 = dma.hbm_to_vmem [thread:$0]  %s56_s12, 4096, %s58_s14, [#allocation10], %s4636_s15, %s4636_s15, %s4637_s16  }
  0x10   :  { %4620 = dma.done.wait [#allocation4], 4096  }
  0x11   :  { %4621 = vsyncadd [#allocation4], 4294963200 }
  0x12   :  { %4622 = dma.done.wait [#allocation7], 8256  }
  0x13   :  { %4623 = vsyncadd [#allocation7], 4294959040 }
  0x14   :  { %4624 = dma.done.wait [#allocation10], 4096  }
  0x15   :  { %4625 = vsyncadd [#allocation10], 4294963200  ;;  %v3738_v0 = vld [vmem:[#allocation6 + $0xe0] sm:$0xf]  ;;  %v4070_v1 = vld [vmem:[#allocation6 + $0xec] sm:$0xf0] }
  0x16   :  { %v3866_v2 = vld [vmem:[#allocation6 + $0x1e0] sm:$0xf]  ;;  %v3739_v3 = vor.u32 %v4070_v1, %v3738_v0  ;;  %v4102_v4 = vld [vmem:[#allocation6 + $0x1ec] sm:$0xf0]  ;;  %v4068_v5 = vld [vmem:[#allocation6 + $0xe4] sm:$0xf] }
  0x17   :  { %v3740_v6 = vld [vmem:[#allocation6 + $0xf0] sm:$0xf0]  ;;  %v3867_v7 = vor.u32 %v4102_v4, %v3866_v2  ;;  %v4100_v9 = vld [vmem:[#allocation6 + $0x1e4] sm:$0xf]  ;;  %v3722_v11 = vld [vmem:[#allocation6 + $0xc0] sm:$0xf] }
  0x18   :  { %v3743_v8 = vor.u32 %v4068_v5, %v3740_v6  ;;  %v3868_v10 = vld [vmem:[#allocation6 + $0x1f0] sm:$0xf0]  ;;  %704 = vmatpush.bf16.msra.mxu0 %v3739_v3  ;;  %v4066_v13 = vld [vmem:[#allocation6 + $0xcc] sm:$0xf0]  ;;  %v3850_v14 = vld [vmem:[#allocation6 + $0x1c0] sm:$0xf] }
  0x19   :  { %v3871_v12 = vor.u32 %v4100_v9, %v3868_v10  ;;  %v4098_v15 = vld [vmem:[#allocation6 + $0x1cc] sm:$0xf0]  ;;  %793 = vmatpush.bf16.msra.mxu1 %v3867_v7  ;;  %v3723_v16 = vor.u32 %v4066_v13, %v3722_v11  ;;  %v4064_v18 = vld [vmem:[#allocation6 + $0xc4] sm:$0xf]  ;;  %v3724_v19 = vld [vmem:[#allocation6 + $0xd0] sm:$0xf0] }
  0x1a   :  { %882 = vmatpush.bf16.msra.mxu2 %v3743_v8  ;;  %v3851_v17 = vor.u32 %v4098_v15, %v3850_v14  ;;  %v4096_v20 = vld [vmem:[#allocation6 + $0x1c4] sm:$0xf]  ;;  %v3727_v21 = vor.u32 %v4064_v18, %v3724_v19  ;;  %v3852_v22 = vld [vmem:[#allocation6 + $0x1d0] sm:$0xf0]  ;;  %v3706_v23 = vld [vmem:[#allocation6 + $0xa0] sm:$0xf] }
  0x1b   :  { %971 = vmatpush.bf16.msra.mxu3 %v3871_v12  ;;  %v4062_v24 = vld [vmem:[#allocation6 + $0xac] sm:$0xf0]  ;;  %v3855_v25 = vor.u32 %v4096_v20, %v3852_v22  ;;  %v3834_v26 = vld [vmem:[#allocation6 + $0x1a0] sm:$0xf]  ;;  %v4060_v28 = vld [vmem:[#allocation6 + $0xa4] sm:$0xf] }
  0x1c   :  { %v4094_v27 = vld [vmem:[#allocation6 + $0x1ac] sm:$0xf0]  ;;  %705 = vmatpush.bf16.msra.mxu0 %v3723_v16  ;;  %v3707_v29 = vor.u32 %v4062_v24, %v3706_v23  ;;  %v3708_v30 = vld [vmem:[#allocation6 + $0xb0] sm:$0xf0]  ;;  %v4092_v31 = vld [vmem:[#allocation6 + $0x1a4] sm:$0xf] }
  0x1d   :  { %v3836_v32 = vld [vmem:[#allocation6 + $0x1b0] sm:$0xf0]  ;;  %794 = vmatpush.bf16.msra.mxu1 %v3851_v17  ;;  %v3835_v33 = vor.u32 %v4094_v27, %v3834_v26  ;;  %v3711_v34 = vor.u32 %v4060_v28, %v3708_v30  ;;  %v3690_v35 = vld [vmem:[#allocation6 + $0x80] sm:$0xf]  ;;  %v4058_v36 = vld [vmem:[#allocation6 + $0x8c] sm:$0xf0] }
  0x1e   :  { %883 = vmatpush.bf16.msra.mxu2 %v3727_v21  ;;  %v3818_v37 = vld [vmem:[#allocation6 + $0x180] sm:$0xf]  ;;  %v3839_v38 = vor.u32 %v4092_v31, %v3836_v32  ;;  %v4090_v39 = vld [vmem:[#allocation6 + $0x18c] sm:$0xf0]  ;;  %v4056_v40 = vld [vmem:[#allocation6 + $0x84] sm:$0xf]  ;;  %v3691_v44 = vor.u32 %v4058_v36, %v3690_v35 }
  0x1f   :  { %972 = vmatpush.bf16.msra.mxu3 %v3855_v25  ;;  %v3692_v41 = vld [vmem:[#allocation6 + $0x90] sm:$0xf0]  ;;  %v4088_v42 = vld [vmem:[#allocation6 + $0x184] sm:$0xf]  ;;  %v3819_v45 = vor.u32 %v4090_v39, %v3818_v37  ;;  %v3674_v47 = vld [vmem:[#allocation6 + $0x60] sm:$0xf] }
  0x20   :  { %v3820_v43 = vld [vmem:[#allocation6 + $0x190] sm:$0xf0]  ;;  %706 = vmatpush.bf16.msra.mxu0 %v3707_v29  ;;  %v3695_v46 = vor.u32 %v4056_v40, %v3692_v41  ;;  %v4054_v48 = vld [vmem:[#allocation6 + $0x6c] sm:$0xf0]  ;;  %v3802_v49 = vld [vmem:[#allocation6 + $0x160] sm:$0xf] }
  0x21   :  { %795 = vmatpush.bf16.msra.mxu1 %v3835_v33  ;;  %v3823_v50 = vor.u32 %v4088_v42, %v3820_v43  ;;  %v4086_v51 = vld [vmem:[#allocation6 + $0x16c] sm:$0xf0]  ;;  %v4052_v52 = vld [vmem:[#allocation6 + $0x64] sm:$0xf]  ;;  %v3676_v53 = vld [vmem:[#allocation6 + $0x70] sm:$0xf0]  ;;  %v3675_v56 = vor.u32 %v4054_v48, %v3674_v47 }
  0x22   :  { %884 = vmatpush.bf16.msra.mxu2 %v3711_v34  ;;  %v4084_v54 = vld [vmem:[#allocation6 + $0x164] sm:$0xf]  ;;  %v3804_v55 = vld [vmem:[#allocation6 + $0x170] sm:$0xf0]  ;;  %v3803_v57 = vor.u32 %v4086_v51, %v3802_v49  ;;  %v3679_v58 = vor.u32 %v4052_v52, %v3676_v53  ;;  %v3658_v59 = vld [vmem:[#allocation6 + $0x40] sm:$0xf] }
  0x23   :  { %973 = vmatpush.bf16.msra.mxu3 %v3839_v38  ;;  %v4050_v60 = vld [vmem:[#allocation6 + $0x4c] sm:$0xf0]  ;;  %v3786_v61 = vld [vmem:[#allocation6 + $0x140] sm:$0xf]  ;;  %v3807_v62 = vor.u32 %v4084_v54, %v3804_v55  ;;  %v4048_v0 = vld [vmem:[#allocation6 + $0x44] sm:$0xf] }
  0x24   :  { %707 = vmatpush.bf16.msra.mxu0 %v3691_v44  ;;  %v4082_v63 = vld [vmem:[#allocation6 + $0x14c] sm:$0xf0]  ;;  %v3660_v1 = vld [vmem:[#allocation6 + $0x50] sm:$0xf0]  ;;  %v4080_v2 = vld [vmem:[#allocation6 + $0x144] sm:$0xf]  ;;  %v3659_v4 = vor.u32 %v4050_v60, %v3658_v59 }
  0x25   :  { %796 = vmatpush.bf16.msra.mxu1 %v3819_v45  ;;  %v3788_v3 = vld [vmem:[#allocation6 + $0x150] sm:$0xf0]  ;;  %v3787_v5 = vor.u32 %v4082_v63, %v3786_v61  ;;  %v3663_v6 = vor.u32 %v4048_v0, %v3660_v1  ;;  %v3642_v7 = vld [vmem:[#allocation6 + $0x20] sm:$0xf]  ;;  %v4046_v8 = vld [vmem:[#allocation6 + $0x2c] sm:$0xf0] }
  0x26   :  { %885 = vmatpush.bf16.msra.mxu2 %v3695_v46  ;;  %v3770_v9 = vld [vmem:[#allocation6 + $0x120] sm:$0xf]  ;;  %v3791_v10 = vor.u32 %v4080_v2, %v3788_v3  ;;  %v4078_v11 = vld [vmem:[#allocation6 + $0x12c] sm:$0xf0]  ;;  %v4044_v12 = vld [vmem:[#allocation6 + $0x24] sm:$0xf]  ;;  %v3643_v16 = vor.u32 %v4046_v8, %v3642_v7 }
  0x27   :  { %974 = vmatpush.bf16.msra.mxu3 %v3823_v50  ;;  %v3644_v13 = vld [vmem:[#allocation6 + $0x30] sm:$0xf0]  ;;  %v4076_v14 = vld [vmem:[#allocation6 + $0x124] sm:$0xf]  ;;  %v3626_v17 = vld [vmem:[#allocation6] sm:$0xf]  ;;  %v3771_v20 = vor.u32 %v4078_v11, %v3770_v9 }
  0x28   :  { %708 = vmatpush.bf16.msra.mxu0 %v3675_v56  ;;  %v3772_v15 = vld [vmem:[#allocation6 + $0x130] sm:$0xf0]  ;;  %v4042_v18 = vld [vmem:[#allocation6 + $0xc] sm:$0xf0]  ;;  %v3754_v19 = vld [vmem:[#allocation6 + $0x100] sm:$0xf]  ;;  %v3647_v21 = vor.u32 %v4044_v12, %v3644_v13 }
  0x29   :  { %797 = vmatpush.bf16.msra.mxu1 %v3803_v57  ;;  %v4074_v22 = vld [vmem:[#allocation6 + $0x10c] sm:$0xf0]  ;;  %v4040_v23 = vld [vmem:[#allocation6 + $0x4] sm:$0xf]  ;;  %v3628_v24 = vld [vmem:[#allocation6 + $0x10] sm:$0xf0]  ;;  %v3775_v25 = vor.u32 %v4076_v14, %v3772_v15  ;;  %v3627_v32 = vor.u32 %v4042_v18, %v3626_v17 }
  0x2a   :  { %886 = vmatpush.bf16.msra.mxu2 %v3679_v58  ;;  %v4072_v26 = vld [vmem:[#allocation6 + $0x104] sm:$0xf]  ;;  %v3756_v27 = vld [vmem:[#allocation6 + $0x110] sm:$0xf0]  ;;  %v3498_v28 = vld [vmem:[#allocation3] sm:$0xf]  ;;  %v3755_v35 = vor.u32 %v4074_v22, %v3754_v19  ;;  %v3631_v36 = vor.u32 %v4040_v23, %v3628_v24 }
  0x2b   :  { %975 = vmatpush.bf16.msra.mxu3 %v3807_v62  ;;  %v4009_v29 = vld [vmem:[#allocation3 + $0x4] sm:$0xf0]  ;;  %v4069_v30 = vld [vmem:[#allocation6 + $0xec] sm:$0xf]  ;;  %v3748_v31 = vld [vmem:[#allocation6 + $0xf8] sm:$0xf0]  ;;  %v3759_v39 = vor.u32 %v4072_v26, %v3756_v27 }
  0x2c   :  { %709 = vmatpush.bf16.msra.mxu0 %v3659_v4  ;;  %v4101_v33 = vld [vmem:[#allocation6 + $0x1ec] sm:$0xf]  ;;  %v3876_v34 = vld [vmem:[#allocation6 + $0x1f8] sm:$0xf0]  ;;  %v4008_v37 = vld [vmem:[#allocation3 + $0x4] sm:$0xf]  ;;  %v3751_v40 = vor.u32 %v4069_v30, %v3748_v31  ;;  %v4684_v43 = vor.u32 %v4009_v29, %v3498_v28 }
  0x2d   :  { %798 = vmatpush.bf16.msra.mxu1 %v3787_v5  ;;  %v3500_v38 = vld [vmem:[#allocation3 + $0x8] sm:$0xf0]  ;;  %v3746_v41 = vld [vmem:[#allocation6 + $0xe8] sm:$0xf]  ;;  %v4071_v42 = vld [vmem:[#allocation6 + $0xf4] sm:$0xf0]  ;;  %v3879_v44 = vor.u32 %v4101_v33, %v3876_v34 }
  0x2e   :  { %887 = vmatpush.bf16.msra.mxu2 %v3663_v6  ;;  %v3874_v45 = vld [vmem:[#allocation6 + $0x1e8] sm:$0xf]  ;;  %v4103_v46 = vld [vmem:[#allocation6 + $0x1f4] sm:$0xf0]  ;;  %v4686_v47 = vor.u32 %v4008_v37, %v3500_v38  ;;  %v3747_v48 = vor.u32 %v4071_v42, %v3746_v41  ;;  %v4065_v50 = vld [vmem:[#allocation6 + $0xcc] sm:$0xf] }
  0x2f   :  { %976 = vmatpush.bf16.msra.mxu3 %v3791_v10  ;;  %v3875_v49 = vor.u32 %v4103_v46, %v3874_v45  ;;  %v3732_v51 = vld [vmem:[#allocation6 + $0xd8] sm:$0xf0]  ;;  %v4097_v52 = vld [vmem:[#allocation6 + $0x1cc] sm:$0xf]  ;;  %v3730_v55 = vld [vmem:[#allocation6 + $0xc8] sm:$0xf] }
  0x30   :  { %710 = vmatpush.bf16.msra.mxu0 %v3643_v16  ;;  %v3735_v53 = vor.u32 %v4065_v50, %v3732_v51  ;;  %v3860_v54 = vld [vmem:[#allocation6 + $0x1d8] sm:$0xf0]  ;;  %v4067_v56 = vld [vmem:[#allocation6 + $0xd4] sm:$0xf0]  ;;  %v3858_v59 = vld [vmem:[#allocation6 + $0x1c8] sm:$0xf] }
  0x31   :  { %799 = vmatpush.bf16.msra.mxu1 %v3771_v20  ;;  %v3863_v57 = vor.u32 %v4097_v52, %v3860_v54  ;;  %v3731_v58 = vor.u32 %v4067_v56, %v3730_v55  ;;  %v4099_v60 = vld [vmem:[#allocation6 + $0x1d4] sm:$0xf0]  ;;  %v3506_v62 = vld [vmem:[#allocation3 + $0x10] sm:$0xf]  ;;  %v4010_v0 = vld [vmem:[#allocation3 + $0x14] sm:$0xf] }
  0x32   :  { %888 = vmatpush.bf16.msra.mxu2 %v3647_v21  ;;  %v3859_v61 = vor.u32 %v4099_v60, %v3858_v59  ;;  %v4011_v63 = vld [vmem:[#allocation3 + $0x14] sm:$0xf0]  ;;  %v3508_v1 = vld [vmem:[#allocation3 + $0x18] sm:$0xf0]  ;;  %v3514_v4 = vld [vmem:[#allocation3 + $0x20] sm:$0xf] }
  0x33   :  { %977 = vmatpush.bf16.msra.mxu3 %v3775_v25  ;;  %v4692_v2 = vor.u32 %v4011_v63, %v3506_v62  ;;  %v4694_v3 = vor.u32 %v4010_v0, %v3508_v1  ;;  %v4013_v5 = vld [vmem:[#allocation3 + $0x24] sm:$0xf0]  ;;  %v4012_v6 = vld [vmem:[#allocation3 + $0x24] sm:$0xf]  ;;  %v3516_v7 = vld [vmem:[#allocation3 + $0x28] sm:$0xf0] }
  0x34   :  { %711 = vmatpush.bf16.msra.mxu0 %v3627_v32  ;;  %v4700_v8 = vor.u32 %v4013_v5, %v3514_v4  ;;  %v4702_v9 = vor.u32 %v4012_v6, %v3516_v7  ;;  %v4061_v10 = vld [vmem:[#allocation6 + $0xac] sm:$0xf]  ;;  %v3716_v11 = vld [vmem:[#allocation6 + $0xb8] sm:$0xf0]  ;;  %v3714_v15 = vld [vmem:[#allocation6 + $0xa8] sm:$0xf] }
  0x35   :  { %800 = vmatpush.bf16.msra.mxu1 %v3755_v35  ;;  %v4093_v12 = vld [vmem:[#allocation6 + $0x1ac] sm:$0xf]  ;;  %v3719_v13 = vor.u32 %v4061_v10, %v3716_v11  ;;  %v3844_v14 = vld [vmem:[#allocation6 + $0x1b8] sm:$0xf0]  ;;  %v4063_v16 = vld [vmem:[#allocation6 + $0xb4] sm:$0xf0] }
  0x36   :  { %889 = vmatpush.bf16.msra.mxu2 %v3631_v36  ;;  %v3847_v17 = vor.u32 %v4093_v12, %v3844_v14  ;;  %v3715_v18 = vor.u32 %v4063_v16, %v3714_v15  ;;  %v3842_v19 = vld [vmem:[#allocation6 + $0x1a8] sm:$0xf]  ;;  %v4095_v20 = vld [vmem:[#allocation6 + $0x1b4] sm:$0xf0]  ;;  %v3522_v22 = vld [vmem:[#allocation3 + $0x30] sm:$0xf] }
  0x37   :  { %978 = vmatpush.bf16.msra.mxu3 %v3759_v39  ;;  %712 = vmatmul.bf16.vlgmr.msra.gmra.mxu0 %v4684_v43  ;;  %v3843_v21 = vor.u32 %v4095_v20, %v3842_v19  ;;  %v4015_v23 = vld [vmem:[#allocation3 + $0x34] sm:$0xf0]  ;;  %v4014_v24 = vld [vmem:[#allocation3 + $0x34] sm:$0xf]  ;;  %v3524_v25 = vld [vmem:[#allocation3 + $0x38] sm:$0xf0] }
  0x38   :  { %801 = vmatmul.bf16.vlgmr.msra.gmra.mxu1 %v4686_v47  ;;  %1060 = vmatpush.bf16.msrb.mxu0 %v3747_v48  ;;  %v4708_v26 = vor.u32 %v4015_v23, %v3522_v22  ;;  %v4710_v27 = vor.u32 %v4014_v24, %v3524_v25  ;;  %v3530_v28 = vld [vmem:[#allocation3 + $0x40] sm:$0xf]  ;;  %v4017_v29 = vld [vmem:[#allocation3 + $0x44] sm:$0xf0]  ;;  %v4016_v30 = vld [vmem:[#allocation3 + $0x44] sm:$0xf] }
  0x39   :  { %890 = vmatmul.bf16.vlgmr.msra.gmra.mxu2 %v4684_v43  ;;  %1149 = vmatpush.bf16.msrb.mxu1 %v3875_v49  ;;  %v3532_v31 = vld [vmem:[#allocation3 + $0x48] sm:$0xf0]  ;;  %v4716_v32 = vor.u32 %v4017_v29, %v3530_v28  ;;  %v3700_v35 = vld [vmem:[#allocation6 + $0x98] sm:$0xf0]  ;;  %v3698_v39 = vld [vmem:[#allocation6 + $0x88] sm:$0xf] }
  0x3a   :  { %1238 = vmatpush.bf16.msrb.mxu2 %v3751_v40  ;;  %979 = vmatmul.bf16.vlgmr.msra.gmra.mxu3 %v4686_v47  ;;  %v4718_v33 = vor.u32 %v4016_v30, %v3532_v31  ;;  %v4057_v34 = vld [vmem:[#allocation6 + $0x8c] sm:$0xf]  ;;  %v3828_v38 = vld [vmem:[#allocation6 + $0x198] sm:$0xf0]  ;;  %v4059_v40 = vld [vmem:[#allocation6 + $0x94] sm:$0xf0] }
  0x3b   :  { %1327 = vmatpush.bf16.msrb.mxu3 %v3879_v44  ;;  %v4089_v36 = vld [vmem:[#allocation6 + $0x18c] sm:$0xf]  ;;  %v3703_v37 = vor.u32 %v4057_v34, %v3700_v35  ;;  %v3699_v42 = vor.u32 %v4059_v40, %v3698_v39  ;;  %v3826_v44 = vld [vmem:[#allocation6 + $0x188] sm:$0xf]  ;;  %v4091_v45 = vld [vmem:[#allocation6 + $0x194] sm:$0xf0] }
  0x3c   :  { %1061 = vmatpush.bf16.msrb.mxu0 %v3731_v58  ;;  %v3831_v41 = vor.u32 %v4089_v36, %v3828_v38  ;;  %v3827_v46 = vor.u32 %v4091_v45, %v3826_v44  ;;  %v3538_v48 = vld [vmem:[#allocation3 + $0x50] sm:$0xf]  ;;  %v4019_v49 = vld [vmem:[#allocation3 + $0x54] sm:$0xf0]  ;;  %v4018_v50 = vld [vmem:[#allocation3 + $0x54] sm:$0xf] }
  0x3d   :  { %1150 = vmatpush.bf16.msrb.mxu1 %v3859_v61  ;;  %v3540_v51 = vld [vmem:[#allocation3 + $0x58] sm:$0xf0]  ;;  %v4724_v52 = vor.u32 %v4019_v49, %v3538_v48  ;;  %v3546_v54 = vld [vmem:[#allocation3 + $0x60] sm:$0xf]  ;;  %v4021_v55 = vld [vmem:[#allocation3 + $0x64] sm:$0xf0] }
  0x3e   :  { %1239 = vmatpush.bf16.msrb.mxu2 %v3735_v53  ;;  %v4726_v53 = vor.u32 %v4018_v50, %v3540_v51  ;;  %v4020_v56 = vld [vmem:[#allocation3 + $0x64] sm:$0xf]  ;;  %v4732_v58 = vor.u32 %v4021_v55, %v3546_v54  ;;  %v3554_v60 = vld [vmem:[#allocation3 + $0x70] sm:$0xf]  ;;  %v4023_v61 = vld [vmem:[#allocation3 + $0x74] sm:$0xf0] }
  0x3f   :  { %1328 = vmatpush.bf16.msrb.mxu3 %v3863_v57  ;;  %v3548_v57 = vld [vmem:[#allocation3 + $0x68] sm:$0xf0]  ;;  %v4022_v62 = vld [vmem:[#allocation3 + $0x74] sm:$0xf]  ;;  %v3556_v63 = vld [vmem:[#allocation3 + $0x78] sm:$0xf0]  ;;  %v4740_v0 = vor.u32 %v4023_v61, %v3554_v60 }
  0x40   :  { %1062 = vmatpush.bf16.msrb.mxu0 %v3715_v18  ;;  %v4734_v59 = vor.u32 %v4020_v56, %v3548_v57  ;;  %v4742_v1 = vor.u32 %v4022_v62, %v3556_v63  ;;  %v4053_v4 = vld [vmem:[#allocation6 + $0x6c] sm:$0xf]  ;;  %v3684_v5 = vld [vmem:[#allocation6 + $0x78] sm:$0xf0]  ;;  %v214_v11 = vld [vmem:[#allocation8] sm:$0xf] }
  0x41   :  { %1151 = vmatpush.bf16.msrb.mxu1 %v3843_v21  ;;  %v4085_v6 = vld [vmem:[#allocation6 + $0x16c] sm:$0xf]  ;;  %v3687_v7 = vor.u32 %v4053_v4, %v3684_v5  ;;  %v3812_v10 = vld [vmem:[#allocation6 + $0x178] sm:$0xf0]  ;;  %v3562_v14 = vld [vmem:[#allocation3 + $0x80] sm:$0xf] }
  0x42   :  { %1240 = vmatpush.bf16.msrb.mxu2 %v3719_v13  ;;  %v3815_v12 = vor.u32 %v4085_v6, %v3812_v10  ;;  %v4748_v13 = vperm.slane %v214_v11, 0  ;;  %v4025_v15 = vld [vmem:[#allocation3 + $0x84] sm:$0xf0]  ;;  %v4024_v16 = vld [vmem:[#allocation3 + $0x84] sm:$0xf]  ;;  %v4760_v34 = vperm.slane %v214_v11, 1 }
  0x43   :  { %1329 = vmatpush.bf16.msrb.mxu3 %v3847_v17  ;;  %v3564_v17 = vld [vmem:[#allocation3 + $0x88] sm:$0xf0]  ;;  %v3682_v18 = vld [vmem:[#allocation6 + $0x68] sm:$0xf]  ;;  %v4055_v19 = vld [vmem:[#allocation6 + $0x74] sm:$0xf0]  ;;  %v4750_v23 = vor.u32 %v4025_v15, %v3562_v14 }
  0x44   :  { %1063 = vmatpush.bf16.msrb.mxu0 %v3699_v42  ;;  %v3810_v20 = vld [vmem:[#allocation6 + $0x168] sm:$0xf]  ;;  %v3683_v21 = vor.u32 %v4055_v19, %v3682_v18  ;;  %v4087_v22 = vld [vmem:[#allocation6 + $0x174] sm:$0xf0]  ;;  %v4752_v28 = vor.u32 %v4024_v16, %v3564_v17  ;;  %v4049_v38 = vld [vmem:[#allocation6 + $0x4c] sm:$0xf] }
  0x45   :  { %1152 = vmatpush.bf16.msrb.mxu1 %v3827_v46  ;;  %v3811_v24 = vor.u32 %v4087_v22, %v3810_v20  ;;  %v3668_v39 = vld [vmem:[#allocation6 + $0x58] sm:$0xf0]  ;;  %v4081_v40 = vld [vmem:[#allocation6 + $0x14c] sm:$0xf]  ;;  %v3570_v57 = vld [vmem:[#allocation3 + $0x90] sm:$0xf] }
  0x46   :  { %1241 = vmatpush.bf16.msrb.mxu2 %v3703_v37  ;;  %v3671_v45 = vor.u32 %v4049_v38, %v3668_v39  ;;  %v3796_v46 = vld [vmem:[#allocation6 + $0x158] sm:$0xf0]  ;;  %v4027_v61 = vld [vmem:[#allocation3 + $0x94] sm:$0xf0]  ;;  %v4026_v62 = vld [vmem:[#allocation3 + $0x94] sm:$0xf] }
  0x47   :  { %717 = vmatmul.bf16.gmra.mxu0 %v4692_v2  ;;  %1330 = vmatpush.bf16.msrb.mxu3 %v3831_v41  ;;  %v3799_v51 = vor.u32 %v4081_v40, %v3796_v46  ;;  %v3572_v5 = vld [vmem:[#allocation3 + $0x98] sm:$0xf0]  ;;  %v4051_v10 = vld [vmem:[#allocation6 + $0x54] sm:$0xf0]  ;;  %v3794_v11 = vld [vmem:[#allocation6 + $0x148] sm:$0xf]  ;;  %v4777_v15 = vor.u32 %v4027_v61, %v3570_v57 }
  0x48   :  { %806 = vmatmul.bf16.gmra.mxu1 %v4694_v3  ;;  %1064 = vmatpush.bf16.msrb.mxu0 %v3683_v21  ;;  %v4083_v17 = vld [vmem:[#allocation6 + $0x154] sm:$0xf0]  ;;  %v4781_v22 = vor.u32 %v4026_v62, %v3572_v5  ;;  %s3481_s20 = sshll.u32 %s6518_s5, 4  ;;  %s3482_s20 = int_to_ptr.hbm [resolvable:$true] %s3481_s20 }
  0x49   :  { %895 = vmatmul.bf16.gmra.mxu2 %v4692_v2  ;;  %1153 = vmatpush.bf16.msrb.mxu1 %v3811_v24  ;;  %v3795_v24 = vor.u32 %v4083_v17, %v3794_v11 }
  0x4a   :  { %984 = vmatmul.bf16.gmra.mxu3 %v4694_v3  ;;  %1242 = vmatpush.bf16.msrb.mxu2 %v3687_v7  ;;  %v3666_v7 = vld [vmem:[#allocation6 + $0x48] sm:$0xf] }
  0x4b   :  { %1331 = vmatpush.bf16.msrb.mxu3 %v3815_v12  ;;  %v3667_v16 = vor.u32 %v4051_v10, %v3666_v7  ;;  %v4029_v7 = vld [vmem:[#allocation3 + $0xa4] sm:$0xf0]  ;;  %v4028_v10 = vld [vmem:[#allocation3 + $0xa4] sm:$0xf] }
  0x4d   :  { %1065 = vmatpush.bf16.msrb.mxu0 %v3667_v16  ;;  %1154 = vmatpush.bf16.msrb.mxu1 %v3795_v24 }
  0x4e   :  { %1243 = vmatpush.bf16.msrb.mxu2 %v3671_v45 }
  0x4f   :  { %1332 = vmatpush.bf16.msrb.mxu3 %v3799_v51 }
  0x57   :  { %722 = vmatmul.bf16.gmra.mxu0 %v4700_v8 }
  0x58   :  { %811 = vmatmul.bf16.gmra.mxu1 %v4702_v9 }
  0x59   :  { %900 = vmatmul.bf16.gmra.mxu2 %v4700_v8 }
  0x5a   :  { %989 = vmatmul.bf16.gmra.mxu3 %v4702_v9 }
  0x67   :  { %727 = vmatmul.bf16.gmra.mxu0 %v4708_v26 }
  0x68   :  { %816 = vmatmul.bf16.gmra.mxu1 %v4710_v27 }
  0x69   :  { %905 = vmatmul.bf16.gmra.mxu2 %v4708_v26 }
  0x6a   :  { %994 = vmatmul.bf16.gmra.mxu3 %v4710_v27 }
  0x77   :  { %732 = vmatmul.bf16.gmra.mxu0 %v4716_v32 }
  0x78   :  { %821 = vmatmul.bf16.gmra.mxu1 %v4718_v33 }
  0x79   :  { %910 = vmatmul.bf16.gmra.mxu2 %v4716_v32 }
  0x7a   :  { %999 = vmatmul.bf16.gmra.mxu3 %v4718_v33 }
  0x87   :  { %737 = vmatmul.bf16.gmra.mxu0 %v4724_v52 }
  0x88   :  { %826 = vmatmul.bf16.gmra.mxu1 %v4726_v53 }
  0x89   :  { %915 = vmatmul.bf16.gmra.mxu2 %v4724_v52 }
  0x8a   :  { %1004 = vmatmul.bf16.gmra.mxu3 %v4726_v53 }
  0x97   :  { %742 = vmatmul.bf16.gmra.mxu0 %v4732_v58 }
  0x98   :  { %831 = vmatmul.bf16.gmra.mxu1 %v4734_v59 }
  0x99   :  { %920 = vmatmul.bf16.gmra.mxu2 %v4732_v58 }
  0x9a   :  { %1009 = vmatmul.bf16.gmra.mxu3 %v4734_v59 }
  0xa7   :  { %747 = vmatmul.bf16.gmra.mxu0 %v4740_v0 }
  0xa8   :  { %836 = vmatmul.bf16.gmra.mxu1 %v4742_v1 }
  0xa9   :  { %925 = vmatmul.bf16.gmra.mxu2 %v4740_v0 }
  0xaa   :  { %1014 = vmatmul.bf16.gmra.mxu3 %v4742_v1 }
  0xb4   :  { %v713_v25 = vpop.f32.mrf.mxu0 }
  0xb5   :  { %v714_v29 = vadd.f32 %v713_v25, %v4748_v13  ;;  %v802_v30 = vpop.f32.mrf.mxu1 }
  0xb7   :  { %v4755_v31 = vadd.f32 %v802_v30, %v714_v29  ;;  %752 = vmatmul.bf16.gmra.mxu0 %v4750_v23 }
  0xb8   :  { %841 = vmatmul.bf16.gmra.mxu1 %v4752_v28 }
  0xb9   :  { %930 = vmatmul.bf16.gmra.mxu2 %v4750_v23  ;;  %v1544_v35 = vmul.f32 0.044715, %v4755_v31 }
  0xba   :  { %1019 = vmatmul.bf16.gmra.mxu3 %v4752_v28 }
  0xbb   :  { %v1672_v36 = vmul.f32 %v1544_v35, %v4755_v31 }
  0xbc   :  { %v891_v37 = vpop.f32.mrf.mxu2  ;;  %v715_v44 = vpop.f32.mrf.mxu0 }
  0xbd   :  { %v892_v41 = vadd.f32 %v891_v37, %v4760_v34  ;;  %v980_v42 = vpop.f32.mrf.mxu3  ;;  %v1800_v48 = vmul.f32 %v1672_v36, %v4755_v31  ;;  %v716_v49 = vadd.f32 %v715_v44, %v4748_v13  ;;  %v804_v50 = vpop.f32.mrf.mxu1 }
  0xbf   :  { %v4768_v54 = vadd.f32 %v980_v42, %v892_v41  ;;  %v1928_v55 = vadd.f32 %v1800_v48, %v4755_v31  ;;  %v4771_v56 = vadd.f32 %v804_v50, %v716_v49 }
  0xc1   :  { %v1545_v60 = vmul.f32 0.044715, %v4768_v54  ;;  %v2056_v63 = vmul.f32 0.7978846, %v1928_v55  ;;  %v1548_v4 = vmul.f32 0.044715, %v4771_v56 }
  0xc3   :  { %v1673_v6 = vmul.f32 %v1545_v60, %v4768_v54  ;;  %v1676_v12 = vmul.f32 %v1548_v4, %v4771_v56  ;;  %4243 = vtanh.f32 %v2056_v63  ;;  %v3578_v4 = vld [vmem:[#allocation3 + $0xa0] sm:$0xf] }
  0xc4   :  { %v893_v14 = vpop.f32.mrf.mxu2  ;;  %v718_v21 = vpop.f32.mrf.mxu0 }
  0xc5   :  { %v1801_v18 = vmul.f32 %v1673_v6, %v4768_v54  ;;  %v894_v19 = vadd.f32 %v893_v14, %v4760_v34  ;;  %v982_v20 = vpop.f32.mrf.mxu3  ;;  %v1804_v25 = vmul.f32 %v1676_v12, %v4771_v56  ;;  %v719_v29 = vadd.f32 %v718_v21, %v4748_v13  ;;  %v807_v30 = vpop.f32.mrf.mxu1  ;;  %v3580_v14 = vld [vmem:[#allocation3 + $0xa8] sm:$0xf0] }
  0xc7   :  { %v1929_v35 = vadd.f32 %v1801_v18, %v4768_v54  ;;  %v4786_v36 = vadd.f32 %v982_v20, %v894_v19  ;;  %v1932_v37 = vadd.f32 %v1804_v25, %v4771_v56  ;;  %v4789_v38 = vadd.f32 %v807_v30, %v719_v29  ;;  %757 = vmatmul.bf16.gmra.mxu0 %v4777_v15 }
  0xc8   :  { %846 = vmatmul.bf16.gmra.mxu1 %v4781_v22  ;;  %v1416_v18 = vmul.f32 0.5, %v4755_v31  ;;  %v1420_v20 = vmul.f32 0.5, %v4771_v56  ;;  %v4815_v30 = vor.u32 %v4029_v7, %v3578_v4 }
  0xc9   :  { %v1549_v39 = vmul.f32 0.044715, %v4786_v36  ;;  %935 = vmatmul.bf16.gmra.mxu2 %v4777_v15  ;;  %v2060_v40 = vmul.f32 0.7978846, %v1932_v37  ;;  %v1552_v41 = vmul.f32 0.044715, %v4789_v38  ;;  %v4244_v48 = vpop.eup %4243 }
  0xca   :  { %1024 = vmatmul.bf16.gmra.mxu3 %v4781_v22  ;;  %v2057_v42 = vmul.f32 0.7978846, %v1929_v35  ;;  %v2312_v5 = vadd.f32 1.0, %v4244_v48  ;;  %v4817_v35 = vor.u32 %v4028_v10, %v3580_v14 }
  0xcb   :  { %v1677_v44 = vmul.f32 %v1549_v39, %v4786_v36  ;;  %4245 = vtanh.f32 %v2060_v40  ;;  %v1680_v45 = vmul.f32 %v1552_v41, %v4789_v38 }
  0xcc   :  { %v896_v46 = vpop.f32.mrf.mxu2  ;;  %v720_v55 = vpop.f32.mrf.mxu0  ;;  %4247 = vtanh.f32 %v2057_v42  ;;  %v4819_v37 = vmul.f32 %v2312_v5, %v1416_v18  ;;  %v1421_v5 = vmul.f32 0.5, %v4786_v36  ;;  %v3652_v18 = vld [vmem:[#allocation6 + $0x38] sm:$0xf0] }
  0xcd   :  { %v1805_v49 = vmul.f32 %v1677_v44, %v4786_v36  ;;  %v897_v50 = vadd.f32 %v896_v46, %v4760_v34  ;;  %v985_v51 = vpop.f32.mrf.mxu3  ;;  %v721_v57 = vadd.f32 %v720_v55, %v4748_v13  ;;  %v809_v60 = vpop.f32.mrf.mxu1  ;;  %v1808_v61 = vmul.f32 %v1680_v45, %v4789_v38 }
  0xcf   :  { %v1933_v62 = vadd.f32 %v1805_v49, %v4786_v36  ;;  %v4804_v63 = vadd.f32 %v985_v51, %v897_v50  ;;  %v4806_v6 = vadd.f32 %v809_v60, %v721_v57  ;;  %v1936_v16 = vadd.f32 %v1808_v61, %v4789_v38 }
  0xd1   :  { %v2061_v11 = vmul.f32 0.7978846, %v1933_v62  ;;  %v1553_v12 = vmul.f32 0.044715, %v4804_v63  ;;  %v4246_v17 = vpop.eup %4245  ;;  %v1556_v19 = vmul.f32 0.044715, %v4806_v6 }
  0xd2   :  { %v2316_v24 = vadd.f32 1.0, %v4246_v17  ;;  %v4248_v39 = vpop.eup %4247  ;;  %v2064_v56 = vmul.f32 0.7978846, %v1936_v16  ;;  %v1417_v62 = vmul.f32 0.5, %v4768_v54  ;;  %v4045_v17 = vld [vmem:[#allocation6 + $0x2c] sm:$0xf] }
  0xd3   :  { %4249 = vtanh.f32 %v2061_v11  ;;  %v1681_v21 = vmul.f32 %v1553_v12, %v4804_v63  ;;  %v1684_v25 = vmul.f32 %v1556_v19, %v4806_v6  ;;  %v2313_v55 = vadd.f32 1.0, %v4248_v39  ;;  %v4077_v19 = vld [vmem:[#allocation6 + $0x12c] sm:$0xf]  ;;  %v3780_v39 = vld [vmem:[#allocation6 + $0x138] sm:$0xf0] }
  0xd4   :  { %v898_v29 = vpop.f32.mrf.mxu2  ;;  %v723_v41 = vpop.f32.mrf.mxu0  ;;  %v4822_v42 = vmul.f32 %v2316_v24, %v1420_v20  ;;  %4251 = vtanh.f32 %v2064_v56  ;;  %v3783_v56 = vor.u32 %v4077_v19, %v3780_v39  ;;  %v3650_v19 = vld [vmem:[#allocation6 + $0x28] sm:$0xf] }
  0xd5   :  { %v899_v31 = vadd.f32 %v898_v29, %v4760_v34  ;;  %v987_v40 = vpop.f32.mrf.mxu3  ;;  %v1809_v44 = vmul.f32 %v1681_v21, %v4804_v63  ;;  %v724_v45 = vadd.f32 %v723_v41, %v4748_v13  ;;  %v812_v46 = vpop.f32.mrf.mxu1  ;;  %v1812_v48 = vmul.f32 %v1684_v25, %v4806_v6 }
  0xd6   :  { %v4845_v20 = vmul.f32 %v2313_v55, %v1417_v62  ;;  %v3655_v29 = vor.u32 %v4045_v17, %v3652_v18  ;;  %v4030_v62 = vld [vmem:[#allocation3 + $0xb4] sm:$0xf]  ;;  %1333 = vmatpush.bf16.msrb.mxu3 %v3783_v56 }
  0xd7   :  { %v4827_v49 = vadd.f32 %v987_v40, %v899_v31  ;;  %v1937_v51 = vadd.f32 %v1809_v44, %v4804_v63  ;;  %v4832_v57 = vadd.f32 %v812_v46, %v724_v45  ;;  %762 = vmatmul.bf16.gmra.mxu0 %v4815_v30  ;;  %v1940_v60 = vadd.f32 %v1812_v48, %v4806_v6 }
  0xd8   :  { %851 = vmatmul.bf16.gmra.mxu1 %v4817_v35  ;;  %6571 = vst [vmem:[#allocation16_spill] sm:$0xff] %v4845_v20  ;;  %1244 = vmatpush.bf16.msrb.mxu2 %v3655_v29 }
  0xd9   :  { %v4250_v61 = vpop.eup %4249  ;;  %v1557_v4 = vmul.f32 0.044715, %v4827_v49  ;;  %940 = vmatmul.bf16.gmra.mxu2 %v4815_v30  ;;  %v1560_v7 = vmul.f32 0.044715, %v4832_v57  ;;  %v2068_v11 = vmul.f32 0.7978846, %v1940_v60 }
  0xda   :  { %1029 = vmatmul.bf16.gmra.mxu3 %v4817_v35  ;;  %v2317_v10 = vadd.f32 1.0, %v4250_v61  ;;  %v2065_v14 = vmul.f32 0.7978846, %v1937_v51  ;;  %v4252_v46 = vpop.eup %4251  ;;  %v3586_v60 = vld [vmem:[#allocation3 + $0xb0] sm:$0xf] }
  0xdb   :  { %v1685_v12 = vmul.f32 %v1557_v4, %v4827_v49  ;;  %v1688_v54 = vmul.f32 %v1560_v7, %v4832_v57  ;;  %4253 = vtanh.f32 %v2068_v11  ;;  %v4031_v61 = vld [vmem:[#allocation3 + $0xb4] sm:$0xf0]  ;;  %v3588_v7 = vld [vmem:[#allocation3 + $0xb8] sm:$0xf0] }
  0xdc   :  { %v901_v16 = vpop.f32.mrf.mxu2  ;;  %v4847_v21 = vmul.f32 %v2317_v10, %v1421_v5  ;;  %v725_v25 = vpop.f32.mrf.mxu0  ;;  %4255 = vtanh.f32 %v2065_v14  ;;  %v4865_v18 = vor.u32 %v4031_v61, %v3586_v60 }
  0xdd   :  { %v902_v36 = vadd.f32 %v901_v16, %v4760_v34  ;;  %v990_v24 = vpop.f32.mrf.mxu3  ;;  %v1813_v31 = vmul.f32 %v1685_v12, %v4827_v49  ;;  %v726_v40 = vadd.f32 %v725_v25, %v4748_v13  ;;  %v814_v41 = vpop.f32.mrf.mxu1  ;;  %v1816_v45 = vmul.f32 %v1688_v54, %v4832_v57 }
  0xde   :  { %6572 = vst [vmem:[#allocation17_spill] sm:$0xff] %v4847_v21  ;;  %v1424_v54 = vmul.f32 0.5, %v4789_v38  ;;  %v2320_v16 = vadd.f32 1.0, %v4252_v46 }
  0xdf   :  { %v4855_v48 = vadd.f32 %v990_v24, %v902_v36  ;;  %v1941_v51 = vadd.f32 %v1813_v31, %v4827_v49  ;;  %v4858_v55 = vadd.f32 %v814_v41, %v726_v40  ;;  %v1944_v4 = vadd.f32 %v1816_v45, %v4832_v57  ;;  %v4047_v36 = vld [vmem:[#allocation6 + $0x34] sm:$0xf0]  ;;  %v3778_v24 = vld [vmem:[#allocation6 + $0x128] sm:$0xf] }
  0xe0   :  { %v3651_v39 = vor.u32 %v4047_v36, %v3650_v19  ;;  %v4079_v31 = vld [vmem:[#allocation6 + $0x134] sm:$0xf0]  ;;  %v1428_v40 = vmul.f32 0.5, %v4806_v6 }
  0xe1   :  { %v1561_v5 = vmul.f32 0.044715, %v4855_v48  ;;  %v2069_v10 = vmul.f32 0.7978846, %v1941_v51  ;;  %v4254_v11 = vpop.eup %4253  ;;  %v1564_v12 = vmul.f32 0.044715, %v4858_v55  ;;  %v4870_v51 = vor.u32 %v4030_v62, %v3588_v7 }
  0xe2   :  { %v2072_v17 = vmul.f32 0.7978846, %v1944_v4  ;;  %v2324_v41 = vadd.f32 1.0, %v4254_v11  ;;  %v4256_v56 = vpop.eup %4255  ;;  %v3779_v60 = vor.u32 %v4079_v31, %v3778_v24  ;;  %1066 = vmatpush.bf16.msrb.mxu0 %v3651_v39 }
  0xe3   :  { %v1689_v14 = vmul.f32 %v1561_v5, %v4855_v48  ;;  %4257 = vtanh.f32 %v2069_v10  ;;  %v1692_v25 = vmul.f32 %v1564_v12, %v4858_v55  ;;  %v4874_v10 = vmul.f32 %v2320_v16, %v1424_v54 }
  0xe4   :  { %v903_v29 = vpop.f32.mrf.mxu2  ;;  %v728_v46 = vpop.f32.mrf.mxu0  ;;  %v4876_v12 = vmul.f32 %v2324_v41, %v1428_v40  ;;  %1155 = vmatpush.bf16.msrb.mxu1 %v3779_v60  ;;  %4259 = vtanh.f32 %v2072_v17  ;;  %v2321_v19 = vadd.f32 1.0, %v4256_v56  ;;  %v1425_v17 = vmul.f32 0.5, %v4804_v63 }
  0xe5   :  { %v904_v38 = vadd.f32 %v903_v29, %v4760_v34  ;;  %v992_v45 = vpop.f32.mrf.mxu3  ;;  %v1817_v61 = vmul.f32 %v1689_v14, %v4855_v48  ;;  %v729_v4 = vadd.f32 %v728_v46, %v4748_v13  ;;  %v817_v5 = vpop.f32.mrf.mxu1  ;;  %6573 = vst [vmem:[#allocation18_spill] sm:$0xff] %v4874_v10  ;;  %v1820_v6 = vmul.f32 %v1692_v25, %v4858_v55 }
  0xe6   :  { %6574 = vst [vmem:[#allocation19_spill] sm:$0xff] %v4876_v12  ;;  %v1429_v25 = vmul.f32 0.5, %v4827_v49 }
  0xe7   :  { %v4879_v11 = vadd.f32 %v992_v45, %v904_v38  ;;  %v1945_v62 = vadd.f32 %v1817_v61, %v4855_v48  ;;  %v4882_v7 = vadd.f32 %v817_v5, %v729_v4  ;;  %767 = vmatmul.bf16.gmra.mxu0 %v4865_v18  ;;  %v1948_v54 = vadd.f32 %v1820_v6, %v4858_v55 }
  0xe8   :  { %856 = vmatmul.bf16.gmra.mxu1 %v4870_v51  ;;  %v4897_v38 = vmul.f32 %v2321_v19, %v1425_v17  ;;  %v4033_v17 = vld [vmem:[#allocation3 + $0xc4] sm:$0xf0] }
  0xe9   :  { %v4258_v16 = vpop.eup %4257  ;;  %v1565_v36 = vmul.f32 0.044715, %v4879_v11  ;;  %945 = vmatmul.bf16.gmra.mxu2 %v4865_v18  ;;  %v1568_v24 = vmul.f32 0.044715, %v4882_v7  ;;  %v2076_v39 = vmul.f32 0.7978846, %v1948_v54 }
  0xea   :  { %1034 = vmatmul.bf16.gmra.mxu3 %v4870_v51  ;;  %v2325_v29 = vadd.f32 1.0, %v4258_v16  ;;  %v2073_v40 = vmul.f32 0.7978846, %v1945_v62  ;;  %6575 = vst [vmem:[#allocation20_spill] sm:$0xff] %v4897_v38  ;;  %v4260_v63 = vpop.eup %4259  ;;  %v3594_v54 = vld [vmem:[#allocation3 + $0xc0] sm:$0xf] }
  0xeb   :  { %v1693_v31 = vmul.f32 %v1565_v36, %v4879_v11  ;;  %v1696_v41 = vmul.f32 %v1568_v24, %v4882_v7  ;;  %4261 = vtanh.f32 %v2076_v39  ;;  %v4032_v24 = vld [vmem:[#allocation3 + $0xc4] sm:$0xf]  ;;  %v3596_v39 = vld [vmem:[#allocation3 + $0xc8] sm:$0xf0] }
  0xec   :  { %v906_v56 = vpop.f32.mrf.mxu2  ;;  %v4899_v45 = vmul.f32 %v2325_v29, %v1429_v25  ;;  %v730_v61 = vpop.f32.mrf.mxu0  ;;  %4263 = vtanh.f32 %v2073_v40  ;;  %v2328_v25 = vadd.f32 1.0, %v4260_v63  ;;  %v1436_v40 = vmul.f32 0.5, %v4858_v55 }
  0xed   :  { %v907_v46 = vadd.f32 %v906_v56, %v4760_v34  ;;  %v995_v60 = vpop.f32.mrf.mxu3  ;;  %v1821_v49 = vmul.f32 %v1693_v31, %v4879_v11  ;;  %v731_v4 = vadd.f32 %v730_v61, %v4748_v13  ;;  %v819_v5 = vpop.f32.mrf.mxu1  ;;  %v1824_v62 = vmul.f32 %v1696_v41, %v4882_v7 }
  0xee   :  { %6576 = vst [vmem:[#allocation21_spill] sm:$0xff] %v4899_v45  ;;  %v4921_v6 = vor.u32 %v4032_v24, %v3596_v39  ;;  %v4075_v45 = vld [vmem:[#allocation6 + $0x114] sm:$0xf0] }
  0xef   :  { %v4907_v19 = vadd.f32 %v995_v60, %v907_v46  ;;  %v1949_v16 = vadd.f32 %v1821_v49, %v4879_v11  ;;  %v4910_v36 = vadd.f32 %v819_v5, %v731_v4  ;;  %v1952_v56 = vadd.f32 %v1824_v62, %v4882_v7 }
  0xf0   :  { %v1432_v46 = vmul.f32 0.5, %v4832_v57  ;;  %v4919_v5 = vor.u32 %v4033_v17, %v3594_v54 }
  0xf1   :  { %v1569_v29 = vmul.f32 0.044715, %v4907_v19  ;;  %v2077_v31 = vmul.f32 0.7978846, %v1949_v16  ;;  %v4262_v61 = vpop.eup %4261  ;;  %v1572_v41 = vmul.f32 0.044715, %v4910_v36 }
  0xf2   :  { %v2332_v49 = vadd.f32 1.0, %v4262_v61  ;;  %v4923_v16 = vmul.f32 %v2328_v25, %v1432_v46  ;;  %v4264_v62 = vpop.eup %4263 }
  0xf3   :  { %v1697_v60 = vmul.f32 %v1569_v29, %v4907_v19  ;;  %4265 = vtanh.f32 %v2077_v31  ;;  %v1700_v4 = vmul.f32 %v1572_v41, %v4910_v36  ;;  %v2080_v29 = vmul.f32 0.7978846, %v1952_v56 }
  0xf4   :  { %v908_v63 = vpop.f32.mrf.mxu2  ;;  %6577 = vst [vmem:[#allocation22_spill] sm:$0xff] %v4923_v16  ;;  %v733_v57 = vpop.f32.mrf.mxu0  ;;  %v4926_v50 = vmul.f32 %v2332_v49, %v1436_v40  ;;  %v2329_v41 = vadd.f32 1.0, %v4264_v62  ;;  %v1437_v49 = vmul.f32 0.5, %v4879_v11 }
  0xf5   :  { %v909_v14 = vadd.f32 %v908_v63, %v4760_v34  ;;  %v997_v44 = vpop.f32.mrf.mxu3  ;;  %v1825_v55 = vmul.f32 %v1697_v60, %v4907_v19  ;;  %v734_v31 = vadd.f32 %v733_v57, %v4748_v13  ;;  %v822_v61 = vpop.f32.mrf.mxu1  ;;  %v1828_v54 = vmul.f32 %v1700_v4, %v4910_v36 }
  0xf6   :  { %6578 = vst [vmem:[#allocation23_spill] sm:$0xff] %v4926_v50  ;;  %4267 = vtanh.f32 %v2080_v29 }
  0xf7   :  { %v4931_v17 = vadd.f32 %v997_v44, %v909_v14  ;;  %v1953_v25 = vadd.f32 %v1825_v55, %v4907_v19  ;;  %v4936_v39 = vadd.f32 %v822_v61, %v734_v31  ;;  %772 = vmatmul.bf16.gmra.mxu0 %v4919_v5  ;;  %v1956_v56 = vadd.f32 %v1828_v54, %v4910_v36  ;;  %v4041_v31 = vld [vmem:[#allocation6 + $0xc] sm:$0xf]  ;;  %v3636_v61 = vld [vmem:[#allocation6 + $0x18] sm:$0xf0] }
  0xf8   :  { %861 = vmatmul.bf16.gmra.mxu1 %v4921_v6  ;;  %v1433_v44 = vmul.f32 0.5, %v4855_v48  ;;  %v4073_v54 = vld [vmem:[#allocation6 + $0x10c] sm:$0xf]  ;;  %v3639_v11 = vor.u32 %v4041_v31, %v3636_v61  ;;  %v3602_v31 = vld [vmem:[#allocation3 + $0xd0] sm:$0xf] }
  0xf9   :  { %v4266_v46 = vpop.eup %4265  ;;  %v1573_v60 = vmul.f32 0.044715, %v4931_v17  ;;  %950 = vmatmul.bf16.gmra.mxu2 %v4919_v5  ;;  %v2081_v14 = vmul.f32 0.7978846, %v1953_v25  ;;  %v1576_v40 = vmul.f32 0.044715, %v4936_v39 }
  0xfa   :  { %1039 = vmatmul.bf16.gmra.mxu3 %v4921_v6  ;;  %v2333_v4 = vadd.f32 1.0, %v4266_v46  ;;  %v2084_v63 = vmul.f32 0.7978846, %v1956_v56  ;;  %v4949_v24 = vmul.f32 %v2329_v41, %v1433_v44  ;;  %v3764_v46 = vld [vmem:[#allocation6 + $0x118] sm:$0xf0]  ;;  %1245 = vmatpush.bf16.msrb.mxu2 %v3639_v11 }
  0xfb   :  { %v1701_v62 = vmul.f32 %v1573_v60, %v4931_v17  ;;  %v1704_v57 = vmul.f32 %v1576_v40, %v4936_v39  ;;  %v3767_v50 = vor.u32 %v4073_v54, %v3764_v46  ;;  %v3604_v54 = vld [vmem:[#allocation3 + $0xd8] sm:$0xf0] }
  0xfc   :  { %v911_v55 = vpop.f32.mrf.mxu2  ;;  %6579 = vst [vmem:[#allocation24_spill] sm:$0xff] %v4949_v24  ;;  %v4951_v48 = vmul.f32 %v2333_v4, %v1437_v49  ;;  %4269 = vtanh.f32 %v2084_v63  ;;  %v735_v16 = vpop.f32.mrf.mxu0  ;;  %v4043_v24 = vld [vmem:[#allocation6 + $0x14] sm:$0xf0] }
  0xfd   :  { %v912_v29 = vadd.f32 %v911_v55, %v4760_v34  ;;  %v1000_v25 = vpop.f32.mrf.mxu3  ;;  %v1829_v56 = vmul.f32 %v1701_v62, %v4931_v17  ;;  %4271 = vtanh.f32 %v2081_v14  ;;  %v736_v60 = vadd.f32 %v735_v16, %v4748_v13  ;;  %v824_v40 = vpop.f32.mrf.mxu1  ;;  %v4035_v62 = vld [vmem:[#allocation3 + $0xd4] sm:$0xf0]  ;;  %v4034_v14 = vld [vmem:[#allocation3 + $0xd4] sm:$0xf]  ;;  %1334 = vmatpush.bf16.msrb.mxu3 %v3767_v50  ;;  %v3634_v50 = vld [vmem:[#allocation6 + $0x8] sm:$0xf] }
  0xfe   :  { %6580 = vst [vmem:[#allocation25_spill] sm:$0xff] %v4951_v48  ;;  %v1832_v44 = vmul.f32 %v1704_v57, %v4936_v39  ;;  %v4268_v49 = vpop.eup %4267  ;;  %v3635_v38 = vor.u32 %v4043_v24, %v3634_v50  ;;  %v4974_v20 = vor.u32 %v4034_v14, %v3604_v54 }
  0xff   :  { %v4959_v4 = vadd.f32 %v1000_v25, %v912_v29  ;;  %v1957_v63 = vadd.f32 %v1829_v56, %v4931_v17  ;;  %v4962_v55 = vadd.f32 %v824_v40, %v736_v60  ;;  %v1440_v29 = vmul.f32 0.5, %v4882_v7 }
 0x100   :  { %v1960_v16 = vadd.f32 %v1832_v44, %v4936_v39  ;;  %v1444_v25 = vmul.f32 0.5, %v4910_v36  ;;  %v2336_v11 = vadd.f32 1.0, %v4268_v49  ;;  %v4970_v40 = vor.u32 %v4035_v62, %v3602_v31  ;;  %v3762_v44 = vld [vmem:[#allocation6 + $0x108] sm:$0xf]  ;;  %1067 = vmatpush.bf16.msrb.mxu0 %v3635_v38 }
 0x101   :  { %v1577_v61 = vmul.f32 0.044715, %v4959_v4  ;;  %v2085_v46 = vmul.f32 0.7978846, %v1957_v63  ;;  %v1580_v57 = vmul.f32 0.044715, %v4962_v55 }
 0x102   :  { %v4270_v41 = vpop.eup %4269  ;;  %v2088_v12 = vmul.f32 0.7978846, %v1960_v16 }
 0x103   :  { %v4272_v56 = vpop.eup %4271  ;;  %v1705_v60 = vmul.f32 %v1577_v61, %v4959_v4  ;;  %4273 = vtanh.f32 %v2085_v46  ;;  %v1708_v48 = vmul.f32 %v1580_v57, %v4962_v55  ;;  %v2340_v10 = vadd.f32 1.0, %v4270_v41 }
 0x104   :  { %v913_v63 = vpop.f32.mrf.mxu2  ;;  %v738_v49 = vpop.f32.mrf.mxu0  ;;  %v3763_v61 = vor.u32 %v4075_v45, %v3762_v44  ;;  %v4978_v46 = vmul.f32 %v2336_v11, %v1440_v29  ;;  %v2337_v16 = vadd.f32 1.0, %v4272_v56  ;;  %4275 = vtanh.f32 %v2088_v12 }
 0x105   :  { %v914_v7 = vadd.f32 %v913_v63, %v4760_v34  ;;  %v1002_v36 = vpop.f32.mrf.mxu3  ;;  %v1833_v31 = vmul.f32 %v1705_v60, %v4959_v4  ;;  %v739_v62 = vadd.f32 %v738_v49, %v4748_v13  ;;  %v827_v21 = vpop.f32.mrf.mxu1  ;;  %v4980_v57 = vmul.f32 %v2340_v10, %v1444_v25 }
 0x106   :  { %6581 = vst [vmem:[#allocation26_spill] sm:$0xff] %v4978_v46  ;;  %v1836_v24 = vmul.f32 %v1708_v48, %v4962_v55  ;;  %1156 = vmatpush.bf16.msrb.mxu1 %v3763_v61  ;;  %v1441_v48 = vmul.f32 0.5, %v4907_v19  ;;  %v1445_v25 = vmul.f32 0.5, %v4931_v17 }
 0x107   :  { %6582 = vst [vmem:[#allocation27_spill] sm:$0xff] %v4980_v57  ;;  %v4983_v41 = vadd.f32 %v1002_v36, %v914_v7  ;;  %v1961_v14 = vadd.f32 %v1833_v31, %v4959_v4  ;;  %v4986_v54 = vadd.f32 %v827_v21, %v739_v62  ;;  %777 = vmatmul.bf16.gmra.mxu0 %v4970_v40 }
 0x108   :  { %v1964_v38 = vadd.f32 %v1836_v24, %v4962_v55  ;;  %866 = vmatmul.bf16.gmra.mxu1 %v4974_v20  ;;  %v5001_v63 = vmul.f32 %v2337_v16, %v1441_v48  ;;  %v4037_v48 = vld [vmem:[#allocation3 + $0xe4] sm:$0xf0] }
 0x109   :  { %v4274_v10 = vpop.eup %4273  ;;  %v1581_v29 = vmul.f32 0.044715, %v4983_v41  ;;  %955 = vmatmul.bf16.gmra.mxu2 %v4970_v40  ;;  %v1584_v21 = vmul.f32 0.044715, %v4986_v54  ;;  %v2089_v12 = vmul.f32 0.7978846, %v1961_v14 }
 0x10a   :  { %1044 = vmatmul.bf16.gmra.mxu3 %v4974_v20  ;;  %v2341_v11 = vadd.f32 1.0, %v4274_v10  ;;  %v2092_v56 = vmul.f32 0.7978846, %v1964_v38  ;;  %6583 = vst [vmem:[#allocation28_spill] sm:$0xff] %v5001_v63  ;;  %v4276_v17 = vpop.eup %4275  ;;  %v3610_v38 = vld [vmem:[#allocation3 + $0xe0] sm:$0xf] }
 0x10b   :  { %v1709_v60 = vmul.f32 %v1581_v29, %v4983_v41  ;;  %v1712_v50 = vmul.f32 %v1584_v21, %v4986_v54  ;;  %v4036_v21 = vld [vmem:[#allocation3 + $0xe4] sm:$0xf] }
 0x10c   :  { %v916_v44 = vpop.f32.mrf.mxu2  ;;  %v5003_v7 = vmul.f32 %v2341_v11, %v1445_v25  ;;  %4277 = vtanh.f32 %v2092_v56  ;;  %v740_v49 = vpop.f32.mrf.mxu0  ;;  %v3612_v25 = vld [vmem:[#allocation3 + $0xe8] sm:$0xf0] }
 0x10d   :  { %v917_v19 = vadd.f32 %v916_v44, %v4760_v34  ;;  %v1005_v36 = vpop.f32.mrf.mxu3  ;;  %v1837_v61 = vmul.f32 %v1709_v60, %v4983_v41  ;;  %v741_v31 = vadd.f32 %v740_v49, %v4748_v13  ;;  %v829_v62 = vpop.f32.mrf.mxu1  ;;  %v1840_v14 = vmul.f32 %v1712_v50, %v4986_v54 }
 0x10e   :  { %6584 = vst [vmem:[#allocation29_spill] sm:$0xff] %v5003_v7  ;;  %4279 = vtanh.f32 %v2089_v12  ;;  %v2344_v60 = vadd.f32 1.0, %v4276_v17  ;;  %v5025_v45 = vor.u32 %v4036_v21, %v3612_v25 }
 0x10f   :  { %v5011_v16 = vadd.f32 %v1005_v36, %v917_v19  ;;  %v1965_v10 = vadd.f32 %v1837_v61, %v4983_v41  ;;  %v5014_v29 = vadd.f32 %v829_v62, %v741_v31  ;;  %v1968_v11 = vadd.f32 %v1840_v14, %v4986_v54 }
 0x110   :  { %v1448_v19 = vmul.f32 0.5, %v4936_v39  ;;  %v1452_v36 = vmul.f32 0.5, %v4962_v55  ;;  %v5023_v14 = vor.u32 %v4037_v48, %v3610_v38 }
 0x111   :  { %v1585_v56 = vmul.f32 0.044715, %v5011_v16  ;;  %v2093_v44 = vmul.f32 0.7978846, %v1965_v10  ;;  %v1588_v50 = vmul.f32 0.044715, %v5014_v29 }
 0x112   :  { %v4278_v49 = vpop.eup %4277  ;;  %v2096_v31 = vmul.f32 0.7978846, %v1968_v11  ;;  %v5028_v39 = vmul.f32 %v2344_v60, %v1448_v19 }
 0x113   :  { %v1713_v12 = vmul.f32 %v1585_v56, %v5011_v16  ;;  %v2348_v61 = vadd.f32 1.0, %v4278_v49  ;;  %4281 = vtanh.f32 %v2093_v44  ;;  %v1716_v62 = vmul.f32 %v1588_v50, %v5014_v29 }
 0x114   :  { %v918_v24 = vpop.f32.mrf.mxu2  ;;  %v4280_v17 = vpop.eup %4279  ;;  %6585 = vst [vmem:[#allocation30_spill] sm:$0xff] %v5028_v39  ;;  %4283 = vtanh.f32 %v2096_v31 }
 0x115   :  { %v919_v10 = vadd.f32 %v918_v24, %v4760_v34  ;;  %v1007_v63 = vpop.f32.mrf.mxu3  ;;  %v743_v7 = vpop.f32.mrf.mxu0  ;;  %v5030_v55 = vmul.f32 %v2348_v61, %v1452_v36  ;;  %v1841_v56 = vmul.f32 %v1713_v12, %v5011_v16  ;;  %v1844_v49 = vmul.f32 %v1716_v62, %v5014_v29 }
 0x116   :  { %v744_v11 = vadd.f32 %v743_v7, %v4748_v13  ;;  %v832_v44 = vpop.f32.mrf.mxu1  ;;  %v2345_v25 = vadd.f32 1.0, %v4280_v17  ;;  %v1453_v36 = vmul.f32 0.5, %v4983_v41 }
 0x117   :  { %6586 = vst [vmem:[#allocation31_spill] sm:$0xff] %v5030_v55  ;;  %v5035_v38 = vadd.f32 %v1007_v63, %v919_v10  ;;  %v1969_v24 = vadd.f32 %v1841_v56, %v5011_v16  ;;  %782 = vmatmul.bf16.gmra.mxu0 %v5023_v14  ;;  %v1972_v60 = vadd.f32 %v1844_v49, %v5014_v29  ;;  %v1449_v63 = vmul.f32 0.5, %v4959_v4  ;;  %v4127_v56 = vld [vmem:[#allocation9 + $0xb8] sm:$0xff] }
 0x118   :  { %v5040_v21 = vadd.f32 %v832_v44, %v744_v11  ;;  %871 = vmatmul.bf16.gmra.mxu1 %v5025_v45  ;;  %v4135_v11 = vld [vmem:[#allocation9 + $0xf8] sm:$0xff]  ;;  %3098 = vmatpush.bf16.msra.mxu2 %v4127_v56 }
 0x119   :  { %v4282_v50 = vpop.eup %4281  ;;  %v1589_v7 = vmul.f32 0.044715, %v5035_v38  ;;  %960 = vmatmul.bf16.gmra.mxu2 %v5023_v14  ;;  %v2100_v61 = vmul.f32 0.7978846, %v1972_v60  ;;  %v2097_v62 = vmul.f32 0.7978846, %v1969_v24  ;;  %v5053_v44 = vmul.f32 %v2345_v25, %v1449_v63  ;;  %3187 = vmatpush.bf16.msra.mxu3 %v4135_v11 }
 0x11a   :  { %v1592_v19 = vmul.f32 0.044715, %v5040_v21  ;;  %1049 = vmatmul.bf16.gmra.mxu3 %v5025_v45  ;;  %v2349_v12 = vadd.f32 1.0, %v4282_v50  ;;  %v4284_v4 = vpop.eup %4283  ;;  %v3620_v11 = vld [vmem:[#allocation3 + $0xf8] sm:$0xf0] }
 0x11b   :  { %v1717_v31 = vmul.f32 %v1589_v7, %v5035_v38  ;;  %6587 = vst [vmem:[#allocation32_spill] sm:$0xff] %v5053_v44  ;;  %4285 = vtanh.f32 %v2100_v61 }
 0x11c   :  { %v1720_v17 = vmul.f32 %v1592_v19, %v5040_v21  ;;  %v921_v10 = vpop.f32.mrf.mxu2  ;;  %v5055_v49 = vmul.f32 %v2349_v12, %v1453_v36  ;;  %v3618_v19 = vld [vmem:[#allocation3 + $0xf0] sm:$0xf]  ;;  %v4039_v36 = vld [vmem:[#allocation3 + $0xf4] sm:$0xf0]  ;;  %4287 = vtanh.f32 %v2097_v62  ;;  %v4111_v62 = vld [vmem:[#allocation9 + $0x38] sm:$0xff] }
 0x11d   :  { %v922_v48 = vadd.f32 %v921_v10, %v4760_v34  ;;  %v1010_v39 = vpop.f32.mrf.mxu3  ;;  %v745_v41 = vpop.f32.mrf.mxu0  ;;  %v1845_v60 = vmul.f32 %v1717_v31, %v5035_v38  ;;  %v4038_v31 = vld [vmem:[#allocation3 + $0xf4] sm:$0xf]  ;;  %v2352_v10 = vadd.f32 1.0, %v4284_v4  ;;  %2920 = vmatpush.bf16.msra.mxu0 %v4111_v62  ;;  %v1457_v62 = vmul.f32 0.5, %v5011_v16 }
 0x11e   :  { %6588 = vst [vmem:[#allocation33_spill] sm:$0xff] %v5055_v49  ;;  %v746_v50 = vadd.f32 %v745_v41, %v4748_v13  ;;  %v834_v24 = vpop.f32.mrf.mxu1  ;;  %v1848_v25 = vmul.f32 %v1720_v17, %v5040_v21  ;;  %v5077_v49 = vor.u32 %v4038_v31, %v3620_v11 }
 0x11f   :  { %v5063_v63 = vadd.f32 %v1010_v39, %v922_v48  ;;  %v1973_v12 = vadd.f32 %v1845_v60, %v5035_v38  ;;  %v5071_v39 = vor.u32 %v4039_v36, %v3618_v19  ;;  %v1456_v48 = vmul.f32 0.5, %v4986_v54 }
 0x120   :  { %v5066_v61 = vadd.f32 %v834_v24, %v746_v50  ;;  %v1976_v41 = vadd.f32 %v1848_v25, %v5040_v21  ;;  %v4119_v50 = vld [vmem:[#allocation9 + $0x78] sm:$0xff]  ;;  %v1460_v24 = vmul.f32 0.5, %v5014_v29 }
 0x121   :  { %v1593_v56 = vmul.f32 0.044715, %v5063_v63  ;;  %v2101_v55 = vmul.f32 0.7978846, %v1973_v12  ;;  %v4286_v7 = vpop.eup %4285  ;;  %v5079_v12 = vmul.f32 %v2352_v10, %v1456_v48  ;;  %3009 = vmatpush.bf16.msra.mxu1 %v4119_v50 }
 0x122   :  { %v1596_v17 = vmul.f32 0.044715, %v5066_v61  ;;  %v2356_v4 = vadd.f32 1.0, %v4286_v7  ;;  %v2104_v46 = vmul.f32 0.7978846, %v1976_v41  ;;  %v4288_v19 = vpop.eup %4287 }
 0x123   :  { %v1721_v60 = vmul.f32 %v1593_v56, %v5063_v63  ;;  %4289 = vtanh.f32 %v2101_v55 }
 0x124   :  { %v1724_v25 = vmul.f32 %v1596_v17, %v5066_v61  ;;  %v923_v44 = vpop.f32.mrf.mxu2  ;;  %v5082_v56 = vmul.f32 %v2356_v4, %v1460_v24  ;;  %v2353_v17 = vadd.f32 1.0, %v4288_v19  ;;  %4291 = vtanh.f32 %v2104_v46 }
 0x125   :  { %v924_v36 = vadd.f32 %v923_v44, %v4760_v34  ;;  %v1012_v54 = vpop.f32.mrf.mxu3  ;;  %v748_v57 = vpop.f32.mrf.mxu0  ;;  %v1849_v29 = vmul.f32 %v1721_v60, %v5063_v63  ;;  %v1461_v24 = vmul.f32 0.5, %v5035_v38 }
 0x126   :  { %v749_v55 = vadd.f32 %v748_v57, %v4748_v13  ;;  %v837_v7 = vpop.f32.mrf.mxu1  ;;  %v1852_v31 = vmul.f32 %v1724_v25, %v5066_v61 }
 0x127   :  { %v5087_v11 = vadd.f32 %v1012_v54, %v924_v36  ;;  %v1977_v44 = vadd.f32 %v1849_v29, %v5063_v63  ;;  %787 = vmatmul.bf16.gmra.mxu0 %v5071_v39  ;;  %v5105_v29 = vmul.f32 %v2353_v17, %v1457_v62 }
 0x128   :  { %v5092_v41 = vadd.f32 %v837_v7, %v749_v55  ;;  %v1980_v48 = vadd.f32 %v1852_v31, %v5066_v61  ;;  %876 = vmatmul.bf16.gmra.mxu1 %v5077_v49 }
 0x129   :  { %v4290_v60 = vpop.eup %4289  ;;  %v1597_v57 = vmul.f32 0.044715, %v5087_v11  ;;  %965 = vmatmul.bf16.gmra.mxu2 %v5071_v39  ;;  %v2105_v46 = vmul.f32 0.7978846, %v1977_v44  ;;  %6589 = vst [vmem:[#allocation34_spill] sm:$0xff] %v5105_v29  ;;  %v1464_v44 = vmul.f32 0.5, %v5040_v21 }
 0x12a   :  { %v1600_v50 = vmul.f32 0.044715, %v5092_v41  ;;  %1054 = vmatmul.bf16.gmra.mxu3 %v5077_v49  ;;  %v2357_v4 = vadd.f32 1.0, %v4290_v60  ;;  %v2108_v25 = vmul.f32 0.7978846, %v1980_v48  ;;  %v4292_v38 = vpop.eup %4291 }
 0x12b   :  { %v1725_v19 = vmul.f32 %v1597_v57, %v5087_v11 }
 0x12c   :  { %v1728_v36 = vmul.f32 %v1600_v50, %v5092_v41  ;;  %v926_v54 = vpop.f32.mrf.mxu2  ;;  %v5107_v55 = vmul.f32 %v2357_v4, %v1461_v24  ;;  %4293 = vtanh.f32 %v2108_v25  ;;  %v2360_v25 = vadd.f32 1.0, %v4292_v38 }
 0x12d   :  { %v927_v16 = vadd.f32 %v926_v54, %v4760_v34  ;;  %v1015_v7 = vpop.f32.mrf.mxu3  ;;  %v750_v31 = vpop.f32.mrf.mxu0  ;;  %v1853_v10 = vmul.f32 %v1725_v19, %v5087_v11  ;;  %4295 = vtanh.f32 %v2105_v46 }
 0x12e   :  { %6590 = vst [vmem:[#allocation35_spill] sm:$0xff] %v5107_v55  ;;  %v751_v48 = vadd.f32 %v750_v31, %v4748_v13  ;;  %v839_v60 = vpop.f32.mrf.mxu1  ;;  %v1856_v57 = vmul.f32 %v1728_v36, %v5092_v41  ;;  %v1468_v36 = vmul.f32 0.5, %v5066_v61  ;;  %v5128_v29 = vmul.f32 %v2360_v25, %v1464_v44 }
 0x12f   :  { %v5115_v17 = vadd.f32 %v1015_v7, %v927_v16  ;;  %v1981_v62 = vadd.f32 %v1853_v10, %v5087_v11 }
 0x130   :  { %v5118_v50 = vadd.f32 %v839_v60, %v751_v48  ;;  %v1984_v24 = vadd.f32 %v1856_v57, %v5092_v41  ;;  %6591 = vst [vmem:[#allocation36_spill] sm:$0xff] %v5128_v29 }
 0x131   :  { %v1601_v4 = vmul.f32 0.044715, %v5115_v17  ;;  %v2109_v19 = vmul.f32 0.7978846, %v1981_v62 }
 0x132   :  { %v4294_v54 = vpop.eup %4293  ;;  %v1604_v31 = vmul.f32 0.044715, %v5118_v50  ;;  %v2112_v10 = vmul.f32 0.7978846, %v1984_v24 }
 0x133   :  { %v1729_v16 = vmul.f32 %v1601_v4, %v5115_v17  ;;  %v2364_v7 = vadd.f32 1.0, %v4294_v54  ;;  %4297 = vtanh.f32 %v2109_v19  ;;  %v4296_v60 = vpop.eup %4295 }
 0x134   :  { %v1732_v46 = vmul.f32 %v1604_v31, %v5118_v50  ;;  %v928_v48 = vpop.f32.mrf.mxu2  ;;  %4299 = vtanh.f32 %v2112_v10  ;;  %v2361_v44 = vadd.f32 1.0, %v4296_v60 }
 0x135   :  { %v929_v57 = vadd.f32 %v928_v48, %v4760_v34  ;;  %v1017_v38 = vpop.f32.mrf.mxu3  ;;  %v753_v62 = vpop.f32.mrf.mxu0  ;;  %v5130_v55 = vmul.f32 %v2364_v7, %v1468_v36  ;;  %v1857_v21 = vmul.f32 %v1729_v16, %v5115_v17  ;;  %v1465_v7 = vmul.f32 0.5, %v5063_v63 }
 0x136   :  { %v754_v61 = vadd.f32 %v753_v62, %v4748_v13  ;;  %v842_v4 = vpop.f32.mrf.mxu1  ;;  %v1860_v19 = vmul.f32 %v1732_v46, %v5118_v50  ;;  %v1469_v46 = vmul.f32 0.5, %v5087_v11 }
 0x137   :  { %v5135_v24 = vadd.f32 %v1017_v38, %v929_v57  ;;  %v1985_v31 = vadd.f32 %v1857_v21, %v5115_v17  ;;  %1068 = vmatmul.bf16.vlgmr.msrb.gmra.mxu0 %v4684_v43  ;;  %v5153_v54 = vmul.f32 %v2361_v44, %v1465_v7 }
 0x138   :  { %v5140_v48 = vadd.f32 %v842_v4, %v754_v61  ;;  %v1988_v25 = vadd.f32 %v1860_v19, %v5118_v50  ;;  %1157 = vmatmul.bf16.vlgmr.msrb.gmra.mxu1 %v4686_v47  ;;  %v4126_v4 = vld [vmem:[#allocation9 + $0xb0] sm:$0xff] }
 0x139   :  { %v4298_v36 = vpop.eup %4297  ;;  %v1605_v16 = vmul.f32 0.044715, %v5135_v24  ;;  %1246 = vmatmul.bf16.vlgmr.msrb.gmra.mxu2 %v4684_v43  ;;  %v2113_v62 = vmul.f32 0.7978846, %v1985_v31  ;;  %v4134_v19 = vld [vmem:[#allocation9 + $0xf0] sm:$0xff]  ;;  %6592 = vst [vmem:[#allocation37_spill] sm:$0xff] %v5153_v54 }
 0x13a   :  { %v1608_v10 = vmul.f32 0.044715, %v5140_v48  ;;  %1335 = vmatmul.bf16.vlgmr.msrb.gmra.mxu3 %v4686_v47  ;;  %v2365_v57 = vadd.f32 1.0, %v4298_v36  ;;  %v2116_v38 = vmul.f32 0.7978846, %v1988_v25  ;;  %v4300_v63 = vpop.eup %4299  ;;  %3099 = vmatpush.bf16.msra.mxu2 %v4126_v4 }
 0x13b   :  { %v1733_v60 = vmul.f32 %v1605_v16, %v5135_v24  ;;  %3188 = vmatpush.bf16.msra.mxu3 %v4134_v19 }
 0x13c   :  { %v1736_v21 = vmul.f32 %v1608_v10, %v5140_v48  ;;  %v931_v61 = vpop.f32.mrf.mxu2  ;;  %v5155_v43 = vmul.f32 %v2365_v57, %v1469_v46  ;;  %4301 = vtanh.f32 %v2116_v38  ;;  %v2368_v57 = vadd.f32 1.0, %v4300_v63 }
 0x13d   :  { %v932_v47 = vadd.f32 %v931_v61, %v4760_v34  ;;  %v1020_v29 = vpop.f32.mrf.mxu3  ;;  %v755_v11 = vpop.f32.mrf.mxu0  ;;  %v1861_v25 = vmul.f32 %v1733_v60, %v5135_v24  ;;  %4303 = vtanh.f32 %v2113_v62 }
 0x13e   :  { %6593 = vst [vmem:[#allocation38_spill] sm:$0xff] %v5155_v43  ;;  %v756_v36 = vadd.f32 %v755_v11, %v4748_v13  ;;  %v844_v31 = vpop.f32.mrf.mxu1  ;;  %v1864_v44 = vmul.f32 %v1736_v21, %v5140_v48  ;;  %v1472_v11 = vmul.f32 0.5, %v5092_v41 }
 0x13f   :  { %v5163_v7 = vadd.f32 %v1020_v29, %v932_v47  ;;  %v1989_v10 = vadd.f32 %v1861_v25, %v5135_v24  ;;  %v4110_v29 = vld [vmem:[#allocation9 + $0x30] sm:$0xff]  ;;  %v1476_v25 = vmul.f32 0.5, %v5118_v50 }
 0x140   :  { %v5166_v46 = vadd.f32 %v844_v31, %v756_v36  ;;  %v1992_v38 = vadd.f32 %v1864_v44, %v5140_v48  ;;  %v4118_v47 = vld [vmem:[#allocation9 + $0x70] sm:$0xff]  ;;  %v5175_v31 = vmul.f32 %v2368_v57, %v1472_v11  ;;  %2921 = vmatpush.bf16.msra.mxu0 %v4110_v29 }
 0x141   :  { %v1609_v60 = vmul.f32 0.044715, %v5163_v7  ;;  %v2117_v61 = vmul.f32 0.7978846, %v1989_v10  ;;  %3010 = vmatpush.bf16.msra.mxu1 %v4118_v47 }
 0x142   :  { %v4302_v4 = vpop.eup %4301  ;;  %v1612_v19 = vmul.f32 0.044715, %v5166_v46  ;;  %v2120_v44 = vmul.f32 0.7978846, %v1992_v38 }
 0x143   :  { %v1737_v21 = vmul.f32 %v1609_v60, %v5163_v7  ;;  %v2372_v62 = vadd.f32 1.0, %v4302_v4  ;;  %4305 = vtanh.f32 %v2117_v61  ;;  %v4304_v10 = vpop.eup %4303 }
 0x144   :  { %v1740_v63 = vmul.f32 %v1612_v19, %v5166_v46  ;;  %v933_v36 = vpop.f32.mrf.mxu2  ;;  %v2369_v29 = vadd.f32 1.0, %v4304_v10  ;;  %4307 = vtanh.f32 %v2120_v44 }
 0x145   :  { %v934_v16 = vadd.f32 %v933_v36, %v4760_v34  ;;  %v1022_v54 = vpop.f32.mrf.mxu3  ;;  %v758_v43 = vpop.f32.mrf.mxu0  ;;  %v5178_v41 = vmul.f32 %v2372_v62, %v1476_v25  ;;  %v1865_v60 = vmul.f32 %v1737_v21, %v5163_v7  ;;  %v1477_v25 = vmul.f32 0.5, %v5135_v24 }
 0x146   :  { %v759_v50 = vadd.f32 %v758_v43, %v4748_v13  ;;  %v847_v61 = vpop.f32.mrf.mxu1  ;;  %v1868_v4 = vmul.f32 %v1740_v63, %v5166_v46 }
 0x147   :  { %v5183_v19 = vadd.f32 %v1022_v54, %v934_v16  ;;  %v1993_v38 = vadd.f32 %v1865_v60, %v5163_v7  ;;  %1073 = vmatmul.bf16.gmra.mxu0 %v4692_v2  ;;  %v1473_v54 = vmul.f32 0.5, %v5115_v17 }
 0x148   :  { %v5188_v11 = vadd.f32 %v847_v61, %v759_v50  ;;  %v1996_v47 = vadd.f32 %v1868_v4, %v5166_v46  ;;  %1162 = vmatmul.bf16.gmra.mxu1 %v4694_v3 }
 0x149   :  { %v4306_v21 = vpop.eup %4305  ;;  %v1613_v43 = vmul.f32 0.044715, %v5183_v19  ;;  %1251 = vmatmul.bf16.gmra.mxu2 %v4692_v2  ;;  %v2121_v44 = vmul.f32 0.7978846, %v1993_v38  ;;  %v5201_v50 = vmul.f32 %v2369_v29, %v1473_v54  ;;  %v1480_v38 = vmul.f32 0.5, %v5140_v48 }
 0x14a   :  { %v1616_v16 = vmul.f32 0.044715, %v5188_v11  ;;  %1340 = vmatmul.bf16.gmra.mxu3 %v4694_v3  ;;  %v2373_v62 = vadd.f32 1.0, %v4306_v21  ;;  %v2124_v63 = vmul.f32 0.7978846, %v1996_v47  ;;  %v4308_v24 = vpop.eup %4307 }
 0x14b   :  { %v1741_v36 = vmul.f32 %v1613_v43, %v5183_v19  ;;  %6594 = vst [vmem:[#allocation39_spill] sm:$0xff] %v5201_v50 }
 0x14c   :  { %v1744_v10 = vmul.f32 %v1616_v16, %v5188_v11  ;;  %v936_v60 = vpop.f32.mrf.mxu2  ;;  %v5203_v61 = vmul.f32 %v2373_v62, %v1477_v25  ;;  %4309 = vtanh.f32 %v2124_v63  ;;  %v2376_v63 = vadd.f32 1.0, %v4308_v24 }
 0x14d   :  { %v937_v2 = vadd.f32 %v936_v60, %v4760_v34  ;;  %v1025_v17 = vpop.f32.mrf.mxu3  ;;  %v760_v4 = vpop.f32.mrf.mxu0  ;;  %v1869_v3 = vmul.f32 %v1741_v36, %v5183_v19  ;;  %4311 = vtanh.f32 %v2121_v44 }
 0x14e   :  { %v761_v47 = vadd.f32 %v760_v4, %v4748_v13  ;;  %v849_v21 = vpop.f32.mrf.mxu1  ;;  %v1872_v43 = vmul.f32 %v1744_v10, %v5188_v11  ;;  %v1484_v10 = vmul.f32 0.5, %v5166_v46  ;;  %v5224_v57 = vmul.f32 %v2376_v63, %v1480_v38 }
 0x14f   :  { %v5211_v29 = vadd.f32 %v1025_v17, %v937_v2  ;;  %v1997_v54 = vadd.f32 %v1869_v3, %v5183_v19 }
 0x150   :  { %v5214_v16 = vadd.f32 %v849_v21, %v761_v47  ;;  %v2000_v25 = vadd.f32 %v1872_v43, %v5188_v11  ;;  %6595 = vst [vmem:[#allocation40_spill] sm:$0xff] %v5224_v57 }
 0x151   :  { %v1617_v62 = vmul.f32 0.044715, %v5211_v29  ;;  %v2125_v36 = vmul.f32 0.7978846, %v1997_v54 }
 0x152   :  { %v4310_v60 = vpop.eup %4309  ;;  %v1620_v4 = vmul.f32 0.044715, %v5214_v16  ;;  %v2128_v44 = vmul.f32 0.7978846, %v2000_v25 }
 0x153   :  { %v1745_v2 = vmul.f32 %v1617_v62, %v5211_v29  ;;  %v2380_v17 = vadd.f32 1.0, %v4310_v60  ;;  %4313 = vtanh.f32 %v2125_v36  ;;  %v4312_v21 = vpop.eup %4311 }
 0x154   :  { %v1748_v3 = vmul.f32 %v1620_v4, %v5214_v16  ;;  %v938_v47 = vpop.f32.mrf.mxu2  ;;  %4315 = vtanh.f32 %v2128_v44  ;;  %v2377_v38 = vadd.f32 1.0, %v4312_v21 }
 0x155   :  { %v939_v43 = vadd.f32 %v938_v47, %v4760_v34  ;;  %v1027_v24 = vpop.f32.mrf.mxu3  ;;  %v763_v54 = vpop.f32.mrf.mxu0  ;;  %v5226_v50 = vmul.f32 %v2380_v17, %v1484_v10  ;;  %v1873_v48 = vmul.f32 %v1745_v2, %v5211_v29  ;;  %v1481_v17 = vmul.f32 0.5, %v5163_v7 }
 0x156   :  { %v764_v46 = vadd.f32 %v763_v54, %v4748_v13  ;;  %v852_v62 = vpop.f32.mrf.mxu1  ;;  %v1876_v36 = vmul.f32 %v1748_v3, %v5214_v16  ;;  %v1485_v3 = vmul.f32 0.5, %v5183_v19 }
 0x157   :  { %v5231_v25 = vadd.f32 %v1027_v24, %v939_v43  ;;  %v2001_v4 = vadd.f32 %v1873_v48, %v5211_v29  ;;  %1078 = vmatmul.bf16.gmra.mxu0 %v4700_v8  ;;  %v5249_v60 = vmul.f32 %v2377_v38, %v1481_v17 }
 0x158   :  { %v5236_v47 = vadd.f32 %v852_v62, %v764_v46  ;;  %v2004_v63 = vadd.f32 %v1876_v36, %v5214_v16  ;;  %1167 = vmatmul.bf16.gmra.mxu1 %v4702_v9  ;;  %v4125_v62 = vld [vmem:[#allocation9 + $0xa8] sm:$0xff] }
 0x159   :  { %v4314_v10 = vpop.eup %4313  ;;  %v1621_v2 = vmul.f32 0.044715, %v5231_v25  ;;  %1256 = vmatmul.bf16.gmra.mxu2 %v4700_v8  ;;  %v2129_v54 = vmul.f32 0.7978846, %v2001_v4  ;;  %v4133_v36 = vld [vmem:[#allocation9 + $0xe8] sm:$0xff]  ;;  %6596 = vst [vmem:[#allocation41_spill] sm:$0xff] %v5249_v60 }
 0x15a   :  { %v1624_v44 = vmul.f32 0.044715, %v5236_v47  ;;  %1345 = vmatmul.bf16.gmra.mxu3 %v4702_v9  ;;  %v2381_v43 = vadd.f32 1.0, %v4314_v10  ;;  %v2132_v24 = vmul.f32 0.7978846, %v2004_v63  ;;  %v4316_v7 = vpop.eup %4315  ;;  %3100 = vmatpush.bf16.msra.mxu2 %v4125_v62 }
 0x15b   :  { %v1749_v21 = vmul.f32 %v1621_v2, %v5231_v25  ;;  %3189 = vmatpush.bf16.msra.mxu3 %v4133_v36 }
 0x15c   :  { %v1752_v48 = vmul.f32 %v1624_v44, %v5236_v47  ;;  %v941_v46 = vpop.f32.mrf.mxu2  ;;  %v5251_v8 = vmul.f32 %v2381_v43, %v1485_v3  ;;  %4317 = vtanh.f32 %v2132_v24  ;;  %v2384_v43 = vadd.f32 1.0, %v4316_v7 }
 0x15d   :  { %v942_v9 = vadd.f32 %v941_v46, %v4760_v34  ;;  %v1030_v57 = vpop.f32.mrf.mxu3  ;;  %v765_v19 = vpop.f32.mrf.mxu0  ;;  %v1877_v63 = vmul.f32 %v1749_v21, %v5231_v25  ;;  %4319 = vtanh.f32 %v2129_v54 }
 0x15e   :  { %6597 = vst [vmem:[#allocation42_spill] sm:$0xff] %v5251_v8  ;;  %v766_v10 = vadd.f32 %v765_v19, %v4748_v13  ;;  %v854_v4 = vpop.f32.mrf.mxu1  ;;  %v1880_v38 = vmul.f32 %v1752_v48, %v5236_v47  ;;  %v1488_v19 = vmul.f32 0.5, %v5188_v11 }
 0x15f   :  { %v5259_v17 = vadd.f32 %v1030_v57, %v942_v9  ;;  %v2005_v44 = vadd.f32 %v1877_v63, %v5231_v25  ;;  %v4109_v57 = vld [vmem:[#allocation9 + $0x28] sm:$0xff]  ;;  %v1492_v63 = vmul.f32 0.5, %v5214_v16 }
 0x160   :  { %v5262_v3 = vadd.f32 %v854_v4, %v766_v10  ;;  %v2008_v24 = vadd.f32 %v1880_v38, %v5236_v47  ;;  %v4117_v9 = vld [vmem:[#allocation9 + $0x68] sm:$0xff]  ;;  %v5271_v4 = vmul.f32 %v2384_v43, %v1488_v19  ;;  %2922 = vmatpush.bf16.msra.mxu0 %v4109_v57 }
 0x161   :  { %v1625_v21 = vmul.f32 0.044715, %v5259_v17  ;;  %v2133_v46 = vmul.f32 0.7978846, %v2005_v44  ;;  %3011 = vmatpush.bf16.msra.mxu1 %v4117_v9 }
 0x162   :  { %v4318_v62 = vpop.eup %4317  ;;  %v1628_v36 = vmul.f32 0.044715, %v5262_v3  ;;  %v2136_v38 = vmul.f32 0.7978846, %v2008_v24 }
 0x163   :  { %v1753_v48 = vmul.f32 %v1625_v21, %v5259_v17  ;;  %v2388_v54 = vadd.f32 1.0, %v4318_v62  ;;  %4321 = vtanh.f32 %v2133_v46  ;;  %v4320_v44 = vpop.eup %4319 }
 0x164   :  { %v1756_v7 = vmul.f32 %v1628_v36, %v5262_v3  ;;  %v943_v10 = vpop.f32.mrf.mxu2  ;;  %v2385_v57 = vadd.f32 1.0, %v4320_v44  ;;  %4323 = vtanh.f32 %v2136_v38 }
 0x165   :  { %v944_v2 = vadd.f32 %v943_v10, %v4760_v34  ;;  %v1032_v60 = vpop.f32.mrf.mxu3  ;;  %v768_v8 = vpop.f32.mrf.mxu0  ;;  %v5274_v11 = vmul.f32 %v2388_v54, %v1492_v63  ;;  %v1881_v21 = vmul.f32 %v1753_v48, %v5259_v17  ;;  %v1493_v63 = vmul.f32 0.5, %v5231_v25 }
 0x166   :  { %v769_v16 = vadd.f32 %v768_v8, %v4748_v13  ;;  %v857_v46 = vpop.f32.mrf.mxu1  ;;  %v1884_v62 = vmul.f32 %v1756_v7, %v5262_v3 }
 0x167   :  { %v5279_v36 = vadd.f32 %v1032_v60, %v944_v2  ;;  %v2009_v24 = vadd.f32 %v1881_v21, %v5259_v17  ;;  %1083 = vmatmul.bf16.gmra.mxu0 %v4708_v26  ;;  %v1489_v60 = vmul.f32 0.5, %v5211_v29 }
 0x168   :  { %v5284_v19 = vadd.f32 %v857_v46, %v769_v16  ;;  %v2012_v9 = vadd.f32 %v1884_v62, %v5262_v3  ;;  %1172 = vmatmul.bf16.gmra.mxu1 %v4710_v27 }
 0x169   :  { %v4322_v48 = vpop.eup %4321  ;;  %v1629_v8 = vmul.f32 0.044715, %v5279_v36  ;;  %1261 = vmatmul.bf16.gmra.mxu2 %v4708_v26  ;;  %v2137_v38 = vmul.f32 0.7978846, %v2009_v24  ;;  %v5297_v16 = vmul.f32 %v2385_v57, %v1489_v60  ;;  %v1496_v24 = vmul.f32 0.5, %v5236_v47 }
 0x16a   :  { %v1632_v2 = vmul.f32 0.044715, %v5284_v19  ;;  %1350 = vmatmul.bf16.gmra.mxu3 %v4710_v27  ;;  %v2389_v54 = vadd.f32 1.0, %v4322_v48  ;;  %v2140_v7 = vmul.f32 0.7978846, %v2012_v9  ;;  %v4324_v25 = vpop.eup %4323 }
 0x16b   :  { %v1757_v10 = vmul.f32 %v1629_v8, %v5279_v36  ;;  %6598 = vst [vmem:[#allocation43_spill] sm:$0xff] %v5297_v16 }
 0x16c   :  { %v1760_v44 = vmul.f32 %v1632_v2, %v5284_v19  ;;  %v946_v21 = vpop.f32.mrf.mxu2  ;;  %v5299_v46 = vmul.f32 %v2389_v54, %v1493_v63  ;;  %4325 = vtanh.f32 %v2140_v7  ;;  %v2392_v7 = vadd.f32 1.0, %v4324_v25 }
 0x16d   :  { %v947_v26 = vadd.f32 %v946_v21, %v4760_v34  ;;  %v1035_v29 = vpop.f32.mrf.mxu3  ;;  %v770_v62 = vpop.f32.mrf.mxu0  ;;  %v1885_v27 = vmul.f32 %v1757_v10, %v5279_v36  ;;  %4327 = vtanh.f32 %v2137_v38 }
 0x16e   :  { %v771_v9 = vadd.f32 %v770_v62, %v4748_v13  ;;  %v859_v48 = vpop.f32.mrf.mxu1  ;;  %v1888_v8 = vmul.f32 %v1760_v44, %v5284_v19  ;;  %v1500_v44 = vmul.f32 0.5, %v5262_v3  ;;  %v5320_v43 = vmul.f32 %v2392_v7, %v1496_v24 }
 0x16f   :  { %v5307_v57 = vadd.f32 %v1035_v29, %v947_v26  ;;  %v2013_v60 = vadd.f32 %v1885_v27, %v5279_v36 }
 0x170   :  { %v5310_v2 = vadd.f32 %v859_v48, %v771_v9  ;;  %v2016_v63 = vadd.f32 %v1888_v8, %v5284_v19  ;;  %6599 = vst [vmem:[#allocation44_spill] sm:$0xff] %v5320_v43 }
 0x171   :  { %v1633_v54 = vmul.f32 0.044715, %v5307_v57  ;;  %v2141_v10 = vmul.f32 0.7978846, %v2013_v60 }
 0x172   :  { %v4326_v21 = vpop.eup %4325  ;;  %v1636_v62 = vmul.f32 0.044715, %v5310_v2  ;;  %v2144_v38 = vmul.f32 0.7978846, %v2016_v63 }
 0x173   :  { %v1761_v26 = vmul.f32 %v1633_v54, %v5307_v57  ;;  %v2396_v29 = vadd.f32 1.0, %v4326_v21  ;;  %4329 = vtanh.f32 %v2141_v10  ;;  %v4328_v48 = vpop.eup %4327 }
 0x174   :  { %v1764_v27 = vmul.f32 %v1636_v62, %v5310_v2  ;;  %v948_v9 = vpop.f32.mrf.mxu2  ;;  %4331 = vtanh.f32 %v2144_v38  ;;  %v2393_v24 = vadd.f32 1.0, %v4328_v48 }
 0x175   :  { %v949_v8 = vadd.f32 %v948_v9, %v4760_v34  ;;  %v1037_v25 = vpop.f32.mrf.mxu3  ;;  %v773_v60 = vpop.f32.mrf.mxu0  ;;  %v5322_v16 = vmul.f32 %v2396_v29, %v1500_v44  ;;  %v1889_v47 = vmul.f32 %v1761_v26, %v5307_v57  ;;  %v1497_v29 = vmul.f32 0.5, %v5259_v17 }
 0x176   :  { %v774_v3 = vadd.f32 %v773_v60, %v4748_v13  ;;  %v862_v54 = vpop.f32.mrf.mxu1  ;;  %v1892_v10 = vmul.f32 %v1764_v27, %v5310_v2  ;;  %v1501_v27 = vmul.f32 0.5, %v5279_v36 }
 0x177   :  { %6600 = vst [vmem:[#allocation45_spill] sm:$0xff] %v5322_v16  ;;  %v5327_v63 = vadd.f32 %v1037_v25, %v949_v8  ;;  %v2017_v62 = vadd.f32 %v1889_v47, %v5307_v57  ;;  %1088 = vmatmul.bf16.gmra.mxu0 %v4716_v32  ;;  %v5345_v21 = vmul.f32 %v2393_v24, %v1497_v29 }
 0x178   :  { %v5332_v9 = vadd.f32 %v862_v54, %v774_v3  ;;  %v2020_v7 = vadd.f32 %v1892_v10, %v5310_v2  ;;  %1177 = vmatmul.bf16.gmra.mxu1 %v4718_v33  ;;  %v4124_v54 = vld [vmem:[#allocation9 + $0xa0] sm:$0xff] }
 0x179   :  { %v4330_v44 = vpop.eup %4329  ;;  %v1637_v26 = vmul.f32 0.044715, %v5327_v63  ;;  %1266 = vmatmul.bf16.gmra.mxu2 %v4716_v32  ;;  %v2145_v60 = vmul.f32 0.7978846, %v2017_v62  ;;  %v4132_v10 = vld [vmem:[#allocation9 + $0xe0] sm:$0xff]  ;;  %6601 = vst [vmem:[#allocation46_spill] sm:$0xff] %v5345_v21 }
 0x17a   :  { %v1640_v38 = vmul.f32 0.044715, %v5332_v9  ;;  %1355 = vmatmul.bf16.gmra.mxu3 %v4718_v33  ;;  %v2397_v8 = vadd.f32 1.0, %v4330_v44  ;;  %v2148_v25 = vmul.f32 0.7978846, %v2020_v7  ;;  %v4332_v17 = vpop.eup %4331  ;;  %3101 = vmatpush.bf16.msra.mxu2 %v4124_v54 }
 0x17b   :  { %v1765_v48 = vmul.f32 %v1637_v26, %v5327_v63  ;;  %3190 = vmatpush.bf16.msra.mxu3 %v4132_v10 }
 0x17c   :  { %v1768_v47 = vmul.f32 %v1640_v38, %v5332_v9  ;;  %v951_v3 = vpop.f32.mrf.mxu2  ;;  %v5347_v32 = vmul.f32 %v2397_v8, %v1501_v27  ;;  %4333 = vtanh.f32 %v2148_v25  ;;  %v2400_v8 = vadd.f32 1.0, %v4332_v17 }
 0x17d   :  { %v952_v33 = vadd.f32 %v951_v3, %v4760_v34  ;;  %v1040_v43 = vpop.f32.mrf.mxu3  ;;  %v775_v36 = vpop.f32.mrf.mxu0  ;;  %v1893_v7 = vmul.f32 %v1765_v48, %v5327_v63  ;;  %4335 = vtanh.f32 %v2145_v60 }
 0x17e   :  { %6602 = vst [vmem:[#allocation47_spill] sm:$0xff] %v5347_v32  ;;  %v776_v44 = vadd.f32 %v775_v36, %v4748_v13  ;;  %v864_v62 = vpop.f32.mrf.mxu1  ;;  %v1896_v24 = vmul.f32 %v1768_v47, %v5332_v9  ;;  %v1504_v36 = vmul.f32 0.5, %v5284_v19 }
 0x17f   :  { %v5355_v29 = vadd.f32 %v1040_v43, %v952_v33  ;;  %v2021_v38 = vadd.f32 %v1893_v7, %v5327_v63  ;;  %v4108_v43 = vld [vmem:[#allocation9 + $0x20] sm:$0xff]  ;;  %v1508_v7 = vmul.f32 0.5, %v5310_v2 }
 0x180   :  { %v5358_v27 = vadd.f32 %v864_v62, %v776_v44  ;;  %v2024_v25 = vadd.f32 %v1896_v24, %v5332_v9  ;;  %v4116_v33 = vld [vmem:[#allocation9 + $0x60] sm:$0xff]  ;;  %v5367_v62 = vmul.f32 %v2400_v8, %v1504_v36  ;;  %2923 = vmatpush.bf16.msra.mxu0 %v4108_v43 }
 0x181   :  { %v1641_v48 = vmul.f32 0.044715, %v5355_v29  ;;  %v2149_v3 = vmul.f32 0.7978846, %v2021_v38  ;;  %3012 = vmatpush.bf16.msra.mxu1 %v4116_v33 }
 0x182   :  { %v4334_v54 = vpop.eup %4333  ;;  %v1644_v10 = vmul.f32 0.044715, %v5358_v27  ;;  %6603 = vst [vmem:[#allocation48_spill] sm:$0xff] %v5367_v62  ;;  %v2152_v24 = vmul.f32 0.7978846, %v2024_v25 }
 0x183   :  { %v1769_v47 = vmul.f32 %v1641_v48, %v5355_v29  ;;  %v2404_v60 = vadd.f32 1.0, %v4334_v54  ;;  %4337 = vtanh.f32 %v2149_v3  ;;  %v4336_v38 = vpop.eup %4335 }
 0x184   :  { %v1772_v17 = vmul.f32 %v1644_v10, %v5358_v27  ;;  %v953_v44 = vpop.f32.mrf.mxu2  ;;  %v2401_v43 = vadd.f32 1.0, %v4336_v38  ;;  %4339 = vtanh.f32 %v2152_v24 }
 0x185   :  { %v954_v26 = vadd.f32 %v953_v44, %v4760_v34  ;;  %v1042_v21 = vpop.f32.mrf.mxu3  ;;  %v778_v32 = vpop.f32.mrf.mxu0  ;;  %v5370_v19 = vmul.f32 %v2404_v60, %v1508_v7  ;;  %v1897_v48 = vmul.f32 %v1769_v47, %v5355_v29  ;;  %v1509_v7 = vmul.f32 0.5, %v5327_v63 }
 0x186   :  { %v779_v2 = vadd.f32 %v778_v32, %v4748_v13  ;;  %v867_v3 = vpop.f32.mrf.mxu1  ;;  %v1900_v54 = vmul.f32 %v1772_v17, %v5358_v27 }
 0x187   :  { %6604 = vst [vmem:[#allocation49_spill] sm:$0xff] %v5370_v19  ;;  %v5375_v10 = vadd.f32 %v1042_v21, %v954_v26  ;;  %v2025_v25 = vadd.f32 %v1897_v48, %v5355_v29  ;;  %1093 = vmatmul.bf16.gmra.mxu0 %v4724_v52  ;;  %v1505_v21 = vmul.f32 0.5, %v5307_v57 }
 0x188   :  { %v5380_v36 = vadd.f32 %v867_v3, %v779_v2  ;;  %v2028_v33 = vadd.f32 %v1900_v54, %v5358_v27  ;;  %1182 = vmatmul.bf16.gmra.mxu1 %v4726_v53 }
 0x189   :  { %v4338_v47 = vpop.eup %4337  ;;  %v1645_v32 = vmul.f32 0.044715, %v5375_v10  ;;  %1271 = vmatmul.bf16.gmra.mxu2 %v4724_v52  ;;  %v2153_v24 = vmul.f32 0.7978846, %v2025_v25  ;;  %v5393_v2 = vmul.f32 %v2401_v43, %v1505_v21  ;;  %v1512_v25 = vmul.f32 0.5, %v5332_v9 }
 0x18a   :  { %v1648_v26 = vmul.f32 0.044715, %v5380_v36  ;;  %1360 = vmatmul.bf16.gmra.mxu3 %v4726_v53  ;;  %v2405_v60 = vadd.f32 1.0, %v4338_v47  ;;  %v2156_v17 = vmul.f32 0.7978846, %v2028_v33  ;;  %v4340_v63 = vpop.eup %4339 }
 0x18b   :  { %v1773_v44 = vmul.f32 %v1645_v32, %v5375_v10  ;;  %6605 = vst [vmem:[#allocation50_spill] sm:$0xff] %v5393_v2 }
 0x18c   :  { %v1776_v38 = vmul.f32 %v1648_v26, %v5380_v36  ;;  %v956_v48 = vpop.f32.mrf.mxu2  ;;  %v5395_v3 = vmul.f32 %v2405_v60, %v1509_v7  ;;  %4341 = vtanh.f32 %v2156_v17  ;;  %v2408_v17 = vadd.f32 1.0, %v4340_v63 }
 0x18d   :  { %v957_v52 = vadd.f32 %v956_v48, %v4760_v34  ;;  %v1045_v57 = vpop.f32.mrf.mxu3  ;;  %v780_v54 = vpop.f32.mrf.mxu0  ;;  %v1901_v53 = vmul.f32 %v1773_v44, %v5375_v10  ;;  %4343 = vtanh.f32 %v2153_v24 }
 0x18e   :  { %6606 = vst [vmem:[#allocation51_spill] sm:$0xff] %v5395_v3  ;;  %v781_v33 = vadd.f32 %v780_v54, %v4748_v13  ;;  %v869_v47 = vpop.f32.mrf.mxu1  ;;  %v1904_v32 = vmul.f32 %v1776_v38, %v5380_v36  ;;  %v5416_v8 = vmul.f32 %v2408_v17, %v1512_v25 }
 0x18f   :  { %v5403_v43 = vadd.f32 %v1045_v57, %v957_v52  ;;  %v2029_v21 = vadd.f32 %v1901_v53, %v5375_v10  ;;  %v1516_v52 = vmul.f32 0.5, %v5358_v27 }
 0x190   :  { %v5406_v26 = vadd.f32 %v869_v47, %v781_v33  ;;  %v2032_v7 = vadd.f32 %v1904_v32, %v5380_v36  ;;  %6607 = vst [vmem:[#allocation52_spill] sm:$0xff] %v5416_v8 }
 0x191   :  { %v1649_v60 = vmul.f32 0.044715, %v5403_v43  ;;  %v2157_v44 = vmul.f32 0.7978846, %v2029_v21 }
 0x192   :  { %v4342_v48 = vpop.eup %4341  ;;  %v1652_v54 = vmul.f32 0.044715, %v5406_v26  ;;  %v2160_v33 = vmul.f32 0.7978846, %v2032_v7 }
 0x193   :  { %v1777_v38 = vmul.f32 %v1649_v60, %v5403_v43  ;;  %v2412_v57 = vadd.f32 1.0, %v4342_v48  ;;  %4345 = vtanh.f32 %v2157_v44  ;;  %v4344_v47 = vpop.eup %4343 }
 0x194   :  { %v1780_v24 = vmul.f32 %v1652_v54, %v5406_v26  ;;  %v958_v53 = vpop.f32.mrf.mxu2  ;;  %v2409_v25 = vadd.f32 1.0, %v4344_v47  ;;  %4347 = vtanh.f32 %v2160_v33 }
 0x195   :  { %v959_v32 = vadd.f32 %v958_v53, %v4760_v34  ;;  %v1047_v63 = vpop.f32.mrf.mxu3  ;;  %v783_v21 = vpop.f32.mrf.mxu0  ;;  %v5418_v2 = vmul.f32 %v2412_v57, %v1516_v52  ;;  %v1905_v9 = vmul.f32 %v1777_v38, %v5403_v43  ;;  %v1513_v57 = vmul.f32 0.5, %v5355_v29 }
 0x196   :  { %v784_v60 = vadd.f32 %v783_v21, %v4748_v13  ;;  %v872_v27 = vpop.f32.mrf.mxu1  ;;  %v1908_v44 = vmul.f32 %v1780_v24, %v5406_v26 }
 0x197   :  { %6608 = vst [vmem:[#allocation53_spill] sm:$0xff] %v5418_v2  ;;  %v5423_v48 = vadd.f32 %v1047_v63, %v959_v32  ;;  %v2033_v54 = vadd.f32 %v1905_v9, %v5403_v43  ;;  %1098 = vmatmul.bf16.gmra.mxu0 %v4732_v58  ;;  %v1517_v32 = vmul.f32 0.5, %v5375_v10 }
 0x198   :  { %v5428_v53 = vadd.f32 %v872_v27, %v784_v60  ;;  %v2036_v17 = vadd.f32 %v1908_v44, %v5406_v26  ;;  %1187 = vmatmul.bf16.gmra.mxu1 %v4734_v59  ;;  %v5441_v27 = vmul.f32 %v2409_v25, %v1513_v57 }
 0x199   :  { %v4346_v38 = vpop.eup %4345  ;;  %v1653_v52 = vmul.f32 0.044715, %v5423_v48  ;;  %1276 = vmatmul.bf16.gmra.mxu2 %v4732_v58  ;;  %v2161_v33 = vmul.f32 0.7978846, %v2033_v54  ;;  %v1520_v54 = vmul.f32 0.5, %v5380_v36 }
 0x19a   :  { %v1656_v24 = vmul.f32 0.044715, %v5428_v53  ;;  %1365 = vmatmul.bf16.gmra.mxu3 %v4734_v59  ;;  %v2413_v63 = vadd.f32 1.0, %v4346_v38  ;;  %v2164_v47 = vmul.f32 0.7978846, %v2036_v17  ;;  %6609 = vst [vmem:[#allocation54_spill] sm:$0xff] %v5441_v27  ;;  %v4348_v10 = vpop.eup %4347 }
 0x19b   :  { %v1781_v21 = vmul.f32 %v1653_v52, %v5423_v48 }
 0x19c   :  { %v1784_v9 = vmul.f32 %v1656_v24, %v5428_v53  ;;  %v961_v60 = vpop.f32.mrf.mxu2  ;;  %v5443_v44 = vmul.f32 %v2413_v63, %v1517_v32  ;;  %4349 = vtanh.f32 %v2164_v47  ;;  %v2416_v47 = vadd.f32 1.0, %v4348_v10 }
 0x19d   :  { %v962_v58 = vadd.f32 %v961_v60, %v4760_v34  ;;  %v1050_v29 = vpop.f32.mrf.mxu3  ;;  %v785_v7 = vpop.f32.mrf.mxu0  ;;  %v1909_v59 = vmul.f32 %v1781_v21, %v5423_v48  ;;  %4351 = vtanh.f32 %v2161_v33 }
 0x19e   :  { %6610 = vst [vmem:[#allocation55_spill] sm:$0xff] %v5443_v44  ;;  %v786_v17 = vadd.f32 %v785_v7, %v4748_v13  ;;  %v874_v38 = vpop.f32.mrf.mxu1  ;;  %v1912_v52 = vmul.f32 %v1784_v9, %v5428_v53  ;;  %v5464_v27 = vmul.f32 %v2416_v47, %v1520_v54 }
 0x19f   :  { %v5451_v25 = vadd.f32 %v1050_v29, %v962_v58  ;;  %v2037_v57 = vadd.f32 %v1909_v59, %v5423_v48  ;;  %v1524_v58 = vmul.f32 0.5, %v5406_v26 }
 0x1a0   :  { %v5454_v24 = vadd.f32 %v874_v38, %v786_v17  ;;  %v2040_v32 = vadd.f32 %v1912_v52, %v5428_v53  ;;  %6611 = vst [vmem:[#allocation56_spill] sm:$0xff] %v5464_v27 }
 0x1a1   :  { %v1657_v63 = vmul.f32 0.044715, %v5451_v25  ;;  %v2165_v21 = vmul.f32 0.7978846, %v2037_v57 }
 0x1a2   :  { %v4350_v7 = vpop.eup %4349  ;;  %v1660_v60 = vmul.f32 0.044715, %v5454_v24  ;;  %v2168_v17 = vmul.f32 0.7978846, %v2040_v32 }
 0x1a3   :  { %v1785_v9 = vmul.f32 %v1657_v63, %v5451_v25  ;;  %v2420_v29 = vadd.f32 1.0, %v4350_v7  ;;  %4353 = vtanh.f32 %v2165_v21  ;;  %v4352_v38 = vpop.eup %4351 }
 0x1a4   :  { %v1788_v33 = vmul.f32 %v1660_v60, %v5454_v24  ;;  %v963_v59 = vpop.f32.mrf.mxu2  ;;  %v2417_v54 = vadd.f32 1.0, %v4352_v38  ;;  %4355 = vtanh.f32 %v2168_v17  ;;  %v4123_v17 = vld [vmem:[#allocation9 + $0x98] sm:$0xff] }
 0x1a5   :  { %v964_v52 = vadd.f32 %v963_v59, %v4760_v34  ;;  %v1052_v10 = vpop.f32.mrf.mxu3  ;;  %v788_v57 = vpop.f32.mrf.mxu0  ;;  %v5466_v44 = vmul.f32 %v2420_v29, %v1524_v58  ;;  %v1913_v36 = vmul.f32 %v1785_v9, %v5451_v25  ;;  %v1521_v29 = vmul.f32 0.5, %v5403_v43  ;;  %3102 = vmatpush.bf16.msra.mxu2 %v4123_v17 }
 0x1a6   :  { %v789_v63 = vadd.f32 %v788_v57, %v4748_v13  ;;  %v877_v26 = vpop.f32.mrf.mxu1  ;;  %v1916_v21 = vmul.f32 %v1788_v33, %v5454_v24 }
 0x1a7   :  { %6612 = vst [vmem:[#allocation57_spill] sm:$0xff] %v5466_v44  ;;  %v5471_v7 = vadd.f32 %v1052_v10, %v964_v52  ;;  %v2041_v60 = vadd.f32 %v1913_v36, %v5451_v25  ;;  %1103 = vmatmul.bf16.gmra.mxu0 %v4740_v0  ;;  %v1525_v52 = vmul.f32 0.5, %v5423_v48  ;;  %v4131_v36 = vld [vmem:[#allocation9 + $0xd8] sm:$0xff]  ;;  %v5489_v32 = vmul.f32 %v2417_v54, %v1521_v29 }
 0x1a8   :  { %v5476_v59 = vadd.f32 %v877_v26, %v789_v63  ;;  %v2044_v47 = vadd.f32 %v1916_v21, %v5454_v24  ;;  %1192 = vmatmul.bf16.gmra.mxu1 %v4742_v1  ;;  %3191 = vmatpush.bf16.msra.mxu3 %v4131_v36 }
 0x1a9   :  { %v4354_v9 = vpop.eup %4353  ;;  %v1661_v58 = vmul.f32 0.044715, %v5471_v7  ;;  %1281 = vmatmul.bf16.gmra.mxu2 %v4740_v0  ;;  %v2169_v63 = vmul.f32 0.7978846, %v2041_v60  ;;  %6613 = vst [vmem:[#allocation58_spill] sm:$0xff] %v5489_v32 }
 0x1aa   :  { %v1664_v33 = vmul.f32 0.044715, %v5476_v59  ;;  %1370 = vmatmul.bf16.gmra.mxu3 %v4742_v1  ;;  %v2421_v10 = vadd.f32 1.0, %v4354_v9  ;;  %v2172_v38 = vmul.f32 0.7978846, %v2044_v47  ;;  %v4356_v47 = vpop.eup %4355 }
 0x1ab   :  { %v1789_v57 = vmul.f32 %v1661_v58, %v5471_v7 }
 0x1ac   :  { %v1792_v26 = vmul.f32 %v1664_v33, %v5476_v59  ;;  %v966_v21 = vpop.f32.mrf.mxu2  ;;  %v5491_v0 = vmul.f32 %v2421_v10, %v1525_v52  ;;  %4357 = vtanh.f32 %v2172_v38 }
 0x1ad   :  { %v967_v43 = vadd.f32 %v966_v21, %v4760_v34  ;;  %v1055_v1 = vpop.f32.mrf.mxu3  ;;  %v790_v27 = vpop.f32.mrf.mxu0  ;;  %v1917_v48 = vmul.f32 %v1789_v57, %v5471_v7  ;;  %4359 = vtanh.f32 %v2169_v63  ;;  %v4499_v57 = vld [vmem:[#allocation8] sm:$0xf]  ;;  %v1532_v63 = vmul.f32 0.5, %v5454_v24 }
 0x1ae   :  { %6614 = vst [vmem:[#allocation59_spill] sm:$0xff] %v5491_v0  ;;  %v791_v9 = vadd.f32 %v790_v27, %v4748_v13  ;;  %v879_v60 = vpop.f32.mrf.mxu1  ;;  %v1920_v54 = vmul.f32 %v1792_v26, %v5476_v59  ;;  %v5506_v17 = vperm.slane %v4499_v57, 2  ;;  %v2424_v13 = vadd.f32 1.0, %v4356_v47  ;;  %v4107_v26 = vld [vmem:[#allocation9 + $0x18] sm:$0xff] }
 0x1af   :  { %v5499_v29 = vadd.f32 %v1055_v1, %v967_v43  ;;  %v2045_v33 = vadd.f32 %v1917_v48, %v5471_v7  ;;  %v4115_v43 = vld [vmem:[#allocation9 + $0x58] sm:$0xff]  ;;  %v1528_v1 = vmul.f32 0.5, %v5428_v53  ;;  %2924 = vmatpush.bf16.msra.mxu0 %v4107_v26 }
 0x1b0   :  { %v5502_v52 = vadd.f32 %v879_v60, %v791_v9  ;;  %v2048_v10 = vadd.f32 %v1920_v54, %v5476_v59  ;;  %3013 = vmatpush.bf16.msra.mxu1 %v4115_v43 }
 0x1b1   :  { %v1665_v38 = vmul.f32 0.044715, %v5499_v29  ;;  %v2173_v27 = vmul.f32 0.7978846, %v2045_v33  ;;  %v5514_v44 = vmul.f32 %v2424_v13, %v1528_v1  ;;  %v1529_v1 = vmul.f32 0.5, %v5451_v25 }
 0x1b2   :  { %v4358_v36 = vpop.eup %4357  ;;  %v1668_v21 = vmul.f32 0.044715, %v5502_v52  ;;  %v2176_v60 = vmul.f32 0.7978846, %v2048_v10 }
 0x1b3   :  { %v1793_v48 = vmul.f32 %v1665_v38, %v5499_v29  ;;  %v2428_v9 = vadd.f32 1.0, %v4358_v36  ;;  %4361 = vtanh.f32 %v2173_v27  ;;  %v4360_v47 = vpop.eup %4359  ;;  %6615 = vst [vmem:[#allocation60_spill] sm:$0xff] %v5514_v44 }
 0x1b4   :  { %v1796_v54 = vmul.f32 %v1668_v21, %v5502_v52  ;;  %v968_v58 = vpop.f32.mrf.mxu2  ;;  %4363 = vtanh.f32 %v2176_v60  ;;  %v2425_v13 = vadd.f32 1.0, %v4360_v47 }
 0x1b5   :  { %v969_v33 = vadd.f32 %v968_v58, %v4760_v34  ;;  %v1057_v32 = vpop.f32.mrf.mxu3  ;;  %v1069_v0 = vpop.f32.mrf.mxu0  ;;  %v5516_v53 = vmul.f32 %v2428_v9, %v1532_v63  ;;  %v1921_v24 = vmul.f32 %v1793_v48, %v5499_v29  ;;  %v1533_v48 = vmul.f32 0.5, %v5471_v7 }
 0x1b6   :  { %v1070_v38 = vadd.f32 %v1069_v0, %v5506_v17  ;;  %v1158_v27 = vpop.f32.mrf.mxu1  ;;  %v1924_v10 = vmul.f32 %v1796_v54, %v5502_v52 }
 0x1b7   :  { %6616 = vst [vmem:[#allocation61_spill] sm:$0xff] %v5516_v53  ;;  %v5521_v36 = vadd.f32 %v1057_v32, %v969_v33  ;;  %v2049_v34 = vadd.f32 %v1921_v24, %v5499_v29  ;;  %1108 = vmatmul.bf16.gmra.mxu0 %v4750_v23  ;;  %v5533_v32 = vperm.slane %v4499_v57, 3  ;;  %v5541_v57 = vmul.f32 %v2425_v13, %v1529_v1 }
 0x1b8   :  { %v5526_v58 = vadd.f32 %v1158_v27, %v1070_v38  ;;  %v2052_v26 = vadd.f32 %v1924_v10, %v5502_v52  ;;  %1197 = vmatmul.bf16.gmra.mxu1 %v4752_v28  ;;  %v4122_v38 = vld [vmem:[#allocation9 + $0x90] sm:$0xff] }
 0x1b9   :  { %v4362_v43 = vpop.eup %4361  ;;  %v1669_v0 = vmul.f32 0.044715, %v5521_v36  ;;  %1286 = vmatmul.bf16.gmra.mxu2 %v4750_v23  ;;  %v2177_v47 = vmul.f32 0.7978846, %v2049_v34  ;;  %v4130_v23 = vld [vmem:[#allocation9 + $0xd0] sm:$0xff]  ;;  %6617 = vst [vmem:[#allocation62_spill] sm:$0xff] %v5541_v57 }
 0x1ba   :  { %v1546_v63 = vmul.f32 0.044715, %v5526_v58  ;;  %1375 = vmatmul.bf16.gmra.mxu3 %v4752_v28  ;;  %v2429_v9 = vadd.f32 1.0, %v4362_v43  ;;  %v2180_v60 = vmul.f32 0.7978846, %v2052_v26  ;;  %v4364_v25 = vpop.eup %4363  ;;  %3103 = vmatpush.bf16.msra.mxu2 %v4122_v38 }
 0x1bb   :  { %v1797_v54 = vmul.f32 %v1669_v0, %v5521_v36  ;;  %3192 = vmatpush.bf16.msra.mxu3 %v4130_v23  ;;  %v1536_v23 = vmul.f32 0.5, %v5476_v59 }
 0x1bc   :  { %v1674_v33 = vmul.f32 %v1546_v63, %v5526_v58  ;;  %v1247_v24 = vpop.f32.mrf.mxu2  ;;  %v5543_v27 = vmul.f32 %v2429_v9, %v1533_v48  ;;  %4365 = vtanh.f32 %v2180_v60  ;;  %v2432_v60 = vadd.f32 1.0, %v4364_v25 }
 0x1bd   :  { %v1248_v28 = vadd.f32 %v1247_v24, %v5533_v32  ;;  %v1336_v10 = vpop.f32.mrf.mxu3  ;;  %v1071_v7 = vpop.f32.mrf.mxu0  ;;  %v1925_v26 = vmul.f32 %v1797_v54, %v5521_v36  ;;  %4367 = vtanh.f32 %v2177_v47 }
 0x1be   :  { %6618 = vst [vmem:[#allocation63_spill] sm:$0xff] %v5543_v27  ;;  %v1802_v43 = vmul.f32 %v1674_v33, %v5526_v58  ;;  %v1072_v34 = vadd.f32 %v1071_v7, %v5506_v17  ;;  %v1160_v0 = vpop.f32.mrf.mxu1 }
 0x1bf   :  { %v5551_v1 = vadd.f32 %v1336_v10, %v1248_v28  ;;  %v2053_v63 = vadd.f32 %v1925_v26, %v5521_v36  ;;  %v4106_v28 = vld [vmem:[#allocation9 + $0x10] sm:$0xff]  ;;  %v1540_v26 = vmul.f32 0.5, %v5502_v52 }
 0x1c0   :  { %v1930_v48 = vadd.f32 %v1802_v43, %v5526_v58  ;;  %v5555_v9 = vadd.f32 %v1160_v0, %v1072_v34  ;;  %v4114_v10 = vld [vmem:[#allocation9 + $0x50] sm:$0xff]  ;;  %v5563_v0 = vmul.f32 %v2432_v60, %v1536_v23  ;;  %2925 = vmatpush.bf16.msra.mxu0 %v4106_v28 }
 0x1c1   :  { %v1547_v54 = vmul.f32 0.044715, %v5551_v1  ;;  %v2181_v33 = vmul.f32 0.7978846, %v2053_v63  ;;  %3014 = vmatpush.bf16.msra.mxu1 %v4114_v10 }
 0x1c2   :  { %v4366_v24 = vpop.eup %4365  ;;  %v1550_v38 = vmul.f32 0.044715, %v5555_v9  ;;  %v2058_v43 = vmul.f32 0.7978846, %v1930_v48  ;;  %6619 = vst [vmem:[#allocation64_spill] sm:$0xff] %v5563_v0 }
 0x1c3   :  { %v1675_v7 = vmul.f32 %v1547_v54, %v5551_v1  ;;  %v2436_v47 = vadd.f32 1.0, %v4366_v24  ;;  %4369 = vtanh.f32 %v2181_v33  ;;  %v4368_v63 = vpop.eup %4367 }
 0x1c4   :  { %v1678_v34 = vmul.f32 %v1550_v38, %v5555_v9  ;;  %v1249_v25 = vpop.f32.mrf.mxu2  ;;  %4371 = vtanh.f32 %v2058_v43  ;;  %v2433_v28 = vadd.f32 1.0, %v4368_v63 }
 0x1c5   :  { %v1803_v13 = vmul.f32 %v1675_v7, %v5551_v1  ;;  %v1250_v21 = vadd.f32 %v1249_v25, %v5533_v32  ;;  %v1338_v59 = vpop.f32.mrf.mxu3  ;;  %v1074_v57 = vpop.f32.mrf.mxu0  ;;  %v5567_v54 = vmul.f32 %v2436_v47, %v1540_v26  ;;  %v1541_v47 = vmul.f32 0.5, %v5521_v36 }
 0x1c6   :  { %v1806_v52 = vmul.f32 %v1678_v34, %v5555_v9  ;;  %v1075_v48 = vadd.f32 %v1074_v57, %v5506_v17  ;;  %v1163_v33 = vpop.f32.mrf.mxu1 }
 0x1c7   :  { %6620 = vst [vmem:[#allocation65_spill] sm:$0xff] %v5567_v54  ;;  %v1931_v24 = vadd.f32 %v1803_v13, %v5551_v1  ;;  %v5572_v60 = vadd.f32 %v1338_v59, %v1250_v21  ;;  %1113 = vmatmul.bf16.gmra.mxu0 %v4777_v15  ;;  %v1537_v21 = vmul.f32 0.5, %v5499_v29 }
 0x1c8   :  { %v1934_v23 = vadd.f32 %v1806_v52, %v5555_v9  ;;  %v5577_v7 = vadd.f32 %v1163_v33, %v1075_v48  ;;  %1202 = vmatmul.bf16.gmra.mxu1 %v4781_v22 }
 0x1c9   :  { %v4370_v10 = vpop.eup %4369  ;;  %v1551_v26 = vmul.f32 0.044715, %v5572_v60  ;;  %1291 = vmatmul.bf16.gmra.mxu2 %v4777_v15  ;;  %v2059_v34 = vmul.f32 0.7978846, %v1931_v24  ;;  %v5589_v52 = vmul.f32 %v2433_v28, %v1537_v21 }
 0x1ca   :  { %v2062_v57 = vmul.f32 0.7978846, %v1934_v23  ;;  %v1554_v13 = vmul.f32 0.044715, %v5577_v7  ;;  %1380 = vmatmul.bf16.gmra.mxu3 %v4781_v22  ;;  %v2437_v43 = vadd.f32 1.0, %v4370_v10  ;;  %v4372_v23 = vpop.eup %4371 }
 0x1cb   :  { %v1679_v25 = vmul.f32 %v1551_v26, %v5572_v60  ;;  %6621 = vst [vmem:[#allocation66_spill] sm:$0xff] %v5589_v52 }
 0x1cc   :  { %4373 = vtanh.f32 %v2062_v57  ;;  %v1682_v63 = vmul.f32 %v1554_v13, %v5577_v7  ;;  %v1252_v59 = vpop.f32.mrf.mxu2  ;;  %v5591_v15 = vmul.f32 %v2437_v43, %v1541_v47  ;;  %v2314_v47 = vadd.f32 1.0, %v4372_v23 }
 0x1cd   :  { %v1807_v29 = vmul.f32 %v1679_v25, %v5572_v60  ;;  %v1253_v48 = vadd.f32 %v1252_v59, %v5533_v32  ;;  %v1341_v33 = vpop.f32.mrf.mxu3  ;;  %v1076_v22 = vpop.f32.mrf.mxu0  ;;  %4375 = vtanh.f32 %v2059_v34 }
 0x1ce   :  { %6622 = vst [vmem:[#allocation67_spill] sm:$0xff] %v5591_v15  ;;  %v1077_v36 = vadd.f32 %v1076_v22, %v5506_v17  ;;  %v1165_v24 = vpop.f32.mrf.mxu1  ;;  %v1810_v10 = vmul.f32 %v1682_v63, %v5577_v7  ;;  %v1418_v22 = vmul.f32 0.5, %v5526_v58  ;;  %v1422_v63 = vmul.f32 0.5, %v5555_v9 }
 0x1cf   :  { %v1935_v28 = vadd.f32 %v1807_v29, %v5572_v60  ;;  %v5600_v21 = vadd.f32 %v1341_v33, %v1253_v48 }
 0x1d0   :  { %v5602_v57 = vadd.f32 %v1165_v24, %v1077_v36  ;;  %v1938_v13 = vadd.f32 %v1810_v10, %v5577_v7  ;;  %v5612_v38 = vmul.f32 %v2314_v47, %v1418_v22 }
 0x1d1   :  { %v2063_v43 = vmul.f32 0.7978846, %v1935_v28  ;;  %v1555_v25 = vmul.f32 0.044715, %v5600_v21 }
 0x1d2   :  { %v4374_v59 = vpop.eup %4373  ;;  %v1558_v26 = vmul.f32 0.044715, %v5602_v57  ;;  %v2066_v48 = vmul.f32 0.7978846, %v1938_v13 }
 0x1d3   :  { %4377 = vtanh.f32 %v2063_v43  ;;  %v1683_v34 = vmul.f32 %v1555_v25, %v5600_v21  ;;  %v2318_v29 = vadd.f32 1.0, %v4374_v59  ;;  %v4376_v24 = vpop.eup %4375 }
 0x1d4   :  { %v1686_v33 = vmul.f32 %v1558_v26, %v5602_v57  ;;  %v1254_v36 = vpop.f32.mrf.mxu2  ;;  %4379 = vtanh.f32 %v2066_v48  ;;  %v1423_v48 = vmul.f32 0.5, %v5572_v60 }
 0x1d5   :  { %v1255_v23 = vadd.f32 %v1254_v36, %v5533_v32  ;;  %v1343_v10 = vpop.f32.mrf.mxu3  ;;  %v1079_v28 = vpop.f32.mrf.mxu0  ;;  %v5614_v58 = vmul.f32 %v2318_v29, %v1422_v63  ;;  %v1811_v9 = vmul.f32 %v1683_v34, %v5600_v21  ;;  %v2315_v36 = vadd.f32 1.0, %v4376_v24 }
 0x1d6   :  { %v1080_v43 = vadd.f32 %v1079_v28, %v5506_v17  ;;  %v1168_v52 = vpop.f32.mrf.mxu1  ;;  %v1814_v25 = vmul.f32 %v1686_v33, %v5602_v57  ;;  %v1419_v34 = vmul.f32 0.5, %v5551_v1 }
 0x1d7   :  { %v5619_v13 = vadd.f32 %v1343_v10, %v1255_v23  ;;  %v1939_v59 = vadd.f32 %v1811_v9, %v5600_v21  ;;  %1118 = vmatmul.bf16.gmra.mxu0 %v4815_v30  ;;  %v4121_v9 = vld [vmem:[#allocation9 + $0x88] sm:$0xff] }
 0x1d8   :  { %v5624_v47 = vadd.f32 %v1168_v52, %v1080_v43  ;;  %v1942_v22 = vadd.f32 %v1814_v25, %v5602_v57  ;;  %1207 = vmatmul.bf16.gmra.mxu1 %v4817_v35  ;;  %v4129_v43 = vld [vmem:[#allocation9 + $0xc8] sm:$0xff]  ;;  %v5637_v25 = vmul.f32 %v2315_v36, %v1419_v34  ;;  %3104 = vmatpush.bf16.msra.mxu2 %v4121_v9 }
 0x1d9   :  { %v4378_v63 = vpop.eup %4377  ;;  %v1559_v29 = vmul.f32 0.044715, %v5619_v13  ;;  %1296 = vmatmul.bf16.gmra.mxu2 %v4815_v30  ;;  %v2067_v10 = vmul.f32 0.7978846, %v1939_v59  ;;  %3193 = vmatpush.bf16.msra.mxu3 %v4129_v43 }
 0x1da   :  { %v1562_v33 = vmul.f32 0.044715, %v5624_v47  ;;  %1385 = vmatmul.bf16.gmra.mxu3 %v4817_v35  ;;  %v2319_v52 = vadd.f32 1.0, %v4378_v63  ;;  %v2070_v24 = vmul.f32 0.7978846, %v1942_v22  ;;  %v4380_v30 = vpop.eup %4379 }
 0x1db   :  { %v1687_v23 = vmul.f32 %v1559_v29, %v5619_v13 }
 0x1dc   :  { %v1690_v28 = vmul.f32 %v1562_v33, %v5624_v47  ;;  %v1257_v1 = vpop.f32.mrf.mxu2  ;;  %v5639_v26 = vmul.f32 %v2319_v52, %v1423_v48  ;;  %4381 = vtanh.f32 %v2070_v24  ;;  %v2322_v52 = vadd.f32 1.0, %v4380_v30 }
 0x1dd   :  { %v1258_v60 = vadd.f32 %v1257_v1, %v5533_v32  ;;  %v1346_v15 = vpop.f32.mrf.mxu3  ;;  %v1081_v35 = vpop.f32.mrf.mxu0  ;;  %v1815_v22 = vmul.f32 %v1687_v23, %v5619_v13  ;;  %4383 = vtanh.f32 %v2067_v10 }
 0x1de   :  { %v1082_v63 = vadd.f32 %v1081_v35, %v5506_v17  ;;  %v1170_v59 = vpop.f32.mrf.mxu1  ;;  %v1818_v36 = vmul.f32 %v1690_v28, %v5624_v47  ;;  %v1426_v35 = vmul.f32 0.5, %v5577_v7 }
 0x1df   :  { %v5647_v34 = vadd.f32 %v1346_v15, %v1258_v60  ;;  %v1943_v48 = vadd.f32 %v1815_v22, %v5619_v13  ;;  %v4105_v15 = vld [vmem:[#allocation9 + $0x8] sm:$0xff]  ;;  %v1430_v22 = vmul.f32 0.5, %v5602_v57 }
 0x1e0   :  { %v5650_v33 = vadd.f32 %v1170_v59, %v1082_v63  ;;  %v1946_v24 = vadd.f32 %v1818_v36, %v5624_v47  ;;  %v4113_v60 = vld [vmem:[#allocation9 + $0x48] sm:$0xff]  ;;  %v5659_v59 = vmul.f32 %v2322_v52, %v1426_v35  ;;  %2926 = vmatpush.bf16.msra.mxu0 %v4105_v15 }
 0x1e1   :  { %v1563_v23 = vmul.f32 0.044715, %v5647_v34  ;;  %v2071_v1 = vmul.f32 0.7978846, %v1943_v48  ;;  %3015 = vmatpush.bf16.msra.mxu1 %v4113_v60 }
 0x1e2   :  { %v4382_v9 = vpop.eup %4381  ;;  %v1566_v43 = vmul.f32 0.044715, %v5650_v33  ;;  %v2074_v36 = vmul.f32 0.7978846, %v1946_v24 }
 0x1e3   :  { %v1691_v28 = vmul.f32 %v1563_v23, %v5647_v34  ;;  %v2326_v10 = vadd.f32 1.0, %v4382_v9  ;;  %4385 = vtanh.f32 %v2071_v1  ;;  %v4384_v48 = vpop.eup %4383 }
 0x1e4   :  { %v1694_v30 = vmul.f32 %v1566_v43, %v5650_v33  ;;  %v1259_v63 = vpop.f32.mrf.mxu2  ;;  %v2323_v15 = vadd.f32 1.0, %v4384_v48  ;;  %4387 = vtanh.f32 %v2074_v36 }
 0x1e5   :  { %v1260_v29 = vadd.f32 %v1259_v63, %v5533_v32  ;;  %v1348_v0 = vpop.f32.mrf.mxu3  ;;  %v1084_v54 = vpop.f32.mrf.mxu0  ;;  %v5662_v7 = vmul.f32 %v2326_v10, %v1430_v22  ;;  %v1819_v23 = vmul.f32 %v1691_v28, %v5647_v34  ;;  %v1431_v22 = vmul.f32 0.5, %v5619_v13 }
 0x1e6   :  { %v1085_v57 = vadd.f32 %v1084_v54, %v5506_v17  ;;  %v1173_v1 = vpop.f32.mrf.mxu1  ;;  %v1822_v9 = vmul.f32 %v1694_v30, %v5650_v33 }
 0x1e7   :  { %v5667_v43 = vadd.f32 %v1348_v0, %v1260_v29  ;;  %v1947_v24 = vadd.f32 %v1819_v23, %v5647_v34  ;;  %1123 = vmatmul.bf16.gmra.mxu0 %v4865_v18  ;;  %v1427_v0 = vmul.f32 0.5, %v5600_v21 }
 0x1e8   :  { %v5672_v35 = vadd.f32 %v1173_v1, %v1085_v57  ;;  %v1950_v60 = vadd.f32 %v1822_v9, %v5650_v33  ;;  %1212 = vmatmul.bf16.gmra.mxu1 %v4870_v51 }
 0x1e9   :  { %v4386_v28 = vpop.eup %4385  ;;  %v1567_v54 = vmul.f32 0.044715, %v5667_v43  ;;  %1301 = vmatmul.bf16.gmra.mxu2 %v4865_v18  ;;  %v2075_v36 = vmul.f32 0.7978846, %v1947_v24  ;;  %v5685_v57 = vmul.f32 %v2323_v15, %v1427_v0  ;;  %v1434_v24 = vmul.f32 0.5, %v5624_v47 }
 0x1ea   :  { %v1570_v29 = vmul.f32 0.044715, %v5672_v35  ;;  %1390 = vmatmul.bf16.gmra.mxu3 %v4870_v51  ;;  %v2327_v10 = vadd.f32 1.0, %v4386_v28  ;;  %v2078_v30 = vmul.f32 0.7978846, %v1950_v60  ;;  %v4388_v13 = vpop.eup %4387 }
 0x1eb   :  { %v1695_v63 = vmul.f32 %v1567_v54, %v5667_v43 }
 0x1ec   :  { %v1698_v48 = vmul.f32 %v1570_v29, %v5672_v35  ;;  %v1262_v23 = vpop.f32.mrf.mxu2  ;;  %v5687_v1 = vmul.f32 %v2327_v10, %v1431_v22  ;;  %4389 = vtanh.f32 %v2078_v30  ;;  %v2330_v30 = vadd.f32 1.0, %v4388_v13 }
 0x1ed   :  { %v1263_v18 = vadd.f32 %v1262_v23, %v5533_v32  ;;  %v1351_v21 = vpop.f32.mrf.mxu3  ;;  %v1086_v9 = vpop.f32.mrf.mxu0  ;;  %v1823_v51 = vmul.f32 %v1695_v63, %v5667_v43  ;;  %4391 = vtanh.f32 %v2075_v36 }
 0x1ee   :  { %v1087_v60 = vadd.f32 %v1086_v9, %v5506_v17  ;;  %v1175_v28 = vpop.f32.mrf.mxu1  ;;  %v1826_v54 = vmul.f32 %v1698_v48, %v5672_v35  ;;  %v1438_v48 = vmul.f32 0.5, %v5650_v33  ;;  %v5708_v52 = vmul.f32 %v2330_v30, %v1434_v24 }
 0x1ef   :  { %v5695_v15 = vadd.f32 %v1351_v21, %v1263_v18  ;;  %v1951_v0 = vadd.f32 %v1823_v51, %v5667_v43 }
 0x1f0   :  { %v5698_v29 = vadd.f32 %v1175_v28, %v1087_v60  ;;  %v1954_v22 = vadd.f32 %v1826_v54, %v5672_v35 }
 0x1f1   :  { %v1571_v10 = vmul.f32 0.044715, %v5695_v15  ;;  %v2079_v63 = vmul.f32 0.7978846, %v1951_v0 }
 0x1f2   :  { %v4390_v23 = vpop.eup %4389  ;;  %v1574_v9 = vmul.f32 0.044715, %v5698_v29  ;;  %v2082_v36 = vmul.f32 0.7978846, %v1954_v22 }
 0x1f3   :  { %v1699_v18 = vmul.f32 %v1571_v10, %v5695_v15  ;;  %v2334_v21 = vadd.f32 1.0, %v4390_v23  ;;  %4393 = vtanh.f32 %v2079_v63  ;;  %v4392_v28 = vpop.eup %4391 }
 0x1f4   :  { %v1702_v51 = vmul.f32 %v1574_v9, %v5698_v29  ;;  %v1264_v60 = vpop.f32.mrf.mxu2  ;;  %4395 = vtanh.f32 %v2082_v36  ;;  %v2331_v24 = vadd.f32 1.0, %v4392_v28 }
 0x1f5   :  { %v1265_v54 = vadd.f32 %v1264_v60, %v5533_v32  ;;  %v1353_v13 = vpop.f32.mrf.mxu3  ;;  %v1089_v0 = vpop.f32.mrf.mxu0  ;;  %v5710_v27 = vmul.f32 %v2334_v21, %v1438_v48  ;;  %v1827_v47 = vmul.f32 %v1699_v18, %v5695_v15  ;;  %v1435_v21 = vmul.f32 0.5, %v5647_v34 }
 0x1f6   :  { %v1090_v33 = vadd.f32 %v1089_v0, %v5506_v17  ;;  %v1178_v10 = vpop.f32.mrf.mxu1  ;;  %v1830_v63 = vmul.f32 %v1702_v51, %v5698_v29  ;;  %v1439_v51 = vmul.f32 0.5, %v5667_v43 }
 0x1f7   :  { %v5715_v22 = vadd.f32 %v1353_v13, %v1265_v54  ;;  %v1955_v9 = vadd.f32 %v1827_v47, %v5695_v15  ;;  %1128 = vmatmul.bf16.gmra.mxu0 %v4919_v5  ;;  %v5733_v23 = vmul.f32 %v2331_v24, %v1435_v21 }
 0x1f8   :  { %v5720_v60 = vadd.f32 %v1178_v10, %v1090_v33  ;;  %v1958_v30 = vadd.f32 %v1830_v63, %v5698_v29  ;;  %1217 = vmatmul.bf16.gmra.mxu1 %v4921_v6  ;;  %v4120_v10 = vld [vmem:[#allocation9 + $0x80] sm:$0xff] }
 0x1f9   :  { %v4394_v48 = vpop.eup %4393  ;;  %v1575_v18 = vmul.f32 0.044715, %v5715_v22  ;;  %1306 = vmatmul.bf16.gmra.mxu2 %v4919_v5  ;;  %v2083_v0 = vmul.f32 0.7978846, %v1955_v9  ;;  %v4128_v63 = vld [vmem:[#allocation9 + $0xc0] sm:$0xff] }
 0x1fa   :  { %v1578_v36 = vmul.f32 0.044715, %v5720_v60  ;;  %1395 = vmatmul.bf16.gmra.mxu3 %v4921_v6  ;;  %v2335_v54 = vadd.f32 1.0, %v4394_v48  ;;  %v2086_v13 = vmul.f32 0.7978846, %v1958_v30  ;;  %v4396_v34 = vpop.eup %4395  ;;  %3105 = vmatpush.bf16.msra.mxu2 %v4120_v10 }
 0x1fb   :  { %v1703_v28 = vmul.f32 %v1575_v18, %v5715_v22  ;;  %3194 = vmatpush.bf16.msra.mxu3 %v4128_v63 }
 0x1fc   :  { %v1706_v47 = vmul.f32 %v1578_v36, %v5720_v60  ;;  %v1267_v33 = vpop.f32.mrf.mxu2  ;;  %v5735_v5 = vmul.f32 %v2335_v54, %v1439_v51  ;;  %4397 = vtanh.f32 %v2086_v13  ;;  %v2338_v54 = vadd.f32 1.0, %v4396_v34 }
 0x1fd   :  { %v1268_v6 = vadd.f32 %v1267_v33, %v5533_v32  ;;  %v1356_v44 = vpop.f32.mrf.mxu3  ;;  %v1091_v43 = vpop.f32.mrf.mxu0  ;;  %v1831_v30 = vmul.f32 %v1703_v28, %v5715_v22  ;;  %4399 = vtanh.f32 %v2083_v0 }
 0x1fe   :  { %v1092_v48 = vadd.f32 %v1091_v43, %v5506_v17  ;;  %v1180_v9 = vpop.f32.mrf.mxu1  ;;  %v1834_v24 = vmul.f32 %v1706_v47, %v5720_v60  ;;  %v1442_v43 = vmul.f32 0.5, %v5672_v35 }
 0x1ff   :  { %v5743_v21 = vadd.f32 %v1356_v44, %v1268_v6  ;;  %v1959_v36 = vadd.f32 %v1831_v30, %v5715_v22  ;;  %v4104_v44 = vld [vmem:[#allocation9] sm:$0xff]  ;;  %v1446_v30 = vmul.f32 0.5, %v5698_v29 }
 0x200   :  { %v5746_v51 = vadd.f32 %v1180_v9, %v1092_v48  ;;  %v1962_v13 = vadd.f32 %v1834_v24, %v5720_v60  ;;  %v4112_v6 = vld [vmem:[#allocation9 + $0x40] sm:$0xff]  ;;  %v5755_v9 = vmul.f32 %v2338_v54, %v1442_v43  ;;  %2927 = vmatpush.bf16.msra.mxu0 %v4104_v44 }
 0x201   :  { %v1579_v28 = vmul.f32 0.044715, %v5743_v21  ;;  %v2087_v33 = vmul.f32 0.7978846, %v1959_v36  ;;  %3016 = vmatpush.bf16.msra.mxu1 %v4112_v6 }
 0x202   :  { %v4398_v10 = vpop.eup %4397  ;;  %v1582_v63 = vmul.f32 0.044715, %v5746_v51  ;;  %v2090_v24 = vmul.f32 0.7978846, %v1962_v13 }
 0x203   :  { %v1707_v47 = vmul.f32 %v1579_v28, %v5743_v21  ;;  %v2342_v0 = vadd.f32 1.0, %v4398_v10  ;;  %4401 = vtanh.f32 %v2087_v33  ;;  %v4400_v36 = vpop.eup %4399 }
 0x204   :  { %v1710_v34 = vmul.f32 %v1582_v63, %v5746_v51  ;;  %v1269_v48 = vpop.f32.mrf.mxu2  ;;  %v2339_v44 = vadd.f32 1.0, %v4400_v36  ;;  %4403 = vtanh.f32 %v2090_v24 }
 0x205   :  { %v1270_v18 = vadd.f32 %v1269_v48, %v5533_v32  ;;  %v1358_v53 = vpop.f32.mrf.mxu3  ;;  %v1094_v8 = vpop.f32.mrf.mxu0  ;;  %v5758_v35 = vmul.f32 %v2342_v0, %v1446_v30  ;;  %v1835_v28 = vmul.f32 %v1707_v47, %v5743_v21  ;;  %v1447_v30 = vmul.f32 0.5, %v5715_v22 }
 0x206   :  { %v1095_v29 = vadd.f32 %v1094_v8, %v5506_v17  ;;  %v1183_v33 = vpop.f32.mrf.mxu1  ;;  %v1838_v10 = vmul.f32 %v1710_v34, %v5746_v51 }
 0x207   :  { %v5763_v63 = vadd.f32 %v1358_v53, %v1270_v18  ;;  %v1963_v13 = vadd.f32 %v1835_v28, %v5743_v21  ;;  %1133 = vmatmul.bf16.gmra.mxu0 %v4970_v40  ;;  %v1443_v53 = vmul.f32 0.5, %v5695_v15 }
 0x208   :  { %v5768_v43 = vadd.f32 %v1183_v33, %v1095_v29  ;;  %v1966_v6 = vadd.f32 %v1838_v10, %v5746_v51  ;;  %1222 = vmatmul.bf16.gmra.mxu1 %v4974_v20 }
 0x209   :  { %v4402_v47 = vpop.eup %4401  ;;  %v1583_v8 = vmul.f32 0.044715, %v5763_v63  ;;  %1311 = vmatmul.bf16.gmra.mxu2 %v4970_v40  ;;  %v2091_v24 = vmul.f32 0.7978846, %v1963_v13  ;;  %v5781_v29 = vmul.f32 %v2339_v44, %v1443_v53  ;;  %v1450_v13 = vmul.f32 0.5, %v5720_v60 }
 0x20a   :  { %v1586_v18 = vmul.f32 0.044715, %v5768_v43  ;;  %1400 = vmatmul.bf16.gmra.mxu3 %v4974_v20  ;;  %v2343_v0 = vadd.f32 1.0, %v4402_v47  ;;  %v2094_v34 = vmul.f32 0.7978846, %v1966_v6  ;;  %v4404_v22 = vpop.eup %4403 }
 0x20b   :  { %v1711_v48 = vmul.f32 %v1583_v8, %v5763_v63 }
 0x20c   :  { %v1714_v36 = vmul.f32 %v1586_v18, %v5768_v43  ;;  %v1272_v28 = vpop.f32.mrf.mxu2  ;;  %v5783_v33 = vmul.f32 %v2343_v0, %v1447_v30  ;;  %4405 = vtanh.f32 %v2094_v34  ;;  %v2346_v34 = vadd.f32 1.0, %v4404_v22 }
 0x20d   :  { %v1273_v40 = vadd.f32 %v1272_v28, %v5533_v32  ;;  %v1361_v15 = vpop.f32.mrf.mxu3  ;;  %v1096_v10 = vpop.f32.mrf.mxu0  ;;  %v1839_v20 = vmul.f32 %v1711_v48, %v5763_v63  ;;  %4407 = vtanh.f32 %v2091_v24 }
 0x20e   :  { %v1097_v6 = vadd.f32 %v1096_v10, %v5506_v17  ;;  %v1185_v47 = vpop.f32.mrf.mxu1  ;;  %v1842_v8 = vmul.f32 %v1714_v36, %v5768_v43  ;;  %v5804_v54 = vmul.f32 %v2346_v34, %v1450_v13 }
 0x20f   :  { %v5791_v44 = vadd.f32 %v1361_v15, %v1273_v40  ;;  %v1967_v53 = vadd.f32 %v1839_v20, %v5763_v63  ;;  %v1454_v40 = vmul.f32 0.5, %v5746_v51 }
 0x210   :  { %v5794_v18 = vadd.f32 %v1185_v47, %v1097_v6  ;;  %v1970_v30 = vadd.f32 %v1842_v8, %v5768_v43 }
 0x211   :  { %v1587_v0 = vmul.f32 0.044715, %v5791_v44  ;;  %v2095_v48 = vmul.f32 0.7978846, %v1967_v53 }
 0x212   :  { %v4406_v28 = vpop.eup %4405  ;;  %v1590_v10 = vmul.f32 0.044715, %v5794_v18  ;;  %v2098_v6 = vmul.f32 0.7978846, %v1970_v30 }
 0x213   :  { %v1715_v36 = vmul.f32 %v1587_v0, %v5791_v44  ;;  %v2350_v15 = vadd.f32 1.0, %v4406_v28  ;;  %4409 = vtanh.f32 %v2095_v48  ;;  %v4408_v47 = vpop.eup %4407 }
 0x214   :  { %v1718_v24 = vmul.f32 %v1590_v10, %v5794_v18  ;;  %v1274_v20 = vpop.f32.mrf.mxu2  ;;  %v2347_v13 = vadd.f32 1.0, %v4408_v47  ;;  %4411 = vtanh.f32 %v2098_v6 }
 0x215   :  { %v1275_v8 = vadd.f32 %v1274_v20, %v5533_v32  ;;  %v1363_v22 = vpop.f32.mrf.mxu3  ;;  %v1099_v53 = vpop.f32.mrf.mxu0  ;;  %v5806_v2 = vmul.f32 %v2350_v15, %v1454_v40  ;;  %v1843_v60 = vmul.f32 %v1715_v36, %v5791_v44  ;;  %v1451_v15 = vmul.f32 0.5, %v5743_v21 }
 0x216   :  { %v1100_v0 = vadd.f32 %v1099_v53, %v5506_v17  ;;  %v1188_v51 = vpop.f32.mrf.mxu1  ;;  %v1846_v48 = vmul.f32 %v1718_v24, %v5794_v18 }
 0x217   :  { %v5811_v28 = vadd.f32 %v1363_v22, %v1275_v8  ;;  %v1971_v10 = vadd.f32 %v1843_v60, %v5791_v44  ;;  %1138 = vmatmul.bf16.gmra.mxu0 %v5023_v14  ;;  %v1455_v8 = vmul.f32 0.5, %v5763_v63 }
 0x218   :  { %v5816_v20 = vadd.f32 %v1188_v51, %v1100_v0  ;;  %v1974_v34 = vadd.f32 %v1846_v48, %v5794_v18  ;;  %1227 = vmatmul.bf16.gmra.mxu1 %v5025_v45  ;;  %v5829_v51 = vmul.f32 %v2347_v13, %v1451_v15 }
 0x219   :  { %v4410_v36 = vpop.eup %4409  ;;  %v1591_v40 = vmul.f32 0.044715, %v5811_v28  ;;  %1316 = vmatmul.bf16.gmra.mxu2 %v5023_v14  ;;  %v2099_v6 = vmul.f32 0.7978846, %v1971_v10  ;;  %v1458_v10 = vmul.f32 0.5, %v5768_v43 }
 0x21a   :  { %v1594_v24 = vmul.f32 0.044715, %v5816_v20  ;;  %1405 = vmatmul.bf16.gmra.mxu3 %v5025_v45  ;;  %v2351_v22 = vadd.f32 1.0, %v4410_v36  ;;  %v2102_v47 = vmul.f32 0.7978846, %v1974_v34  ;;  %v4412_v63 = vpop.eup %4411 }
 0x21b   :  { %v1719_v53 = vmul.f32 %v1591_v40, %v5811_v28 }
 0x21c   :  { %v1722_v60 = vmul.f32 %v1594_v24, %v5816_v20  ;;  %v1277_v0 = vpop.f32.mrf.mxu2  ;;  %v5831_v48 = vmul.f32 %v2351_v22, %v1455_v8  ;;  %4413 = vtanh.f32 %v2102_v47  ;;  %v2354_v47 = vadd.f32 1.0, %v4412_v63 }
 0x21d   :  { %v1278_v14 = vadd.f32 %v1277_v0, %v5533_v32  ;;  %v1366_v21 = vpop.f32.mrf.mxu3  ;;  %v1101_v30 = vpop.f32.mrf.mxu0  ;;  %v1847_v45 = vmul.f32 %v1719_v53, %v5811_v28  ;;  %4415 = vtanh.f32 %v2099_v6 }
 0x21e   :  { %v1102_v34 = vadd.f32 %v1101_v30, %v5506_v17  ;;  %v1190_v36 = vpop.f32.mrf.mxu1  ;;  %v1850_v40 = vmul.f32 %v1722_v60, %v5816_v20  ;;  %v5852_v3 = vmul.f32 %v2354_v47, %v1458_v10 }
 0x21f   :  { %v5839_v13 = vadd.f32 %v1366_v21, %v1278_v14  ;;  %v1975_v15 = vadd.f32 %v1847_v45, %v5811_v28  ;;  %v1462_v14 = vmul.f32 0.5, %v5794_v18 }
 0x220   :  { %v5842_v24 = vadd.f32 %v1190_v36, %v1102_v34  ;;  %v1978_v8 = vadd.f32 %v1850_v40, %v5816_v20 }
 0x221   :  { %v1595_v22 = vmul.f32 0.044715, %v5839_v13  ;;  %v2103_v53 = vmul.f32 0.7978846, %v1975_v15 }
 0x222   :  { %v4414_v30 = vpop.eup %4413  ;;  %v1598_v0 = vmul.f32 0.044715, %v5842_v24  ;;  %v2106_v34 = vmul.f32 0.7978846, %v1978_v8 }
 0x223   :  { %v1723_v60 = vmul.f32 %v1595_v22, %v5839_v13  ;;  %v2358_v21 = vadd.f32 1.0, %v4414_v30  ;;  %4417 = vtanh.f32 %v2103_v53  ;;  %v4416_v36 = vpop.eup %4415 }
 0x224   :  { %v1726_v6 = vmul.f32 %v1598_v0, %v5842_v24  ;;  %v1279_v45 = vpop.f32.mrf.mxu2  ;;  %v2355_v10 = vadd.f32 1.0, %v4416_v36  ;;  %4419 = vtanh.f32 %v2106_v34 }
 0x225   :  { %v1280_v40 = vadd.f32 %v1279_v45, %v5533_v32  ;;  %v1368_v63 = vpop.f32.mrf.mxu3  ;;  %v1104_v15 = vpop.f32.mrf.mxu0  ;;  %v5854_v62 = vmul.f32 %v2358_v21, %v1462_v14  ;;  %v1851_v43 = vmul.f32 %v1723_v60, %v5839_v13  ;;  %v1459_v21 = vmul.f32 0.5, %v5791_v44 }
 0x226   :  { %v1105_v22 = vadd.f32 %v1104_v15, %v5506_v17  ;;  %v1193_v18 = vpop.f32.mrf.mxu1  ;;  %v1854_v53 = vmul.f32 %v1726_v6, %v5842_v24 }
 0x227   :  { %v5859_v30 = vadd.f32 %v1368_v63, %v1280_v40  ;;  %v1979_v0 = vadd.f32 %v1851_v43, %v5839_v13  ;;  %1143 = vmatmul.bf16.gmra.mxu0 %v5071_v39  ;;  %v1463_v40 = vmul.f32 0.5, %v5811_v28 }
 0x228   :  { %v5864_v45 = vadd.f32 %v1193_v18, %v1105_v22  ;;  %v1982_v47 = vadd.f32 %v1854_v53, %v5842_v24  ;;  %1232 = vmatmul.bf16.gmra.mxu1 %v5077_v49  ;;  %v5877_v18 = vmul.f32 %v2355_v10, %v1459_v21 }
 0x229   :  { %v4418_v60 = vpop.eup %4417  ;;  %v1599_v14 = vmul.f32 0.044715, %v5859_v30  ;;  %1321 = vmatmul.bf16.gmra.mxu2 %v5071_v39  ;;  %v2107_v34 = vmul.f32 0.7978846, %v1979_v0  ;;  %v1466_v0 = vmul.f32 0.5, %v5816_v20 }
 0x22a   :  { %v1602_v6 = vmul.f32 0.044715, %v5864_v45  ;;  %1410 = vmatmul.bf16.gmra.mxu3 %v5077_v49  ;;  %v2359_v63 = vadd.f32 1.0, %v4418_v60  ;;  %v2110_v36 = vmul.f32 0.7978846, %v1982_v47  ;;  %v4420_v28 = vpop.eup %4419 }
 0x22b   :  { %v1727_v15 = vmul.f32 %v1599_v14, %v5859_v30 }
 0x22c   :  { %v1730_v43 = vmul.f32 %v1602_v6, %v5864_v45  ;;  %v1282_v22 = vpop.f32.mrf.mxu2  ;;  %v5879_v53 = vmul.f32 %v2359_v63, %v1463_v40  ;;  %4421 = vtanh.f32 %v2110_v36  ;;  %v2362_v36 = vadd.f32 1.0, %v4420_v28 }
 0x22d   :  { %v1283_v39 = vadd.f32 %v1282_v22, %v5533_v32  ;;  %v1371_v44 = vpop.f32.mrf.mxu3  ;;  %v1106_v8 = vpop.f32.mrf.mxu0  ;;  %v1855_v49 = vmul.f32 %v1727_v15, %v5859_v30  ;;  %4423 = vtanh.f32 %v2107_v34 }
 0x22e   :  { %v1107_v47 = vadd.f32 %v1106_v8, %v5506_v17  ;;  %v1195_v60 = vpop.f32.mrf.mxu1  ;;  %v1858_v14 = vmul.f32 %v1730_v43, %v5864_v45  ;;  %v5900_v19 = vmul.f32 %v2362_v36, %v1466_v0  ;;  %v6623_v0 = vpack.c.bf16 %v4822_v42, %v4819_v37 }
 0x22f   :  { %v5887_v10 = vadd.f32 %v1371_v44, %v1283_v39  ;;  %v1983_v21 = vadd.f32 %v1855_v49, %v5859_v30  ;;  %v1470_v39 = vmul.f32 0.5, %v5842_v24  ;;  %v6628_v42 = vpack.c.bf16 %v5639_v26, %v5637_v25 }
 0x230   :  { %v5890_v6 = vadd.f32 %v1195_v60, %v1107_v47  ;;  %v1986_v40 = vadd.f32 %v1858_v14, %v5864_v45 }
 0x231   :  { %v1603_v63 = vmul.f32 0.044715, %v5887_v10  ;;  %v2111_v15 = vmul.f32 0.7978846, %v1983_v21 }
 0x232   :  { %v4422_v8 = vpop.eup %4421  ;;  %v1606_v22 = vmul.f32 0.044715, %v5890_v6  ;;  %v2114_v47 = vmul.f32 0.7978846, %v1986_v40 }
 0x233   :  { %v1731_v43 = vmul.f32 %v1603_v63, %v5887_v10  ;;  %v2366_v44 = vadd.f32 1.0, %v4422_v8  ;;  %4425 = vtanh.f32 %v2111_v15  ;;  %v4424_v60 = vpop.eup %4423 }
 0x234   :  { %v1734_v34 = vmul.f32 %v1606_v22, %v5890_v6  ;;  %v1284_v49 = vpop.f32.mrf.mxu2  ;;  %v2363_v36 = vadd.f32 1.0, %v4424_v60  ;;  %4427 = vtanh.f32 %v2114_v47  ;;  %v1471_v47 = vmul.f32 0.5, %v5859_v30 }
 0x235   :  { %v1285_v14 = vadd.f32 %v1284_v49, %v5533_v32  ;;  %v1373_v28 = vpop.f32.mrf.mxu3  ;;  %v1109_v21 = vpop.f32.mrf.mxu0  ;;  %v5902_v16 = vmul.f32 %v2366_v44, %v1470_v39  ;;  %v1859_v20 = vmul.f32 %v1731_v43, %v5887_v10 }
 0x236   :  { %v1110_v63 = vadd.f32 %v1109_v21, %v5506_v17  ;;  %v1198_v24 = vpop.f32.mrf.mxu1  ;;  %v1862_v15 = vmul.f32 %v1734_v34, %v5890_v6  ;;  %v6624_v34 = vld [vmem:[#allocation17_spill] sm:$0xff]  ;;  %v6627_v21 = vpack.c.bf16 %v5614_v58, %v5612_v38 }
 0x237   :  { %v5907_v8 = vadd.f32 %v1373_v28, %v1285_v14  ;;  %v2594_v40 = vpack.c.bf16 %v5902_v16, %v5900_v19  ;;  %v1987_v22 = vadd.f32 %v1859_v20, %v5887_v10  ;;  %2928 = vmatmul.bf16.vlgmr.msra.gmra.mxu0 %v6623_v0  ;;  %v6625_v14 = vld [vmem:[#allocation16_spill] sm:$0xff]  ;;  %v1467_v20 = vmul.f32 0.5, %v5839_v13 }
 0x238   :  { %v5912_v49 = vadd.f32 %v1198_v24, %v1110_v63  ;;  %v1990_v43 = vadd.f32 %v1862_v15, %v5890_v6  ;;  %v6626_v28 = vpack.c.bf16 %v6624_v34, %v6625_v14 }
 0x239   :  { %v4426_v39 = vpop.eup %4425  ;;  %v1607_v44 = vmul.f32 0.044715, %v5907_v8  ;;  %3106 = vmatmul.bf16.vlgmr.msra.gmra.mxu2 %v6627_v21  ;;  %v2115_v15 = vmul.f32 0.7978846, %v1987_v22  ;;  %v5933_v38 = vmul.f32 %v2363_v36, %v1467_v20 }
 0x23a   :  { %3017 = vmatmul.bf16.vlgmr.msra.gmra.mxu1 %v6626_v28  ;;  %v1610_v37 = vmul.f32 0.044715, %v5912_v49  ;;  %3195 = vmatmul.bf16.vlgmr.msra.gmra.mxu3 %v6628_v42  ;;  %v2367_v60 = vadd.f32 1.0, %v4426_v39  ;;  %v2118_v63 = vmul.f32 0.7978846, %v1990_v43  ;;  %v4428_v30 = vpop.eup %4427 }
 0x23b   :  { %v1735_v24 = vmul.f32 %v1607_v44, %v5907_v8  ;;  %v2370_v42 = vadd.f32 1.0, %v4428_v30 }
 0x23c   :  { %v1738_v0 = vmul.f32 %v1610_v37, %v5912_v49  ;;  %v1287_v34 = vpop.f32.mrf.mxu2  ;;  %v5935_v58 = vmul.f32 %v2367_v60, %v1471_v47  ;;  %4429 = vtanh.f32 %v2118_v63 }
 0x23d   :  { %v1288_v13 = vadd.f32 %v1287_v34, %v5533_v32  ;;  %v1376_v14 = vpop.f32.mrf.mxu3  ;;  %v1111_v26 = vpop.f32.mrf.mxu0  ;;  %v1863_v25 = vmul.f32 %v1735_v24, %v5907_v8  ;;  %4431 = vtanh.f32 %v2115_v15  ;;  %v1474_v24 = vmul.f32 0.5, %v5864_v45 }
 0x23e   :  { %v1112_v43 = vadd.f32 %v1111_v26, %v5506_v17  ;;  %v1200_v39 = vpop.f32.mrf.mxu1  ;;  %v1866_v44 = vmul.f32 %v1738_v0, %v5912_v49  ;;  %v1478_v34 = vmul.f32 0.5, %v5890_v6 }
 0x23f   :  { %v5943_v36 = vadd.f32 %v1376_v14, %v1288_v13  ;;  %v1991_v28 = vadd.f32 %v1863_v25, %v5907_v8 }
 0x240   :  { %v5946_v21 = vadd.f32 %v1200_v39, %v1112_v43  ;;  %v1994_v20 = vadd.f32 %v1866_v44, %v5912_v49  ;;  %v5956_v44 = vmul.f32 %v2370_v42, %v1474_v24  ;;  %v6629_v42 = vld [vmem:[#allocation19_spill] sm:$0xff]  ;;  %v6630_v24 = vld [vmem:[#allocation18_spill] sm:$0xff] }
 0x241   :  { %v1611_v37 = vmul.f32 0.044715, %v5943_v36  ;;  %v2119_v47 = vmul.f32 0.7978846, %v1991_v28 }
 0x242   :  { %v4430_v60 = vpop.eup %4429  ;;  %v1614_v63 = vmul.f32 0.044715, %v5946_v21  ;;  %v2122_v26 = vmul.f32 0.7978846, %v1994_v20 }
 0x243   :  { %v1739_v0 = vmul.f32 %v1611_v37, %v5943_v36  ;;  %v2374_v13 = vadd.f32 1.0, %v4430_v60  ;;  %4433 = vtanh.f32 %v2119_v47  ;;  %v4432_v25 = vpop.eup %4431 }
 0x244   :  { %v1742_v15 = vmul.f32 %v1614_v63, %v5946_v21  ;;  %v1289_v14 = vpop.f32.mrf.mxu2  ;;  %4435 = vtanh.f32 %v2122_v26  ;;  %v1479_v26 = vmul.f32 0.5, %v5907_v8 }
 0x245   :  { %v1290_v43 = vadd.f32 %v1289_v14, %v5533_v32  ;;  %v1378_v30 = vpop.f32.mrf.mxu3  ;;  %v1114_v39 = vpop.f32.mrf.mxu0  ;;  %v5958_v28 = vmul.f32 %v2374_v13, %v1478_v34  ;;  %v1867_v45 = vmul.f32 %v1739_v0, %v5943_v36  ;;  %v6631_v34 = vpack.c.bf16 %v6629_v42, %v6630_v24 }
 0x246   :  { %v1115_v37 = vadd.f32 %v1114_v39, %v5506_v17  ;;  %v1203_v6 = vpop.f32.mrf.mxu1  ;;  %v1870_v47 = vmul.f32 %v1742_v15, %v5946_v21  ;;  %v2371_v13 = vadd.f32 1.0, %v4432_v25  ;;  %v6636_v25 = vpack.c.bf16 %v5687_v1, %v5685_v57 }
 0x247   :  { %v5963_v60 = vadd.f32 %v1378_v30, %v1290_v43  ;;  %v1995_v63 = vadd.f32 %v1867_v45, %v5943_v36  ;;  %2933 = vmatmul.bf16.gmra.mxu0 %v6631_v34  ;;  %v6632_v43 = vld [vmem:[#allocation21_spill] sm:$0xff]  ;;  %v6633_v30 = vld [vmem:[#allocation20_spill] sm:$0xff]  ;;  %v6635_v45 = vpack.c.bf16 %v5662_v7, %v5659_v59 }
 0x248   :  { %v5968_v14 = vadd.f32 %v1203_v6, %v1115_v37  ;;  %v1998_v0 = vadd.f32 %v1870_v47, %v5946_v21  ;;  %v6634_v22 = vpack.c.bf16 %v6632_v43, %v6633_v30  ;;  %v1475_v37 = vmul.f32 0.5, %v5887_v10 }
 0x249   :  { %v4434_v39 = vpop.eup %4433  ;;  %v1615_v15 = vmul.f32 0.044715, %v5963_v60  ;;  %3111 = vmatmul.bf16.gmra.mxu2 %v6635_v45  ;;  %v2123_v34 = vmul.f32 0.7978846, %v1995_v63 }
 0x24a   :  { %3022 = vmatmul.bf16.gmra.mxu1 %v6634_v22  ;;  %v1618_v6 = vmul.f32 0.044715, %v5968_v14  ;;  %3200 = vmatmul.bf16.gmra.mxu3 %v6636_v25  ;;  %v2375_v47 = vadd.f32 1.0, %v4434_v39  ;;  %v2126_v42 = vmul.f32 0.7978846, %v1998_v0  ;;  %v5989_v59 = vmul.f32 %v2371_v13, %v1475_v37  ;;  %v4436_v8 = vpop.eup %4435 }
 0x24b   :  { %v1743_v24 = vmul.f32 %v1615_v15, %v5963_v60 }
 0x24c   :  { %v1746_v22 = vmul.f32 %v1618_v6, %v5968_v14  ;;  %v1292_v43 = vpop.f32.mrf.mxu2  ;;  %v5991_v7 = vmul.f32 %v2375_v47, %v1479_v26  ;;  %4437 = vtanh.f32 %v2126_v42  ;;  %v2378_v26 = vadd.f32 1.0, %v4436_v8 }
 0x24d   :  { %v1293_v10 = vadd.f32 %v1292_v43, %v5533_v32  ;;  %v1381_v30 = vpop.f32.mrf.mxu3  ;;  %v1116_v57 = vpop.f32.mrf.mxu0  ;;  %v1871_v1 = vmul.f32 %v1743_v24, %v5963_v60  ;;  %4439 = vtanh.f32 %v2123_v34  ;;  %v1482_v43 = vmul.f32 0.5, %v5912_v49 }
 0x24e   :  { %v1117_v0 = vadd.f32 %v1116_v57, %v5506_v17  ;;  %v1205_v39 = vpop.f32.mrf.mxu1  ;;  %v1874_v15 = vmul.f32 %v1746_v22, %v5968_v14 }
 0x24f   :  { %v5999_v13 = vadd.f32 %v1381_v30, %v1293_v10  ;;  %v1999_v45 = vadd.f32 %v1871_v1, %v5963_v60  ;;  %v1486_v10 = vmul.f32 0.5, %v5946_v21 }
 0x250   :  { %v6002_v37 = vadd.f32 %v1205_v39, %v1117_v0  ;;  %v2002_v6 = vadd.f32 %v1874_v15, %v5968_v14 }
 0x251   :  { %v1619_v25 = vmul.f32 0.044715, %v5999_v13  ;;  %v2127_v47 = vmul.f32 0.7978846, %v1999_v45  ;;  %v6012_v45 = vmul.f32 %v2378_v26, %v1482_v43  ;;  %v6637_v26 = vld [vmem:[#allocation23_spill] sm:$0xff]  ;;  %v6638_v43 = vld [vmem:[#allocation22_spill] sm:$0xff] }
 0x252   :  { %v4438_v42 = vpop.eup %4437  ;;  %v1622_v24 = vmul.f32 0.044715, %v6002_v37  ;;  %v2130_v1 = vmul.f32 0.7978846, %v2002_v6 }
 0x253   :  { %v1747_v22 = vmul.f32 %v1619_v25, %v5999_v13  ;;  %v2382_v30 = vadd.f32 1.0, %v4438_v42  ;;  %4441 = vtanh.f32 %v2127_v47  ;;  %v4440_v0 = vpop.eup %4439 }
 0x254   :  { %v1750_v34 = vmul.f32 %v1622_v24, %v6002_v37  ;;  %v1294_v57 = vpop.f32.mrf.mxu2  ;;  %4443 = vtanh.f32 %v2130_v1  ;;  %v1487_v1 = vmul.f32 0.5, %v5963_v60 }
 0x255   :  { %v1295_v39 = vadd.f32 %v1294_v57, %v5533_v32  ;;  %v1383_v8 = vpop.f32.mrf.mxu3  ;;  %v1119_v15 = vpop.f32.mrf.mxu0  ;;  %v6014_v63 = vmul.f32 %v2382_v30, %v1486_v10  ;;  %v1875_v49 = vmul.f32 %v1747_v22, %v5999_v13  ;;  %v6639_v10 = vpack.c.bf16 %v6637_v26, %v6638_v43 }
 0x256   :  { %v1120_v25 = vadd.f32 %v1119_v15, %v5506_v17  ;;  %v1208_v21 = vpop.f32.mrf.mxu1  ;;  %v1878_v47 = vmul.f32 %v1750_v34, %v6002_v37  ;;  %v2379_v30 = vadd.f32 1.0, %v4440_v0  ;;  %v6644_v0 = vpack.c.bf16 %v5735_v5, %v5733_v23 }
 0x257   :  { %v6019_v42 = vadd.f32 %v1383_v8, %v1295_v39  ;;  %v2003_v24 = vadd.f32 %v1875_v49, %v5999_v13  ;;  %2938 = vmatmul.bf16.gmra.mxu0 %v6639_v10  ;;  %v6640_v39 = vld [vmem:[#allocation25_spill] sm:$0xff]  ;;  %v6641_v8 = vld [vmem:[#allocation24_spill] sm:$0xff]  ;;  %v6643_v49 = vpack.c.bf16 %v5710_v27, %v5708_v52 }
 0x258   :  { %v6024_v57 = vadd.f32 %v1208_v21, %v1120_v25  ;;  %v2006_v22 = vadd.f32 %v1878_v47, %v6002_v37  ;;  %v6642_v20 = vpack.c.bf16 %v6640_v39, %v6641_v8  ;;  %v1483_v25 = vmul.f32 0.5, %v5943_v36 }
 0x259   :  { %v4442_v15 = vpop.eup %4441  ;;  %v1623_v34 = vmul.f32 0.044715, %v6019_v42  ;;  %3116 = vmatmul.bf16.gmra.mxu2 %v6643_v49  ;;  %v2131_v10 = vmul.f32 0.7978846, %v2003_v24 }
 0x25a   :  { %3027 = vmatmul.bf16.gmra.mxu1 %v6642_v20  ;;  %v1626_v21 = vmul.f32 0.044715, %v6024_v57  ;;  %3205 = vmatmul.bf16.gmra.mxu3 %v6644_v0  ;;  %v2383_v47 = vadd.f32 1.0, %v4442_v15  ;;  %v2134_v26 = vmul.f32 0.7978846, %v2006_v22  ;;  %v6045_v27 = vmul.f32 %v2379_v30, %v1483_v25  ;;  %v4444_v60 = vpop.eup %4443 }
 0x25b   :  { %v1751_v43 = vmul.f32 %v1623_v34, %v6019_v42 }
 0x25c   :  { %v1754_v20 = vmul.f32 %v1626_v21, %v6024_v57  ;;  %v1297_v39 = vpop.f32.mrf.mxu2  ;;  %v6047_v52 = vmul.f32 %v2383_v47, %v1487_v1  ;;  %4445 = vtanh.f32 %v2134_v26  ;;  %v2386_v1 = vadd.f32 1.0, %v4444_v60 }
 0x25d   :  { %v1298_v36 = vadd.f32 %v1297_v39, %v5533_v32  ;;  %v1386_v8 = vpop.f32.mrf.mxu3  ;;  %v1121_v23 = vpop.f32.mrf.mxu0  ;;  %v1879_v5 = vmul.f32 %v1751_v43, %v6019_v42  ;;  %4447 = vtanh.f32 %v2131_v10  ;;  %v1490_v39 = vmul.f32 0.5, %v5968_v14 }
 0x25e   :  { %v1122_v22 = vadd.f32 %v1121_v23, %v5506_v17  ;;  %v1210_v15 = vpop.f32.mrf.mxu1  ;;  %v1882_v34 = vmul.f32 %v1754_v20, %v6024_v57 }
 0x25f   :  { %v6055_v30 = vadd.f32 %v1386_v8, %v1298_v36  ;;  %v2007_v49 = vadd.f32 %v1879_v5, %v6019_v42  ;;  %v1494_v36 = vmul.f32 0.5, %v6002_v37 }
 0x260   :  { %v6058_v25 = vadd.f32 %v1210_v15, %v1122_v22  ;;  %v2010_v21 = vadd.f32 %v1882_v34, %v6024_v57 }
 0x261   :  { %v1627_v0 = vmul.f32 0.044715, %v6055_v30  ;;  %v2135_v47 = vmul.f32 0.7978846, %v2007_v49  ;;  %v6068_v49 = vmul.f32 %v2386_v1, %v1490_v39  ;;  %v6645_v1 = vld [vmem:[#allocation27_spill] sm:$0xff]  ;;  %v6646_v39 = vld [vmem:[#allocation26_spill] sm:$0xff] }
 0x262   :  { %v4446_v26 = vpop.eup %4445  ;;  %v1630_v43 = vmul.f32 0.044715, %v6058_v25  ;;  %v2138_v5 = vmul.f32 0.7978846, %v2010_v21 }
 0x263   :  { %v1755_v20 = vmul.f32 %v1627_v0, %v6055_v30  ;;  %v2390_v8 = vadd.f32 1.0, %v4446_v26  ;;  %4449 = vtanh.f32 %v2135_v47  ;;  %v4448_v22 = vpop.eup %4447 }
 0x264   :  { %v1758_v10 = vmul.f32 %v1630_v43, %v6058_v25  ;;  %v1299_v23 = vpop.f32.mrf.mxu2  ;;  %4451 = vtanh.f32 %v2138_v5  ;;  %v1495_v5 = vmul.f32 0.5, %v6019_v42 }
 0x265   :  { %v1300_v15 = vadd.f32 %v1299_v23, %v5533_v32  ;;  %v1388_v60 = vpop.f32.mrf.mxu3  ;;  %v1124_v34 = vpop.f32.mrf.mxu0  ;;  %v6070_v24 = vmul.f32 %v2390_v8, %v1494_v36  ;;  %v1883_v14 = vmul.f32 %v1755_v20, %v6055_v30  ;;  %v6647_v36 = vpack.c.bf16 %v6645_v1, %v6646_v39 }
 0x266   :  { %v1125_v0 = vadd.f32 %v1124_v34, %v5506_v17  ;;  %v1213_v37 = vpop.f32.mrf.mxu1  ;;  %v1886_v47 = vmul.f32 %v1758_v10, %v6058_v25  ;;  %v2387_v8 = vadd.f32 1.0, %v4448_v22  ;;  %v6652_v22 = vpack.c.bf16 %v5783_v33, %v5781_v29 }
 0x267   :  { %v6075_v26 = vadd.f32 %v1388_v60, %v1300_v15  ;;  %v2011_v43 = vadd.f32 %v1883_v14, %v6055_v30  ;;  %2943 = vmatmul.bf16.gmra.mxu0 %v6647_v36  ;;  %v6648_v15 = vld [vmem:[#allocation29_spill] sm:$0xff]  ;;  %v6649_v60 = vld [vmem:[#allocation28_spill] sm:$0xff]  ;;  %v6651_v14 = vpack.c.bf16 %v5758_v35, %v5755_v9 }
 0x268   :  { %v6080_v23 = vadd.f32 %v1213_v37, %v1125_v0  ;;  %v2014_v20 = vadd.f32 %v1886_v47, %v6058_v25  ;;  %v6650_v6 = vpack.c.bf16 %v6648_v15, %v6649_v60  ;;  %v1491_v0 = vmul.f32 0.5, %v5999_v13 }
 0x269   :  { %v4450_v34 = vpop.eup %4449  ;;  %v1631_v10 = vmul.f32 0.044715, %v6075_v26  ;;  %3121 = vmatmul.bf16.gmra.mxu2 %v6651_v14  ;;  %v2139_v36 = vmul.f32 0.7978846, %v2011_v43 }
 0x26a   :  { %3032 = vmatmul.bf16.gmra.mxu1 %v6650_v6  ;;  %v1634_v37 = vmul.f32 0.044715, %v6080_v23  ;;  %3210 = vmatmul.bf16.gmra.mxu3 %v6652_v22  ;;  %v2391_v47 = vadd.f32 1.0, %v4450_v34  ;;  %v2142_v1 = vmul.f32 0.7978846, %v2014_v20  ;;  %v6101_v9 = vmul.f32 %v2387_v8, %v1491_v0  ;;  %v4452_v42 = vpop.eup %4451 }
 0x26b   :  { %v1759_v39 = vmul.f32 %v1631_v10, %v6075_v26 }
 0x26c   :  { %v1762_v6 = vmul.f32 %v1634_v37, %v6080_v23  ;;  %v1302_v15 = vpop.f32.mrf.mxu2  ;;  %v6103_v35 = vmul.f32 %v2391_v47, %v1495_v5  ;;  %4453 = vtanh.f32 %v2142_v1  ;;  %v2394_v5 = vadd.f32 1.0, %v4452_v42 }
 0x26d   :  { %v1303_v13 = vadd.f32 %v1302_v15, %v5533_v32  ;;  %v1391_v60 = vpop.f32.mrf.mxu3  ;;  %v1126_v29 = vpop.f32.mrf.mxu0  ;;  %v1887_v33 = vmul.f32 %v1759_v39, %v6075_v26  ;;  %4455 = vtanh.f32 %v2139_v36  ;;  %v1498_v15 = vmul.f32 0.5, %v6024_v57 }
 0x26e   :  { %v1127_v20 = vadd.f32 %v1126_v29, %v5506_v17  ;;  %v1215_v34 = vpop.f32.mrf.mxu1  ;;  %v1890_v10 = vmul.f32 %v1762_v6, %v6080_v23 }
 0x26f   :  { %v6111_v8 = vadd.f32 %v1391_v60, %v1303_v13  ;;  %v2015_v14 = vadd.f32 %v1887_v33, %v6075_v26  ;;  %v1502_v13 = vmul.f32 0.5, %v6058_v25 }
 0x270   :  { %v6114_v0 = vadd.f32 %v1215_v34, %v1127_v20  ;;  %v2018_v37 = vadd.f32 %v1890_v10, %v6080_v23 }
 0x271   :  { %v1635_v22 = vmul.f32 0.044715, %v6111_v8  ;;  %v2143_v47 = vmul.f32 0.7978846, %v2015_v14  ;;  %v6124_v14 = vmul.f32 %v2394_v5, %v1498_v15  ;;  %v6653_v5 = vld [vmem:[#allocation31_spill] sm:$0xff]  ;;  %v6654_v15 = vld [vmem:[#allocation30_spill] sm:$0xff] }
 0x272   :  { %v4454_v1 = vpop.eup %4453  ;;  %v1638_v39 = vmul.f32 0.044715, %v6114_v0  ;;  %v2146_v33 = vmul.f32 0.7978846, %v2018_v37 }
 0x273   :  { %v1763_v6 = vmul.f32 %v1635_v22, %v6111_v8  ;;  %v2398_v60 = vadd.f32 1.0, %v4454_v1  ;;  %4457 = vtanh.f32 %v2143_v47  ;;  %v4456_v20 = vpop.eup %4455 }
 0x274   :  { %v1766_v36 = vmul.f32 %v1638_v39, %v6114_v0  ;;  %v1304_v29 = vpop.f32.mrf.mxu2  ;;  %4459 = vtanh.f32 %v2146_v33  ;;  %v1503_v33 = vmul.f32 0.5, %v6075_v26 }
 0x275   :  { %v1305_v34 = vadd.f32 %v1304_v29, %v5533_v32  ;;  %v1393_v42 = vpop.f32.mrf.mxu3  ;;  %v1129_v10 = vpop.f32.mrf.mxu0  ;;  %v6126_v43 = vmul.f32 %v2398_v60, %v1502_v13  ;;  %v1891_v57 = vmul.f32 %v1763_v6, %v6111_v8  ;;  %v6655_v13 = vpack.c.bf16 %v6653_v5, %v6654_v15 }
 0x276   :  { %v1130_v22 = vadd.f32 %v1129_v10, %v5506_v17  ;;  %v1218_v25 = vpop.f32.mrf.mxu1  ;;  %v1894_v47 = vmul.f32 %v1766_v36, %v6114_v0  ;;  %v2395_v60 = vadd.f32 1.0, %v4456_v20  ;;  %v6660_v20 = vpack.c.bf16 %v5831_v48, %v5829_v51 }
 0x277   :  { %v6131_v1 = vadd.f32 %v1393_v42, %v1305_v34  ;;  %v2610_v37 = vpack.c.bf16 %v6126_v43, %v6124_v14  ;;  %v2019_v39 = vadd.f32 %v1891_v57, %v6111_v8  ;;  %2948 = vmatmul.bf16.gmra.mxu0 %v6655_v13  ;;  %v6656_v34 = vld [vmem:[#allocation33_spill] sm:$0xff]  ;;  %v6657_v42 = vld [vmem:[#allocation32_spill] sm:$0xff]  ;;  %v6659_v57 = vpack.c.bf16 %v5806_v2, %v5804_v54 }
 0x278   :  { %v6136_v29 = vadd.f32 %v1218_v25, %v1130_v22  ;;  %v2022_v6 = vadd.f32 %v1894_v47, %v6114_v0  ;;  %v6658_v21 = vpack.c.bf16 %v6656_v34, %v6657_v42  ;;  %v1499_v22 = vmul.f32 0.5, %v6055_v30 }
 0x279   :  { %v4458_v10 = vpop.eup %4457  ;;  %v1639_v36 = vmul.f32 0.044715, %v6131_v1  ;;  %3126 = vmatmul.bf16.gmra.mxu2 %v6659_v57  ;;  %v2147_v13 = vmul.f32 0.7978846, %v2019_v39 }
 0x27a   :  { %3037 = vmatmul.bf16.gmra.mxu1 %v6658_v21  ;;  %v1642_v25 = vmul.f32 0.044715, %v6136_v29  ;;  %3215 = vmatmul.bf16.gmra.mxu3 %v6660_v20  ;;  %v2399_v47 = vadd.f32 1.0, %v4458_v10  ;;  %v2150_v5 = vmul.f32 0.7978846, %v2022_v6  ;;  %v6157_v2 = vmul.f32 %v2395_v60, %v1499_v22  ;;  %v4460_v26 = vpop.eup %4459 }
 0x27b   :  { %v1767_v15 = vmul.f32 %v1639_v36, %v6131_v1 }
 0x27c   :  { %v1770_v21 = vmul.f32 %v1642_v25, %v6136_v29  ;;  %v1307_v34 = vpop.f32.mrf.mxu2  ;;  %v6159_v54 = vmul.f32 %v2399_v47, %v1503_v33  ;;  %4461 = vtanh.f32 %v2150_v5  ;;  %v2402_v33 = vadd.f32 1.0, %v4460_v26 }
 0x27d   :  { %v1308_v30 = vadd.f32 %v1307_v34, %v5533_v32  ;;  %v1396_v42 = vpop.f32.mrf.mxu3  ;;  %v1131_v51 = vpop.f32.mrf.mxu0  ;;  %v1895_v48 = vmul.f32 %v1767_v15, %v6131_v1  ;;  %4463 = vtanh.f32 %v2147_v13  ;;  %v1506_v34 = vmul.f32 0.5, %v6080_v23 }
 0x27e   :  { %v1132_v6 = vadd.f32 %v1131_v51, %v5506_v17  ;;  %v1220_v10 = vpop.f32.mrf.mxu1  ;;  %v1898_v36 = vmul.f32 %v1770_v21, %v6136_v29 }
 0x27f   :  { %v6167_v60 = vadd.f32 %v1396_v42, %v1308_v30  ;;  %v2023_v57 = vadd.f32 %v1895_v48, %v6131_v1  ;;  %v1510_v30 = vmul.f32 0.5, %v6114_v0 }
 0x280   :  { %v6170_v22 = vadd.f32 %v1220_v10, %v1132_v6  ;;  %v2026_v25 = vadd.f32 %v1898_v36, %v6136_v29 }
 0x281   :  { %v1643_v20 = vmul.f32 0.044715, %v6167_v60  ;;  %v2151_v47 = vmul.f32 0.7978846, %v2023_v57  ;;  %v6180_v57 = vmul.f32 %v2402_v33, %v1506_v34  ;;  %v6661_v33 = vpack.c.bf16 %v5082_v56, %v5079_v12 }
 0x282   :  { %v4462_v5 = vpop.eup %4461  ;;  %v1646_v15 = vmul.f32 0.044715, %v6170_v22  ;;  %v2154_v48 = vmul.f32 0.7978846, %v2026_v25  ;;  %v6666_v56 = vpack.c.bf16 %v5879_v53, %v5877_v18 }
 0x283   :  { %v1771_v21 = vmul.f32 %v1643_v20, %v6167_v60  ;;  %v2406_v42 = vadd.f32 1.0, %v4462_v5  ;;  %4465 = vtanh.f32 %v2151_v47  ;;  %v4464_v6 = vpop.eup %4463 }
 0x284   :  { %v1774_v13 = vmul.f32 %v1646_v15, %v6170_v22  ;;  %v1309_v51 = vpop.f32.mrf.mxu2  ;;  %v2403_v34 = vadd.f32 1.0, %v4464_v6  ;;  %4467 = vtanh.f32 %v2154_v48  ;;  %v1511_v48 = vmul.f32 0.5, %v6131_v1 }
 0x285   :  { %v1310_v10 = vadd.f32 %v1309_v51, %v5533_v32  ;;  %v1398_v26 = vpop.f32.mrf.mxu3  ;;  %v1134_v36 = vpop.f32.mrf.mxu0  ;;  %v6182_v39 = vmul.f32 %v2406_v42, %v1510_v30  ;;  %v1899_v23 = vmul.f32 %v1771_v21, %v6167_v60 }
 0x286   :  { %v1135_v20 = vadd.f32 %v1134_v36, %v5506_v17  ;;  %v1223_v0 = vpop.f32.mrf.mxu1  ;;  %v1902_v47 = vmul.f32 %v1774_v13, %v6170_v22  ;;  %v6662_v13 = vld [vmem:[#allocation35_spill] sm:$0xff]  ;;  %v6665_v36 = vpack.c.bf16 %v5854_v62, %v5852_v3 }
 0x287   :  { %v6187_v5 = vadd.f32 %v1398_v26, %v1310_v10  ;;  %v2614_v25 = vpack.c.bf16 %v6182_v39, %v6180_v57  ;;  %v2027_v15 = vadd.f32 %v1899_v23, %v6167_v60  ;;  %2953 = vmatmul.bf16.gmra.mxu0 %v6661_v33  ;;  %v6663_v10 = vld [vmem:[#allocation34_spill] sm:$0xff]  ;;  %v1507_v23 = vmul.f32 0.5, %v6111_v8 }
 0x288   :  { %v6192_v51 = vadd.f32 %v1223_v0, %v1135_v20  ;;  %v2030_v21 = vadd.f32 %v1902_v47, %v6170_v22  ;;  %v6664_v26 = vpack.c.bf16 %v6662_v13, %v6663_v10 }
 0x289   :  { %v4466_v30 = vpop.eup %4465  ;;  %v1647_v42 = vmul.f32 0.044715, %v6187_v5  ;;  %3131 = vmatmul.bf16.gmra.mxu2 %v6665_v36  ;;  %v2155_v47 = vmul.f32 0.7978846, %v2027_v15  ;;  %v6213_v62 = vmul.f32 %v2403_v34, %v1507_v23 }
 0x28a   :  { %3042 = vmatmul.bf16.gmra.mxu1 %v6664_v26  ;;  %v1650_v12 = vmul.f32 0.044715, %v6192_v51  ;;  %3220 = vmatmul.bf16.gmra.mxu3 %v6666_v56  ;;  %v2407_v6 = vadd.f32 1.0, %v4466_v30  ;;  %v2158_v20 = vmul.f32 0.7978846, %v2030_v21  ;;  %v4468_v1 = vpop.eup %4467 }
 0x28b   :  { %v1775_v0 = vmul.f32 %v1647_v42, %v6187_v5  ;;  %v2410_v56 = vadd.f32 1.0, %v4468_v1 }
 0x28c   :  { %v1778_v33 = vmul.f32 %v1650_v12, %v6192_v51  ;;  %v1312_v13 = vpop.f32.mrf.mxu2  ;;  %v6215_v3 = vmul.f32 %v2407_v6, %v1511_v48  ;;  %4469 = vtanh.f32 %v2158_v20 }
 0x28d   :  { %v1313_v8 = vadd.f32 %v1312_v13, %v5533_v32  ;;  %v1401_v10 = vpop.f32.mrf.mxu3  ;;  %v1136_v18 = vpop.f32.mrf.mxu0  ;;  %v1903_v53 = vmul.f32 %v1775_v0, %v6187_v5  ;;  %4471 = vtanh.f32 %v2155_v47  ;;  %v1514_v0 = vmul.f32 0.5, %v6136_v29 }
 0x28e   :  { %v1137_v21 = vadd.f32 %v1136_v18, %v5506_v17  ;;  %v1225_v30 = vpop.f32.mrf.mxu1  ;;  %v2615_v15 = vpack.c.bf16 %v6215_v3, %v6213_v62  ;;  %v1906_v42 = vmul.f32 %v1778_v33, %v6192_v51  ;;  %v1518_v13 = vmul.f32 0.5, %v6170_v22 }
 0x28f   :  { %v6223_v34 = vadd.f32 %v1401_v10, %v1313_v8  ;;  %v2031_v26 = vadd.f32 %v1903_v53, %v6187_v5 }
 0x290   :  { %v6226_v36 = vadd.f32 %v1225_v30, %v1137_v21  ;;  %v2034_v23 = vadd.f32 %v1906_v42, %v6192_v51  ;;  %v6236_v42 = vmul.f32 %v2410_v56, %v1514_v0  ;;  %v6667_v56 = vld [vmem:[#allocation36_spill] sm:$0xff] }
 0x291   :  { %v1651_v12 = vmul.f32 0.044715, %v6223_v34  ;;  %v2159_v48 = vmul.f32 0.7978846, %v2031_v26  ;;  %v6668_v0 = vpack.c.bf16 %v5130_v55, %v6667_v56 }
 0x292   :  { %v4470_v6 = vpop.eup %4469  ;;  %v1654_v20 = vmul.f32 0.044715, %v6226_v36  ;;  %v2162_v18 = vmul.f32 0.7978846, %v2034_v23 }
 0x293   :  { %v1779_v33 = vmul.f32 %v1651_v12, %v6223_v34  ;;  %v2414_v8 = vadd.f32 1.0, %v4470_v6  ;;  %4473 = vtanh.f32 %v2159_v48  ;;  %v4472_v53 = vpop.eup %4471 }
 0x294   :  { %v1782_v47 = vmul.f32 %v1654_v20, %v6226_v36  ;;  %v1314_v10 = vpop.f32.mrf.mxu2  ;;  %4475 = vtanh.f32 %v2162_v18  ;;  %v1519_v18 = vmul.f32 0.5, %v6187_v5 }
 0x295   :  { %v1315_v21 = vadd.f32 %v1314_v10, %v5533_v32  ;;  %v1403_v1 = vpop.f32.mrf.mxu3  ;;  %v1139_v30 = vpop.f32.mrf.mxu0  ;;  %v6238_v26 = vmul.f32 %v2414_v8, %v1518_v13  ;;  %v1907_v29 = vmul.f32 %v1779_v33, %v6223_v34  ;;  %v2411_v13 = vadd.f32 1.0, %v4472_v53 }
 0x296   :  { %v1140_v12 = vadd.f32 %v1139_v30, %v5506_v17  ;;  %v1228_v22 = vpop.f32.mrf.mxu1  ;;  %v1910_v48 = vmul.f32 %v1782_v47, %v6226_v36  ;;  %v6672_v53 = vpack.c.bf16 %v5935_v58, %v5933_v38 }
 0x297   :  { %v6243_v6 = vadd.f32 %v1403_v1, %v1315_v21  ;;  %v2618_v23 = vpack.c.bf16 %v6238_v26, %v6236_v42  ;;  %v2035_v20 = vadd.f32 %v1907_v29, %v6223_v34  ;;  %2958 = vmatmul.bf16.gmra.mxu0 %v6668_v0  ;;  %v6669_v21 = vld [vmem:[#allocation38_spill] sm:$0xff]  ;;  %v6670_v1 = vld [vmem:[#allocation37_spill] sm:$0xff]  ;;  %v1515_v29 = vmul.f32 0.5, %v6167_v60 }
 0x298   :  { %v6248_v10 = vadd.f32 %v1228_v22, %v1140_v12  ;;  %v2038_v33 = vadd.f32 %v1910_v48, %v6226_v36  ;;  %v6671_v30 = vpack.c.bf16 %v6669_v21, %v6670_v1 }
 0x299   :  { %v4474_v8 = vpop.eup %4473  ;;  %v1655_v47 = vmul.f32 0.044715, %v6243_v6  ;;  %3136 = vmatmul.bf16.gmra.mxu2 %v2594_v40  ;;  %v2163_v56 = vmul.f32 0.7978846, %v2035_v20  ;;  %v6269_v16 = vmul.f32 %v2411_v13, %v1515_v29 }
 0x29a   :  { %3047 = vmatmul.bf16.gmra.mxu1 %v6671_v30  ;;  %v1658_v55 = vmul.f32 0.044715, %v6248_v10  ;;  %3225 = vmatmul.bf16.gmra.mxu3 %v6672_v53  ;;  %v2415_v12 = vadd.f32 1.0, %v4474_v8  ;;  %v2166_v22 = vmul.f32 0.7978846, %v2038_v33  ;;  %v4476_v5 = vpop.eup %4475 }
 0x29b   :  { %v1783_v48 = vmul.f32 %v1655_v47, %v6243_v6  ;;  %v2418_v53 = vadd.f32 1.0, %v4476_v5 }
 0x29c   :  { %v1786_v0 = vmul.f32 %v1658_v55, %v6248_v10  ;;  %v1317_v21 = vpop.f32.mrf.mxu2  ;;  %v6271_v19 = vmul.f32 %v2415_v12, %v1519_v18  ;;  %4477 = vtanh.f32 %v2166_v22 }
 0x29d   :  { %v1318_v40 = vadd.f32 %v1317_v21, %v5533_v32  ;;  %v1406_v60 = vpop.f32.mrf.mxu3  ;;  %v1141_v38 = vpop.f32.mrf.mxu0  ;;  %v1911_v58 = vmul.f32 %v1783_v48, %v6243_v6  ;;  %4479 = vtanh.f32 %v2163_v56  ;;  %v1522_v48 = vmul.f32 0.5, %v6192_v51 }
 0x29e   :  { %v1142_v33 = vadd.f32 %v1141_v38, %v5506_v17  ;;  %v1230_v8 = vpop.f32.mrf.mxu1  ;;  %v2619_v20 = vpack.c.bf16 %v6271_v19, %v6269_v16  ;;  %v1914_v47 = vmul.f32 %v1786_v0, %v6248_v10  ;;  %v1526_v21 = vmul.f32 0.5, %v6226_v36 }
 0x29f   :  { %v6279_v13 = vadd.f32 %v1406_v60, %v1318_v40  ;;  %v2039_v1 = vadd.f32 %v1911_v58, %v6243_v6 }
 0x2a0   :  { %v6282_v30 = vadd.f32 %v1230_v8, %v1142_v33  ;;  %v2042_v29 = vadd.f32 %v1914_v47, %v6248_v10  ;;  %v6292_v47 = vmul.f32 %v2418_v53, %v1522_v48  ;;  %v6673_v53 = vpack.c.bf16 %v5178_v41, %v5175_v31 }
 0x2a1   :  { %v1659_v55 = vmul.f32 0.044715, %v6279_v13  ;;  %v2167_v18 = vmul.f32 0.7978846, %v2039_v1  ;;  %v6677_v41 = vpack.c.bf16 %v5991_v7, %v5989_v59 }
 0x2a2   :  { %v4478_v12 = vpop.eup %4477  ;;  %v1662_v22 = vmul.f32 0.044715, %v6282_v30  ;;  %v2170_v38 = vmul.f32 0.7978846, %v2042_v29 }
 0x2a3   :  { %v1787_v0 = vmul.f32 %v1659_v55, %v6279_v13  ;;  %v2422_v40 = vadd.f32 1.0, %v4478_v12  ;;  %4481 = vtanh.f32 %v2167_v18  ;;  %v4480_v58 = vpop.eup %4479 }
 0x2a4   :  { %v1790_v56 = vmul.f32 %v1662_v22, %v6282_v30  ;;  %v1319_v60 = vpop.f32.mrf.mxu2  ;;  %v2419_v48 = vadd.f32 1.0, %v4480_v58  ;;  %4483 = vtanh.f32 %v2170_v38  ;;  %v1527_v38 = vmul.f32 0.5, %v6243_v6 }
 0x2a5   :  { %v1320_v33 = vadd.f32 %v1319_v60, %v5533_v32  ;;  %v1408_v5 = vpop.f32.mrf.mxu3  ;;  %v1144_v8 = vpop.f32.mrf.mxu0  ;;  %v6294_v1 = vmul.f32 %v2422_v40, %v1526_v21  ;;  %v1915_v51 = vmul.f32 %v1787_v0, %v6279_v13 }
 0x2a6   :  { %v1145_v55 = vadd.f32 %v1144_v8, %v5506_v17  ;;  %v1233_v36 = vpop.f32.mrf.mxu1  ;;  %v1918_v18 = vmul.f32 %v1790_v56, %v6282_v30  ;;  %v6674_v56 = vld [vmem:[#allocation39_spill] sm:$0xff]  ;;  %v1523_v8 = vmul.f32 0.5, %v6223_v34 }
 0x2a7   :  { %v6299_v12 = vadd.f32 %v1408_v5, %v1320_v33  ;;  %v2622_v29 = vpack.c.bf16 %v6294_v1, %v6292_v47  ;;  %v2043_v22 = vadd.f32 %v1915_v51, %v6279_v13  ;;  %2963 = vmatmul.bf16.gmra.mxu0 %v6673_v53  ;;  %v6675_v33 = vpack.c.bf16 %v5203_v61, %v6674_v56 }
 0x2a8   :  { %v6304_v60 = vadd.f32 %v1233_v36, %v1145_v55  ;;  %v2046_v0 = vadd.f32 %v1918_v18, %v6282_v30  ;;  %v6676_v5 = vpack.c.bf16 %v5958_v28, %v5956_v44  ;;  %v6325_v44 = vmul.f32 %v2419_v48, %v1523_v8 }
 0x2a9   :  { %v4482_v21 = vpop.eup %4481  ;;  %v1663_v40 = vmul.f32 0.044715, %v6299_v12  ;;  %v2171_v61 = vmul.f32 0.7978846, %v2043_v22 }
 0x2aa   :  { %3052 = vmatmul.bf16.gmra.mxu1 %v6675_v33  ;;  %3141 = vmatmul.bf16.gmra.mxu2 %v6676_v5  ;;  %v1666_v31 = vmul.f32 0.044715, %v6304_v60  ;;  %v2423_v58 = vadd.f32 1.0, %v4482_v21  ;;  %v2174_v51 = vmul.f32 0.7978846, %v2046_v0  ;;  %v4484_v6 = vpop.eup %4483 }
 0x2ab   :  { %3230 = vmatmul.bf16.gmra.mxu3 %v6677_v41  ;;  %v1791_v55 = vmul.f32 %v1663_v40, %v6299_v12 }
 0x2ac   :  { %v1794_v36 = vmul.f32 %v1666_v31, %v6304_v60  ;;  %v1322_v18 = vpop.f32.mrf.mxu2  ;;  %v6327_v28 = vmul.f32 %v2423_v58, %v1527_v38  ;;  %4485 = vtanh.f32 %v2174_v51  ;;  %v2426_v31 = vadd.f32 1.0, %v4484_v6 }
 0x2ad   :  { %v1323_v34 = vadd.f32 %v1322_v18, %v5533_v32  ;;  %v1411_v53 = vpop.f32.mrf.mxu3  ;;  %v1146_v59 = vpop.f32.mrf.mxu0  ;;  %v1919_v7 = vmul.f32 %v1791_v55, %v6299_v12  ;;  %4487 = vtanh.f32 %v2171_v61  ;;  %v1530_v58 = vmul.f32 0.5, %v6248_v10 }
 0x2ae   :  { %v1147_v0 = vadd.f32 %v1146_v59, %v5506_v17  ;;  %v1235_v21 = vpop.f32.mrf.mxu1  ;;  %v2623_v22 = vpack.c.bf16 %v6327_v28, %v6325_v44  ;;  %v1922_v40 = vmul.f32 %v1794_v36, %v6304_v60  ;;  %v1534_v55 = vmul.f32 0.5, %v6282_v30 }
 0x2af   :  { %v6335_v48 = vadd.f32 %v1411_v53, %v1323_v34  ;;  %v2047_v56 = vadd.f32 %v1919_v7, %v6299_v12  ;;  %v6344_v6 = vmul.f32 %v2426_v31, %v1530_v58 }
 0x2b0   :  { %v1236_v33 = vadd.f32 %v1235_v21, %v1147_v0  ;;  %v2050_v5 = vadd.f32 %v1922_v40, %v6304_v60 }
 0x2b1   :  { %v1667_v8 = vmul.f32 0.044715, %v6335_v48  ;;  %v2175_v41 = vmul.f32 0.7978846, %v2047_v56 }
 0x2b2   :  { %v4486_v38 = vpop.eup %4485  ;;  %v1670_v17 = vmul.f32 0.044715, %v1236_v33  ;;  %v2178_v61 = vmul.f32 0.7978846, %v2050_v5  ;;  %v6678_v5 = vld [vmem:[#allocation40_spill] sm:$0xff] }
 0x2b3   :  { %v1795_v51 = vmul.f32 %v1667_v8, %v6335_v48  ;;  %v2430_v36 = vadd.f32 1.0, %v4486_v38  ;;  %4489 = vtanh.f32 %v2175_v41  ;;  %v4488_v53 = vpop.eup %4487  ;;  %v6679_v38 = vpack.c.bf16 %v5226_v50, %v6678_v5 }
 0x2b4   :  { %v1798_v18 = vmul.f32 %v1670_v17, %v1236_v33  ;;  %v1324_v34 = vpop.f32.mrf.mxu2  ;;  %4491 = vtanh.f32 %v2178_v61  ;;  %v1531_v50 = vmul.f32 0.5, %v6279_v13 }
 0x2b5   :  { %v1325_v59 = vadd.f32 %v1324_v34, %v5533_v32  ;;  %v1413_v7 = vpop.f32.mrf.mxu3  ;;  %v2929_v0 = vpop.f32.mrf.mxu0  ;;  %v6346_v21 = vmul.f32 %v2430_v36, %v1534_v55  ;;  %v1923_v10 = vmul.f32 %v1795_v51, %v6335_v48  ;;  %v2427_v32 = vadd.f32 1.0, %v4488_v53  ;;  %v6680_v55 = vld [vmem:[#allocation42_spill] sm:$0xff]  ;;  %v6681_v36 = vld [vmem:[#allocation41_spill] sm:$0xff] }
 0x2b6   :  { %v1926_v56 = vmul.f32 %v1798_v18, %v1236_v33  ;;  %v6682_v51 = vpack.c.bf16 %v6680_v55, %v6681_v36  ;;  %v6683_v18 = vpack.c.bf16 %v6014_v63, %v6012_v45  ;;  %v6684_v34 = vpack.c.bf16 %v6047_v52, %v6045_v27 }
 0x2b7   :  { %v3018_v40 = vpop.f32.mrf.mxu1  ;;  %v1414_v8 = vadd.f32 %v1413_v7, %v1325_v59  ;;  %v2626_v30 = vpack.c.bf16 %v6346_v21, %v6344_v6  ;;  %v2051_v41 = vadd.f32 %v1923_v10, %v6335_v48  ;;  %2968 = vmatmul.bf16.gmra.mxu0 %v6679_v38  ;;  %v1535_v53 = vmul.f32 0.5, %v6299_v12 }
 0x2b8   :  { %v2054_v17 = vadd.f32 %v1926_v56, %v1236_v33  ;;  %v6366_v5 = vmul.f32 %v2427_v32, %v1531_v50  ;;  %v3019_v13 = vadd.f32 %v3018_v40, %v2929_v0  ;;  %v1538_v32 = vmul.f32 0.5, %v6304_v60 }
 0x2b9   :  { %v4490_v31 = vpop.eup %4489  ;;  %v1671_v58 = vmul.f32 0.044715, %v1414_v8  ;;  %v2179_v10 = vmul.f32 0.7978846, %v2051_v41 }
 0x2ba   :  { %3057 = vmatmul.bf16.gmra.mxu1 %v6682_v51  ;;  %3146 = vmatmul.bf16.gmra.mxu2 %v6683_v18  ;;  %v2431_v59 = vadd.f32 1.0, %v4490_v31  ;;  %v2182_v61 = vmul.f32 0.7978846, %v2054_v17  ;;  %v4492_v36 = vpop.eup %4491  ;;  %v1542_v18 = vmul.f32 0.5, %v1236_v33 }
 0x2bb   :  { %3235 = vmatmul.bf16.gmra.mxu3 %v6684_v34  ;;  %v1799_v7 = vmul.f32 %v1671_v58, %v1414_v8  ;;  %v2434_v31 = vadd.f32 1.0, %v4492_v36 }
 0x2bc   :  { %v3107_v56 = vpop.f32.mrf.mxu2  ;;  %v6368_v38 = vmul.f32 %v2431_v59, %v1535_v53  ;;  %4493 = vtanh.f32 %v2182_v61  ;;  %v6376_v61 = vld [vmem:[%s6517_s4] ss:$0 sm:$0xff]  ;;  %s4638_s4 = smov [#allocation11]  }
 0x2bd   :  { %v3196_v63 = vpop.f32.mrf.mxu3  ;;  %v2931_v45 = vpop.f32.mrf.mxu0  ;;  %v1927_v55 = vmul.f32 %v1799_v7, %v1414_v8  ;;  %4495 = vtanh.f32 %v2179_v10  ;;  %v3108_v17 = vadd.f32 %v3107_v56, %v3019_v13  ;;  %v6378_v10 = vmul.f32 %v2434_v31, %v1538_v32  ;;  %s3479_s17 = sshll.u32 %s4638_s4, 4  ;;  %s3480_s17 = int_to_ptr.vmem [resolvable:$true] %s3479_s17 }
 0x2be   :  { %v2627_v52 = vpack.c.bf16 %v6368_v38, %v6366_v5  ;;  %v6688_v31 = vpack.c.bf16 %v6070_v24, %v6068_v49 }
 0x2bf   :  { %v3020_v27 = vpop.f32.mrf.mxu1  ;;  %v2055_v12 = vadd.f32 %v1927_v55, %v1414_v8  ;;  %v3197_v59 = vadd.f32 %v3196_v63, %v3108_v17  ;;  %v6685_v63 = vpack.c.bf16 %v5274_v11, %v5271_v4  ;;  %v1539_v4 = vmul.f32 0.5, %v6335_v48 }
 0x2c0   :  { %v3021_v51 = vadd.f32 %v3020_v27, %v2931_v45  ;;  %v1543_v11 = vmul.f32 0.5, %v1414_v8 }
 0x2c1   :  { %v2183_v41 = vmul.f32 0.7978846, %v2055_v12  ;;  %v3379_v27 = vadd.f32 %v6376_v61, %v3197_v59  ;;  %v6686_v12 = vld [vmem:[#allocation43_spill] sm:$0xff] }
 0x2c2   :  { %v4494_v58 = vpop.eup %4493  ;;  %v6687_v17 = vpack.c.bf16 %v5299_v46, %v6686_v12 }
 0x2c3   :  { %v2438_v34 = vadd.f32 1.0, %v4494_v58  ;;  %4497 = vtanh.f32 %v2183_v41  ;;  %v4496_v53 = vpop.eup %4495  ;;  %v6689_v41 = vpack.c.bf16 %v6103_v35, %v6101_v9 }
 0x2c4   :  { %v3109_v50 = vpop.f32.mrf.mxu2  ;;  %v2435_v55 = vadd.f32 1.0, %v4496_v53 }
 0x2c5   :  { %v3110_v0 = vadd.f32 %v3109_v50, %v3021_v51  ;;  %v3198_v40 = vpop.f32.mrf.mxu3  ;;  %v2934_v7 = vpop.f32.mrf.mxu0  ;;  %v6380_v56 = vmul.f32 %v2438_v34, %v1542_v18 }
 0x2c6   :  { %v6399_v18 = vmul.f32 %v2435_v55, %v1539_v4  ;;  %v6690_v55 = vld [vmem:[#allocation45_spill] sm:$0xff] }
 0x2c7   :  { %v3023_v60 = vpop.f32.mrf.mxu1  ;;  %v3199_v45 = vadd.f32 %v3198_v40, %v3110_v0  ;;  %v2630_v33 = vpack.c.bf16 %v6380_v56, %v6378_v10  ;;  %2973 = vmatmul.bf16.gmra.mxu0 %v6685_v63 }
 0x2c8   :  { %v3024_v49 = vadd.f32 %v3023_v60, %v2934_v7  ;;  %v6696_v60 = vpack.c.bf16 %v6159_v54, %v6157_v2 }
 0x2c9   :  { %v4498_v36 = vpop.eup %4497  ;;  %v3380_v13 = vadd.f32 %v6376_v61, %v3199_v45 }
 0x2ca   :  { %3062 = vmatmul.bf16.gmra.mxu1 %v6687_v17  ;;  %3151 = vmatmul.bf16.gmra.mxu2 %v6688_v31  ;;  %v2439_v58 = vadd.f32 1.0, %v4498_v36  ;;  %v6691_v36 = vld [vmem:[#allocation44_spill] sm:$0xff]  ;;  %v6693_v17 = vld [vmem:[#allocation47_spill] sm:$0xff]  ;;  %v6694_v31 = vld [vmem:[#allocation46_spill] sm:$0xff] }
 0x2cb   :  { %3240 = vmatmul.bf16.gmra.mxu3 %v6689_v41  ;;  %v4139_v32 = vpack.c.bf16 %v3380_v13, %v3379_v27  ;;  %v6692_v27 = vpack.c.bf16 %v6690_v55, %v6691_v36  ;;  %v6695_v7 = vpack.c.bf16 %v6693_v17, %v6694_v31 }
 0x2cc   :  { %v3112_v51 = vpop.f32.mrf.mxu2  ;;  %v6401_v34 = vmul.f32 %v2439_v58, %v1543_v11 }
 0x2cd   :  { %4140 = vst [vmem:[#allocation11] sm:$0xff] %v4139_v32   ;;  %v3201_v46 = vpop.f32.mrf.mxu3  ;;  %v2936_v50 = vpop.f32.mrf.mxu0  ;;  %v3113_v9 = vadd.f32 %v3112_v51, %v3024_v49 }
 0x2ce   :  { %v2631_v24 = vpack.c.bf16 %v6401_v34, %v6399_v18 }
 0x2cf   :  { %v3025_v53 = vpop.f32.mrf.mxu1  ;;  %v3202_v48 = vadd.f32 %v3201_v46, %v3113_v9 }
 0x2d0   :  { %v3026_v35 = vadd.f32 %v3025_v53, %v2936_v50 }
 0x2d1   :  { %v3381_v13 = vadd.f32 %v6376_v61, %v3202_v48  ;;  %v6698_v48 = vld [vmem:[#allocation48_spill] sm:$0xff] }
 0x2d4   :  { %v3114_v59 = vpop.f32.mrf.mxu2 }
 0x2d5   :  { %v3115_v8 = vadd.f32 %v3114_v59, %v3026_v35  ;;  %v3203_v0 = vpop.f32.mrf.mxu3  ;;  %v2939_v40 = vpop.f32.mrf.mxu0 }
 0x2d7   :  { %v3028_v45 = vpop.f32.mrf.mxu1  ;;  %v3204_v63 = vadd.f32 %v3203_v0, %v3115_v8  ;;  %2978 = vmatmul.bf16.gmra.mxu0 %v6692_v27  ;;  %v6700_v0 = vld [vmem:[#allocation51_spill] sm:$0xff] }
 0x2d8   :  { %v3029_v51 = vadd.f32 %v3028_v45, %v2939_v40 }
 0x2d9   :  { %v3382_v12 = vadd.f32 %v6376_v61, %v3204_v63  ;;  %v6701_v63 = vld [vmem:[#allocation50_spill] sm:$0xff] }
 0x2da   :  { %3067 = vmatmul.bf16.gmra.mxu1 %v6695_v7  ;;  %3156 = vmatmul.bf16.gmra.mxu2 %v2610_v37  ;;  %v6697_v37 = vld [vmem:[#allocation49_spill] sm:$0xff]  ;;  %v6702_v40 = vpack.c.bf16 %v6700_v0, %v6701_v63  ;;  %v6710_v0 = vld [vmem:[#allocation56_spill] sm:$0xff]  ;;  %v6712_v63 = vld [vmem:[#allocation59_spill] sm:$0xff] }
 0x2db   :  { %3245 = vmatmul.bf16.gmra.mxu3 %v6696_v60  ;;  %v4144_v41 = vpack.c.bf16 %v3382_v12, %v3381_v13  ;;  %v6699_v2 = vpack.c.bf16 %v6697_v37, %v6698_v48 }
 0x2dc   :  { %v3117_v4 = vpop.f32.mrf.mxu2 }
 0x2dd   :  { %4216 = vst [vmem:[#allocation11 + $0x8] sm:$0xff] %v4144_v41   ;;  %v3206_v11 = vpop.f32.mrf.mxu3  ;;  %v2941_v58 = vpop.f32.mrf.mxu0  ;;  %v3118_v46 = vadd.f32 %v3117_v4, %v3029_v51  ;;  %v6707_v51 = vld [vmem:[#allocation54_spill] sm:$0xff] }
 0x2df   :  { %v3030_v32 = vpop.f32.mrf.mxu1  ;;  %v3207_v49 = vadd.f32 %v3206_v11, %v3118_v46 }
 0x2e0   :  { %v3031_v50 = vadd.f32 %v3030_v32, %v2941_v58  ;;  %v6704_v58 = vld [vmem:[#allocation52_spill] sm:$0xff]  ;;  %v6706_v32 = vld [vmem:[#allocation55_spill] sm:$0xff] }
 0x2e1   :  { %v3383_v54 = vadd.f32 %v6376_v61, %v3207_v49  ;;  %v6708_v46 = vpack.c.bf16 %v6706_v32, %v6707_v51 }
 0x2e4   :  { %v3119_v53 = vpop.f32.mrf.mxu2 }
 0x2e5   :  { %v3120_v9 = vadd.f32 %v3119_v53, %v3031_v50  ;;  %v3208_v35 = vpop.f32.mrf.mxu3  ;;  %v2944_v59 = vpop.f32.mrf.mxu0 }
 0x2e7   :  { %v3033_v43 = vpop.f32.mrf.mxu1  ;;  %v3209_v14 = vadd.f32 %v3208_v35, %v3120_v9  ;;  %2983 = vmatmul.bf16.gmra.mxu0 %v6699_v2 }
 0x2e8   :  { %v3034_v12 = vadd.f32 %v3033_v43, %v2944_v59 }
 0x2e9   :  { %v3384_v8 = vadd.f32 %v6376_v61, %v3209_v14 }
 0x2ea   :  { %3072 = vmatmul.bf16.gmra.mxu1 %v6702_v40  ;;  %3161 = vmatmul.bf16.gmra.mxu2 %v2614_v25  ;;  %v6703_v25 = vld [vmem:[#allocation53_spill] sm:$0xff]  ;;  %v6713_v40 = vld [vmem:[#allocation58_spill] sm:$0xff] }
 0x2eb   :  { %3250 = vmatmul.bf16.gmra.mxu3 %v2615_v15  ;;  %v4149_v45 = vpack.c.bf16 %v3384_v8, %v3383_v54  ;;  %v6705_v62 = vpack.c.bf16 %v6703_v25, %v6704_v58  ;;  %v6718_v25 = vld [vmem:[#allocation63_spill] sm:$0xff]  ;;  %v6719_v58 = vld [vmem:[#allocation62_spill] sm:$0xff] }
 0x2ec   :  { %v3122_v55 = vpop.f32.mrf.mxu2 }
 0x2ed   :  { %4217 = vst [vmem:[#allocation11 + $0x10] sm:$0xff] %v4149_v45   ;;  %v3211_v36 = vpop.f32.mrf.mxu3  ;;  %v2946_v27 = vpop.f32.mrf.mxu0  ;;  %v3123_v17 = vadd.f32 %v3122_v55, %v3034_v12  ;;  %v6714_v45 = vpack.c.bf16 %v6712_v63, %v6713_v40 }
 0x2ef   :  { %v3035_v13 = vpop.f32.mrf.mxu1  ;;  %v3212_v60 = vadd.f32 %v3211_v36, %v3123_v17 }
 0x2f0   :  { %v3036_v31 = vadd.f32 %v3035_v13, %v2946_v27 }
 0x2f1   :  { %v3385_v3 = vadd.f32 %v6376_v61, %v3212_v60 }
 0x2f4   :  { %v3124_v7 = vpop.f32.mrf.mxu2 }
 0x2f5   :  { %v3125_v41 = vadd.f32 %v3124_v7, %v3036_v31  ;;  %v3213_v4 = vpop.f32.mrf.mxu3  ;;  %v2949_v11 = vpop.f32.mrf.mxu0 }
 0x2f7   :  { %v3038_v39 = vpop.f32.mrf.mxu1  ;;  %v3214_v57 = vadd.f32 %v3213_v4, %v3125_v41  ;;  %2988 = vmatmul.bf16.gmra.mxu0 %v6705_v62  ;;  %v6720_v62 = vpack.c.bf16 %v6718_v25, %v6719_v58 }
 0x2f8   :  { %v3039_v59 = vadd.f32 %v3038_v39, %v2949_v11 }
 0x2f9   :  { %v3386_v15 = vadd.f32 %v6376_v61, %v3214_v57  ;;  %v6716_v57 = vld [vmem:[#allocation60_spill] sm:$0xff] }
 0x2fa   :  { %3077 = vmatmul.bf16.gmra.mxu1 %v6708_v46  ;;  %3166 = vmatmul.bf16.gmra.mxu2 %v2618_v23  ;;  %v6709_v23 = vld [vmem:[#allocation57_spill] sm:$0xff] }
 0x2fb   :  { %3255 = vmatmul.bf16.gmra.mxu3 %v2619_v20  ;;  %v4154_v50 = vpack.c.bf16 %v3386_v15, %v3385_v3  ;;  %v6711_v16 = vpack.c.bf16 %v6709_v23, %v6710_v0 }
 0x2fc   :  { %v3127_v53 = vpop.f32.mrf.mxu2 }
 0x2fd   :  { %4218 = vst [vmem:[#allocation11 + $0x18] sm:$0xff] %v4154_v50   ;;  %v3216_v49 = vpop.f32.mrf.mxu3  ;;  %v2951_v9 = vpop.f32.mrf.mxu0  ;;  %v3128_v43 = vadd.f32 %v3127_v53, %v3039_v59 }
 0x2ff   :  { %v3040_v35 = vpop.f32.mrf.mxu1  ;;  %v3217_v48 = vadd.f32 %v3216_v49, %v3128_v43 }
 0x300   :  { %v3041_v14 = vadd.f32 %v3040_v35, %v2951_v9 }
 0x301   :  { %v3387_v19 = vadd.f32 %v6376_v61, %v3217_v48  ;;  %v6724_v48 = vld [vmem:[#allocation67_spill] sm:$0xff] }
 0x304   :  { %v3129_v37 = vpop.f32.mrf.mxu2 }
 0x305   :  { %v3130_v2 = vadd.f32 %v3129_v37, %v3041_v14  ;;  %v3218_v54 = vpop.f32.mrf.mxu3  ;;  %v2954_v8 = vpop.f32.mrf.mxu0  ;;  %v6722_v37 = vld [vmem:[#allocation64_spill] sm:$0xff] }
 0x307   :  { %v3043_v42 = vpop.f32.mrf.mxu1  ;;  %v3219_v26 = vadd.f32 %v3218_v54, %v3130_v2  ;;  %2993 = vmatmul.bf16.gmra.mxu0 %v6711_v16  ;;  %v6725_v2 = vld [vmem:[#allocation66_spill] sm:$0xff] }
 0x308   :  { %v3044_v17 = vadd.f32 %v3043_v42, %v2954_v8  ;;  %v6726_v54 = vpack.c.bf16 %v6724_v48, %v6725_v2 }
 0x309   :  { %v3388_v20 = vadd.f32 %v6376_v61, %v3219_v26 }
 0x30a   :  { %3082 = vmatmul.bf16.gmra.mxu1 %v6714_v45  ;;  %3171 = vmatmul.bf16.gmra.mxu2 %v2622_v29  ;;  %v6715_v29 = vld [vmem:[#allocation61_spill] sm:$0xff] }
 0x30b   :  { %3260 = vmatmul.bf16.gmra.mxu3 %v2623_v22  ;;  %v4159_v55 = vpack.c.bf16 %v3388_v20, %v3387_v19  ;;  %v6717_v44 = vpack.c.bf16 %v6715_v29, %v6716_v57 }
 0x30c   :  { %v3132_v36 = vpop.f32.mrf.mxu2 }
 0x30d   :  { %4219 = vst [vmem:[#allocation11 + $0x20] sm:$0xff] %v4159_v55   ;;  %v3221_v27 = vpop.f32.mrf.mxu3  ;;  %v2956_v13 = vpop.f32.mrf.mxu0  ;;  %v3133_v31 = vadd.f32 %v3132_v36, %v3044_v17 }
 0x30f   :  { %v3045_v12 = vpop.f32.mrf.mxu1  ;;  %v3222_v41 = vadd.f32 %v3221_v27, %v3133_v31 }
 0x310   :  { %v3046_v7 = vadd.f32 %v3045_v12, %v2956_v13 }
 0x311   :  { %v3389_v28 = vadd.f32 %v6376_v61, %v3222_v41 }
 0x314   :  { %v3134_v60 = vpop.f32.mrf.mxu2 }
 0x315   :  { %v3135_v4 = vadd.f32 %v3134_v60, %v3046_v7  ;;  %v3223_v11 = vpop.f32.mrf.mxu3  ;;  %v2959_v39 = vpop.f32.mrf.mxu0 }
 0x317   :  { %v3048_v47 = vpop.f32.mrf.mxu1  ;;  %v3224_v1 = vadd.f32 %v3223_v11, %v3135_v4  ;;  %2998 = vmatmul.bf16.gmra.mxu0 %v6717_v44 }
 0x318   :  { %v3049_v50 = vadd.f32 %v3048_v47, %v2959_v39 }
 0x319   :  { %v3390_v22 = vadd.f32 %v6376_v61, %v3224_v1 }
 0x31a   :  { %3087 = vmatmul.bf16.gmra.mxu1 %v6720_v62  ;;  %3176 = vmatmul.bf16.gmra.mxu2 %v2626_v30  ;;  %v6721_v30 = vld [vmem:[#allocation65_spill] sm:$0xff] }
 0x31b   :  { %3265 = vmatmul.bf16.gmra.mxu3 %v2627_v52  ;;  %v4164_v3 = vpack.c.bf16 %v3390_v22, %v3389_v28  ;;  %v6723_v5 = vpack.c.bf16 %v6721_v30, %v6722_v37 }
 0x31c   :  { %v3137_v15 = vpop.f32.mrf.mxu2 }
 0x31d   :  { %4220 = vst [vmem:[#allocation11 + $0x28] sm:$0xff] %v4164_v3   ;;  %v3226_v32 = vpop.f32.mrf.mxu3  ;;  %v2961_v51 = vpop.f32.mrf.mxu0  ;;  %v3138_v53 = vadd.f32 %v3137_v15, %v3049_v50 }
 0x31f   :  { %v3050_v46 = vpop.f32.mrf.mxu1  ;;  %v3227_v35 = vadd.f32 %v3226_v32, %v3138_v53 }
 0x320   :  { %v3051_v49 = vadd.f32 %v3050_v46, %v2961_v51 }
 0x321   :  { %v3391_v38 = vadd.f32 %v6376_v61, %v3227_v35 }
 0x324   :  { %v3139_v9 = vpop.f32.mrf.mxu2 }
 0x325   :  { %v3140_v59 = vadd.f32 %v3139_v9, %v3051_v49  ;;  %v3228_v43 = vpop.f32.mrf.mxu3  ;;  %v2964_v14 = vpop.f32.mrf.mxu0 }
 0x327   :  { %v3053_v6 = vpop.f32.mrf.mxu1  ;;  %v3229_v21 = vadd.f32 %v3228_v43, %v3140_v59  ;;  %3003 = vmatmul.bf16.gmra.mxu0 %v6723_v5 }
 0x328   :  { %v3054_v16 = vadd.f32 %v3053_v6, %v2964_v14 }
 0x329   :  { %v3392_v52 = vadd.f32 %v6376_v61, %v3229_v21 }
 0x32a   :  { %3092 = vmatmul.bf16.gmra.mxu1 %v6726_v54  ;;  %3181 = vmatmul.bf16.gmra.mxu2 %v2630_v33 }
 0x32b   :  { %3270 = vmatmul.bf16.gmra.mxu3 %v2631_v24  ;;  %v4169_v8 = vpack.c.bf16 %v3392_v52, %v3391_v38 }
 0x32d   :  { %v3142_v42 = vpop.f32.mrf.mxu2  ;;  %4221 = vst [vmem:[#allocation11 + $0x30] sm:$0xff] %v4169_v8   ;;  %v2966_v23 = vpop.f32.mrf.mxu0 }
 0x32e   :  { %v3231_v26 = vpop.f32.mrf.mxu3  ;;  %v3143_v19 = vadd.f32 %v3142_v42, %v3054_v16 }
 0x32f   :  { %v3055_v0 = vpop.f32.mrf.mxu1 }
 0x330   :  { %v3056_v20 = vadd.f32 %v3055_v0, %v2966_v23  ;;  %v3232_v40 = vadd.f32 %v3231_v26, %v3143_v19 }
 0x332   :  { %v3393_v33 = vadd.f32 %v6376_v61, %v3232_v40 }
 0x335   :  { %v3144_v63 = vpop.f32.mrf.mxu2  ;;  %v2969_v36 = vpop.f32.mrf.mxu0 }
 0x336   :  { %v3145_v45 = vadd.f32 %v3144_v63, %v3056_v20  ;;  %v3233_v55 = vpop.f32.mrf.mxu3 }
 0x337   :  { %v3058_v10 = vpop.f32.mrf.mxu1 }
 0x338   :  { %v3234_v56 = vadd.f32 %v3233_v55, %v3145_v45  ;;  %v3059_v17 = vadd.f32 %v3058_v10, %v2969_v36 }
 0x33a   :  { %v3394_v18 = vadd.f32 %v6376_v61, %v3234_v56 }
 0x33c   :  { %v4174_v34 = vpack.c.bf16 %v3394_v18, %v3393_v33 }
 0x33d   :  { %v3147_v24 = vpop.f32.mrf.mxu2  ;;  %v2971_v13 = vpop.f32.mrf.mxu0 }
 0x33e   :  { %4222 = vst [vmem:[#allocation11 + $0x38] sm:$0xff] %v4174_v34   ;;  %v3236_v27 = vpop.f32.mrf.mxu3  ;;  %v3148_v31 = vadd.f32 %v3147_v24, %v3059_v17 }
 0x33f   :  { %v3060_v12 = vpop.f32.mrf.mxu1 }
 0x340   :  { %v3061_v7 = vadd.f32 %v3060_v12, %v2971_v13  ;;  %v3237_v41 = vadd.f32 %v3236_v27, %v3148_v31 }
 0x342   :  { %v3395_v29 = vadd.f32 %v6376_v61, %v3237_v41 }
 0x345   :  { %v3149_v60 = vpop.f32.mrf.mxu2  ;;  %v2974_v39 = vpop.f32.mrf.mxu0 }
 0x346   :  { %v3150_v4 = vadd.f32 %v3149_v60, %v3061_v7  ;;  %v3238_v11 = vpop.f32.mrf.mxu3 }
 0x347   :  { %v3063_v47 = vpop.f32.mrf.mxu1 }
 0x348   :  { %v3239_v1 = vadd.f32 %v3238_v11, %v3150_v4  ;;  %v3064_v62 = vadd.f32 %v3063_v47, %v2974_v39 }
 0x34a   :  { %v3396_v57 = vadd.f32 %v6376_v61, %v3239_v1 }
 0x34c   :  { %v4179_v44 = vpack.c.bf16 %v3396_v57, %v3395_v29 }
 0x34d   :  { %v3152_v28 = vpop.f32.mrf.mxu2  ;;  %v2976_v25 = vpop.f32.mrf.mxu0 }
 0x34e   :  { %4223 = vst [vmem:[#allocation11 + $0x40] sm:$0xff] %v4179_v44   ;;  %v3241_v22 = vpop.f32.mrf.mxu3  ;;  %v3153_v3 = vadd.f32 %v3152_v28, %v3064_v62 }
 0x34f   :  { %v3065_v58 = vpop.f32.mrf.mxu1 }
 0x350   :  { %v3066_v15 = vadd.f32 %v3065_v58, %v2976_v25  ;;  %v3242_v51 = vadd.f32 %v3241_v22, %v3153_v3 }
 0x352   :  { %v3397_v35 = vadd.f32 %v6376_v61, %v3242_v51 }
 0x355   :  { %v3154_v32 = vpop.f32.mrf.mxu2  ;;  %v2979_v53 = vpop.f32.mrf.mxu0 }
 0x356   :  { %v3155_v46 = vadd.f32 %v3154_v32, %v3066_v15  ;;  %v3243_v50 = vpop.f32.mrf.mxu3 }
 0x357   :  { %v3068_v49 = vpop.f32.mrf.mxu1 }
 0x358   :  { %v3244_v9 = vadd.f32 %v3243_v50, %v3155_v46  ;;  %v3069_v37 = vadd.f32 %v3068_v49, %v2979_v53 }
 0x35a   :  { %v3398_v59 = vadd.f32 %v6376_v61, %v3244_v9 }
 0x35c   :  { %v4184_v43 = vpack.c.bf16 %v3398_v59, %v3397_v35 }
 0x35d   :  { %v3157_v14 = vpop.f32.mrf.mxu2  ;;  %v2981_v21 = vpop.f32.mrf.mxu0 }
 0x35e   :  { %4224 = vst [vmem:[#allocation11 + $0x48] sm:$0xff] %v4184_v43   ;;  %v3246_v6 = vpop.f32.mrf.mxu3  ;;  %v3158_v5 = vadd.f32 %v3157_v14, %v3069_v37 }
 0x35f   :  { %v3070_v30 = vpop.f32.mrf.mxu1 }
 0x360   :  { %v3071_v38 = vadd.f32 %v3070_v30, %v2981_v21  ;;  %v3247_v48 = vadd.f32 %v3246_v6, %v3158_v5 }
 0x362   :  { %v3399_v23 = vadd.f32 %v6376_v61, %v3247_v48 }
 0x365   :  { %v3159_v52 = vpop.f32.mrf.mxu2  ;;  %v2984_v8 = vpop.f32.mrf.mxu0 }
 0x366   :  { %v3160_v2 = vadd.f32 %v3159_v52, %v3071_v38  ;;  %v3248_v54 = vpop.f32.mrf.mxu3 }
 0x367   :  { %v3073_v42 = vpop.f32.mrf.mxu1 }
 0x368   :  { %v3249_v26 = vadd.f32 %v3248_v54, %v3160_v2  ;;  %v3074_v45 = vadd.f32 %v3073_v42, %v2984_v8 }
 0x36a   :  { %v3400_v0 = vadd.f32 %v6376_v61, %v3249_v26 }
 0x36c   :  { %v4189_v16 = vpack.c.bf16 %v3400_v0, %v3399_v23 }
 0x36d   :  { %v3162_v19 = vpop.f32.mrf.mxu2  ;;  %v2986_v63 = vpop.f32.mrf.mxu0 }
 0x36e   :  { %4225 = vst [vmem:[#allocation11 + $0x50] sm:$0xff] %v4189_v16   ;;  %v3251_v20 = vpop.f32.mrf.mxu3  ;;  %v3163_v55 = vadd.f32 %v3162_v19, %v3074_v45 }
 0x36f   :  { %v3075_v40 = vpop.f32.mrf.mxu1 }
 0x370   :  { %v3076_v36 = vadd.f32 %v3075_v40, %v2986_v63  ;;  %v3252_v56 = vadd.f32 %v3251_v20, %v3163_v55 }
 0x372   :  { %v3401_v13 = vadd.f32 %v6376_v61, %v3252_v56 }
 0x375   :  { %v3164_v10 = vpop.f32.mrf.mxu2  ;;  %v2989_v34 = vpop.f32.mrf.mxu0 }
 0x376   :  { %v3165_v33 = vadd.f32 %v3164_v10, %v3076_v36  ;;  %v3253_v18 = vpop.f32.mrf.mxu3 }
 0x377   :  { %v3078_v24 = vpop.f32.mrf.mxu1 }
 0x378   :  { %v3254_v27 = vadd.f32 %v3253_v18, %v3165_v33  ;;  %v3079_v4 = vadd.f32 %v3078_v24, %v2989_v34 }
 0x37a   :  { %v3402_v12 = vadd.f32 %v6376_v61, %v3254_v27 }
 0x37c   :  { %v4194_v17 = vpack.c.bf16 %v3402_v12, %v3401_v13 }
 0x37d   :  { %v3167_v31 = vpop.f32.mrf.mxu2  ;;  %v2991_v60 = vpop.f32.mrf.mxu0 }
 0x37e   :  { %4226 = vst [vmem:[#allocation11 + $0x58] sm:$0xff] %v4194_v17   ;;  %v3256_v7 = vpop.f32.mrf.mxu3  ;;  %v3168_v11 = vadd.f32 %v3167_v31, %v3079_v4 }
 0x37f   :  { %v3080_v41 = vpop.f32.mrf.mxu1 }
 0x380   :  { %v3081_v39 = vadd.f32 %v3080_v41, %v2991_v60  ;;  %v3257_v1 = vadd.f32 %v3256_v7, %v3168_v11 }
 0x382   :  { %v3403_v25 = vadd.f32 %v6376_v61, %v3257_v1 }
 0x385   :  { %v3169_v47 = vpop.f32.mrf.mxu2  ;;  %v2994_v44 = vpop.f32.mrf.mxu0 }
 0x386   :  { %v3170_v29 = vadd.f32 %v3169_v47, %v3081_v39  ;;  %v3258_v57 = vpop.f32.mrf.mxu3 }
 0x387   :  { %v3083_v28 = vpop.f32.mrf.mxu1 }
 0x388   :  { %v3259_v22 = vadd.f32 %v3258_v57, %v3170_v29  ;;  %v3084_v46 = vadd.f32 %v3083_v28, %v2994_v44 }
 0x38a   :  { %v3404_v58 = vadd.f32 %v6376_v61, %v3259_v22 }
 0x38c   :  { %v4199_v62 = vpack.c.bf16 %v3404_v58, %v3403_v25 }
 0x38d   :  { %v3172_v3 = vpop.f32.mrf.mxu2  ;;  %v2996_v32 = vpop.f32.mrf.mxu0 }
 0x38e   :  { %4227 = vst [vmem:[#allocation11 + $0x60] sm:$0xff] %v4199_v62   ;;  %v3261_v15 = vpop.f32.mrf.mxu3  ;;  %v3173_v50 = vadd.f32 %v3172_v3, %v3084_v46 }
 0x38f   :  { %v3085_v51 = vpop.f32.mrf.mxu1 }
 0x390   :  { %v3086_v53 = vadd.f32 %v3085_v51, %v2996_v32  ;;  %v3262_v9 = vadd.f32 %v3261_v15, %v3173_v50 }
 0x392   :  { %v3405_v21 = vadd.f32 %v6376_v61, %v3262_v9 }
 0x395   :  { %v3174_v49 = vpop.f32.mrf.mxu2  ;;  %v2999_v43 = vpop.f32.mrf.mxu0 }
 0x396   :  { %v3175_v35 = vadd.f32 %v3174_v49, %v3086_v53  ;;  %v3263_v59 = vpop.f32.mrf.mxu3 }
 0x397   :  { %v3088_v14 = vpop.f32.mrf.mxu1 }
 0x398   :  { %v3264_v6 = vadd.f32 %v3263_v59, %v3175_v35  ;;  %v3089_v2 = vadd.f32 %v3088_v14, %v2999_v43 }
 0x39a   :  { %v3406_v30 = vadd.f32 %v6376_v61, %v3264_v6 }
 0x39c   :  { %v4204_v37 = vpack.c.bf16 %v3406_v30, %v3405_v21 }
 0x39d   :  { %v3177_v5 = vpop.f32.mrf.mxu2  ;;  %v3001_v52 = vpop.f32.mrf.mxu0 }
 0x39e   :  { %4228 = vst [vmem:[#allocation11 + $0x68] sm:$0xff] %v4204_v37   ;;  %v3266_v38 = vpop.f32.mrf.mxu3  ;;  %v3178_v54 = vadd.f32 %v3177_v5, %v3089_v2 }
 0x39f   :  { %v3090_v48 = vpop.f32.mrf.mxu1 }
 0x3a0   :  { %v3091_v8 = vadd.f32 %v3090_v48, %v3001_v52  ;;  %v3267_v26 = vadd.f32 %v3266_v38, %v3178_v54 }
 0x3a2   :  { %v3407_v63 = vadd.f32 %v6376_v61, %v3267_v26 }
 0x3a5   :  { %v3179_v42 = vpop.f32.mrf.mxu2  ;;  %v3004_v16 = vpop.f32.mrf.mxu0 }
 0x3a6   :  { %v3180_v23 = vadd.f32 %v3179_v42, %v3091_v8  ;;  %v3268_v0 = vpop.f32.mrf.mxu3 }
 0x3a7   :  { %v3093_v19 = vpop.f32.mrf.mxu1 }
 0x3a8   :  { %v3269_v20 = vadd.f32 %v3268_v0, %v3180_v23  ;;  %v3094_v10 = vadd.f32 %v3093_v19, %v3004_v16 }
 0x3aa   :  { %v3408_v40 = vadd.f32 %v6376_v61, %v3269_v20 }
 0x3ac   :  { %v4209_v45 = vpack.c.bf16 %v3408_v40, %v3407_v63 }
 0x3ad   :  { %v3182_v55 = vpop.f32.mrf.mxu2  ;;  %v3006_v56 = vpop.f32.mrf.mxu0 }
 0x3ae   :  { %4229 = vst [vmem:[#allocation11 + $0x70] sm:$0xff] %v4209_v45   ;;  %v3271_v36 = vpop.f32.mrf.mxu3  ;;  %v3183_v18 = vadd.f32 %v3182_v55, %v3094_v10 }
 0x3af   :  { %v3095_v33 = vpop.f32.mrf.mxu1 }
 0x3b0   :  { %v3096_v34 = vadd.f32 %v3095_v33, %v3006_v56  ;;  %v3272_v27 = vadd.f32 %v3271_v36, %v3183_v18 }
 0x3b2   :  { %v3409_v31 = vadd.f32 %v6376_v61, %v3272_v27 }
 0x3b5   :  { %v3184_v24 = vpop.f32.mrf.mxu2 }
 0x3b6   :  { %v3185_v13 = vadd.f32 %v3184_v24, %v3096_v34  ;;  %v3273_v12 = vpop.f32.mrf.mxu3 }
 0x3b8   :  { %v3274_v17 = vadd.f32 %v3273_v12, %v3185_v13 }
 0x3ba   :  { %v3410_v7 = vadd.f32 %v6376_v61, %v3274_v17 }
 0x3bc   :  { %v4214_v60 = vpack.c.bf16 %v3410_v7, %v3409_v31 }
 0x3be   :  { %4230 = vst [vmem:[#allocation11 + $0x78] sm:$0xff] %v4214_v60  }
 0x3bf   :  { %3487 = dma.vmem_to_hbm [thread:$0]  %s3480_s17, 2048, %s3482_s20, [#allocation5], %s4636_s15, %s4636_s15, %s4637_s16  }
 0x3c0   :  { %4626 = dma.done.wait [#allocation5], 2048  }
 0x3c1   :  { %4627 = vsyncadd [#allocation5], 4294965248 }
 0x3c2   :  { %3492 = vsyncpa [#allocation4], 1 }
 0x3c3   :  { %3493 = vsyncpa [#allocation7], 1 }
 0x3c4   :  { %3494 = vsyncpa [#allocation10], 1 }
 0x3c5   :  { %3495 = vsyncpa [#allocation5], 1 }

</bundles_post_ra>
